<compile_context>
chip_gen: v5e
topology: v5e:2x2
jax: 0.10.0
libtpu: 0.0.40
codegen_flags: <defaults>
</compile_context>

<pallas_src>
import functools

import jax
import jax.numpy as jnp
from jax.experimental import pallas as pl
from jax.experimental.pallas import tpu as pltpu

# ---------------- configuration (small synthetic ELMo) ----------------
B, S, C = 2, 8, 8                        # batch, seq len, max chars per token
V, E = 64, 16                            # char vocab, char embedding dim
FILTERS = ((1, 16), (2, 16), (3, 16))    # (conv width, n_filters)
F = sum(nf for _, nf in FILTERS)         # total CNN filters = 48
MAXW = max(w for w, _ in FILTERS)        # = 3 conv taps
D = 32                                   # token projection dim (LSTM input, per direction)
H = 32                                   # LSTM hidden per direction
OUT = 2 * H                              # elmo representation dim
N = B * S                                # tokens (kernel rows are time-major: t*B + b)
NC = N * C                               # total char slots
assert OUT == 2 * D                      # [tok|tok] duplication relies on D == H

VMEM = functools.partial(pl.BlockSpec, memory_space=pltpu.MemorySpace.VMEM)
SMEM = functools.partial(pl.BlockSpec, memory_space=pltpu.MemorySpace.SMEM)


# ---------------------------- fused kernel ----------------------------
def _bilstm_layer(gx, wh, h_scr):
    """One bidirectional LSTM layer with the input projection hoisted out.

    gx: (N, 8H) time-major rows; row t already merges [fwd input proj at t | bwd input proj at
        S-1-t] in per-gate interleaved columns [i_f|i_b|f_f|f_b|g_f|g_b|o_f|o_b].
    wh: (2H, 8H) recurrent weights in the same interleaved layout (rows = [h_f | h_b]).
    Writes hidden states to h_scr (N, 2H) = [h_fwd(t) | h_bwd(t)] per row."""
    f32 = jnp.float32
    h = jnp.zeros((B, 2 * H), f32)                    # [h_f | h_b]
    c = jnp.zeros((B, 2 * H), f32)                    # [c_f | c_b]
    for s in range(S):                                # S=8: full unroll is cheap
        g = gx[s * B:(s + 1) * B, :] + jnp.dot(h, wh, preferred_element_type=f32)   # (B, 8H)
        sg = jax.nn.sigmoid(g)                        # one full-width EUP launch (i/f/o lanes used)
        gg = jnp.tanh(g[:, 4 * H:6 * H])              # [g_f | g_b]
        c = sg[:, 2 * H:4 * H] * c + sg[:, 0:2 * H] * gg
        h = sg[:, 6 * H:8 * H] * jnp.tanh(c)          # already [h_f | h_b]: no concat needed
        rt = S - 1 - s
        h_scr[s * B:(s + 1) * B, 0:H] = h[:, 0:H]             # fwd state belongs to timestep s
        h_scr[rt * B:(rt + 1) * B, H:2 * H] = h[:, H:2 * H]   # bwd state belongs to timestep rt


def elmo_fused_kernel(mix_ref,
                      id0_ref, id1_ref, id2_ref, mask_ref,
                      padmask_ref, ew0_ref, ew1_ref, ew2_ref, cb_ref,
                      hw1_w_ref, hw1_b_ref, hw2_w_ref, hw2_b_ref,
                      pw2_ref, pb2_ref, rev_ref,
                      l1_wxf_ref, l1_wxb_ref, l1_b_ref, l1_wh_ref,
                      l2_wxf_ref, l2_wxb_ref, l2_b_ref, l2_wh_ref,
                      out_ref,
                      h1_scr, h2_scr):
    f32, bf16 = jnp.float32, jnp.bfloat16

    # --- char embedding + char CNN folded into per-tap (V, F) one-hot table matmuls ---
    # conv[pos p, filter f] = sum_j onehot(id[p+j]) @ (char_embed @ W_tap_j)   (bias after pool)
    iota = jax.lax.broadcasted_iota(jnp.int32, (NC, V), 1)

    def tap(id_ref, ew_ref):
        oh = (iota == id_ref[...]).astype(f32).astype(bf16)
        return jnp.dot(oh, ew_ref[...], preferred_element_type=f32)

    z = tap(id0_ref, ew0_ref) + tap(id1_ref, ew1_ref) + tap(id2_ref, ew2_ref)    # (NC, F)
    z = z + padmask_ref[...]            # -1e30 where a filter's window runs past the last char
    pooled = z[0:N, :]
    for p in range(1, C):               # max-pool over char positions (aligned sublane slices)
        pooled = jnp.maximum(pooled, z[p * N:(p + 1) * N, :])
    x = jax.nn.relu(pooled + cb_ref[...])                                        # (N, F)

    # --- 2 highway layers: transform|gate fused into one (F, 2F) matmul each ---
    for w_ref, b_ref in ((hw1_w_ref, hw1_b_ref), (hw2_w_ref, hw2_b_ref)):
        y = jnp.dot(x.astype(bf16), w_ref[...], preferred_element_type=f32) + b_ref[...]
        nl = jax.nn.relu(y[:, 0:F])
        gate = jax.nn.sigmoid(y[:, F:2 * F])
        x = gate * x + (1.0 - gate) * nl

    # --- projection, duplicated host-side to [pw|pw]: tok2 = [tok|tok] feeds both the LSTM
    #     input projection and the scalar-mix token layer without any lane concat ---
    tok2 = jnp.dot(x.astype(bf16), pw2_ref[...], preferred_element_type=f32) + pb2_ref[...]   # (N, 2D)

    rev = rev_ref[...]                  # (N, N) per-batch time-reversal permutation

    # --- 2-layer biLSTM (gates per-gate direction-interleaved; see _bilstm_layer) ---
    tok2_rev = jnp.dot(rev, tok2, preferred_element_type=f32)
    gx1 = (jnp.dot(tok2, l1_wxf_ref[...], preferred_element_type=f32)
           + jnp.dot(tok2_rev, l1_wxb_ref[...], preferred_element_type=f32)
           + l1_b_ref[...])                                                      # (N, 8H)
    _bilstm_layer(gx1, l1_wh_ref[...], h1_scr)
    h1 = h1_scr[...]                                                             # (N, 2H)

    h1_rev = jnp.dot(rev, h1, preferred_element_type=f32)
    gx2 = (jnp.dot(h1, l2_wxf_ref[...], preferred_element_type=f32)
           + jnp.dot(h1_rev, l2_wxb_ref[...], preferred_element_type=f32)
           + l2_b_ref[...])
    _bilstm_layer(gx2, l2_wh_ref[...], h2_scr)
    h2 = h2_scr[...]

    # --- scalar mix (gamma folded into the softmaxed weights host-side) + padded-token zeroing ---
    s0, s1, s2 = mix_ref[0], mix_ref[1], mix_ref[2]
    out_ref[...] = (s0 * tok2 + s1 * h1 + s2 * h2) * mask_ref[...]


# ---------------------------- parameters ----------------------------
def init_params(key):
    ks = jax.random.split(key, 24)
    p = {}
    ce = jax.random.normal(ks[0], (V, E), jnp.float32) * 0.1
    p['char_embed'] = ce.at[0].set(0.0)                  # padding char row -> zero vector
    p['conv_w'] = [jax.random.normal(ks[1 + i], (w, E, nf), jnp.float32) * 0.1
                   for i, (w, nf) in enumerate(FILTERS)]
    p['conv_b'] = [jnp.zeros((nf,), jnp.float32) for _, nf in FILTERS]
    p['highway'] = []
    for li in range(2):                                  # transform / gate split; gate bias = 1
        wt = jax.random.normal(ks[4 + 2 * li], (F, F), jnp.float32) * 0.05
        wg = jax.random.normal(ks[5 + 2 * li], (F, F), jnp.float32) * 0.05
        p['highway'].append((wt, jnp.zeros((F,), jnp.float32), wg, jnp.ones((F,), jnp.float32)))
    p['proj_w'] = jax.random.normal(ks[8], (F, D), jnp.float32) * 0.05
    p['proj_b'] = jnp.zeros((D,), jnp.float32)

    def lstm_dir(kx, kh, in_dim):
        wx = jax.random.normal(kx, (in_dim, 4 * H), jnp.float32) * 0.05
        wh = jax.random.normal(kh, (H, 4 * H), jnp.float32) * 0.05
        b = jnp.zeros((4 * H,), jnp.float32)
        return wx, wh, b

    p['l1_fwd'] = lstm_dir(ks[9], ks[10], D)
    p['l1_bwd'] = lstm_dir(ks[11], ks[12], D)
    p['l2_fwd'] = lstm_dir(ks[13], ks[14], H)
    p['l2_bwd'] = lstm_dir(ks[15], ks[16], H)
    p['mix_w'] = jnp.array([0.1, 0.2, 0.3], jnp.float32)
    p['gamma'] = jnp.array(1.0, jnp.float32)
    return p


def _interleave_gate_cols(wf, wb):
    """(.., 4H), (.., 4H) -> (.., 8H) with per-gate [fwd | bwd] column interleave."""
    parts = []
    for gi in range(4):
        parts.append(wf[..., gi * H:(gi + 1) * H])
        parts.append(wb[..., gi * H:(gi + 1) * H])
    return jnp.concatenate(parts, axis=-1)


def pack_kernel_params(p):
    """Host-side weight repacking for the fused kernel (done once, outside the kernel)."""
    f32, bf16 = jnp.float32, jnp.bfloat16

    # char CNN: fold char embedding into per-tap (V, F) tables
    taps = [jnp.zeros((E, F), f32) for _ in range(MAXW)]
    col = 0
    for (width, nf), w in zip(FILTERS, p['conv_w']):
        for j in range(width):
            taps[j] = taps[j].at[:, col:col + nf].set(w[j])
        col += nf
    ews = tuple((p['char_embed'] @ t).astype(bf16) for t in taps)        # 3 x (V, F)
    cb = jnp.concatenate(p['conv_b']).reshape(1, F)
    # position-validity mask: -1e30 where a filter's conv window would run past the last char
    pm = jnp.zeros((C, F), f32)
    col = 0
    for width, nf in FILTERS:
        if width > 1:
            pm = pm.at[C - width + 1:, col:col + nf].set(-1e30)
        col += nf
    padmask = jnp.repeat(pm, N, axis=0)                                  # (NC, F)

    # highway: [transform | gate] fused
    hws = []
    for wt, bt, wg, bg in p['highway']:
        hws.append(jnp.concatenate([wt, wg], axis=1).astype(bf16))       # (F, 2F)
        hws.append(jnp.concatenate([bt, bg]).reshape(1, 2 * F))          # (1, 2F)

    # projection duplicated to [tok | tok]
    pw2 = jnp.concatenate([p['proj_w'], p['proj_w']], axis=1).astype(bf16)   # (F, 2D)
    pb2 = jnp.concatenate([p['proj_b'], p['proj_b']]).reshape(1, 2 * D)

    # time-reversal permutation over time-major token rows (row i = t*B + b)
    idx = jnp.arange(N)
    rev_rows = (S - 1 - idx // B) * B + idx % B
    rmat = jnp.zeros((N, N), f32).at[idx, rev_rows].set(1.0)

    # LSTM weights: per-gate direction-interleaved columns; separate matrices for the (forward)
    # input and the time-reversed input so the bwd half is fed by the reversed sequence.
    def layer_pack(fwd, bwd, in_dim):
        wxf, whf, bf_ = fwd
        wxb, whb, bb_ = bwd
        z_in = jnp.zeros((in_dim, 4 * H), f32)
        z_h = jnp.zeros((H, 4 * H), f32)
        wa = jnp.concatenate([_interleave_gate_cols(wxf, z_in),
                              jnp.zeros((in_dim, 8 * H), f32)], axis=0)        # (2*in, 8H)
        wb_ = jnp.concatenate([jnp.zeros((in_dim, 8 * H), f32),
                               _interleave_gate_cols(z_in, wxb)], axis=0)      # (2*in, 8H)
        bias = _interleave_gate_cols(bf_, bb_).reshape(1, 8 * H)
        wh = jnp.concatenate([_interleave_gate_cols(whf, z_h),
                              _interleave_gate_cols(z_h, whb)], axis=0)        # (2H, 8H)
        return wa, wb_, bias, wh

    l1 = layer_pack(p['l1_fwd'], p['l1_bwd'], D)
    l2 = layer_pack(p['l2_fwd'], p['l2_bwd'], H)

    return (padmask, *ews, cb, *hws, pw2, pb2, rmat, *l1, *l2)


# ---------------------------- forward (ElmoEmbedding.forward) ----------------------------
def elmo_embedding_forward(batch, params, kernel_params, input_key='input_ids',
                           output_key='elmo_embedding'):
    ids = batch[input_key]                               # (B, S, C) int32, 0 = padding char
    mask = (ids > 0).any(axis=-1)                        # (B, S) bool -> 'label_mask'

    # tiny int/bool layout glue: position-major char ids (row = c*N + t*B + b), per conv tap
    idpm = jnp.transpose(ids, (2, 1, 0)).astype(jnp.int32)               # (C, S, B)

    def tap_ids(j):
        shifted = idpm[j:]
        if j > 0:
            shifted = jnp.concatenate([shifted, jnp.zeros((j, S, B), jnp.int32)], axis=0)
        return shifted.reshape(NC, 1)

    id0, id1, id2 = tap_ids(0), tap_ids(1), tap_ids(2)
    mask_tm = jnp.transpose(mask, (1, 0)).reshape(N, 1).astype(jnp.float32)      # row = t*B + b
    mix = (jax.nn.softmax(params['mix_w']) * params['gamma']).astype(jnp.float32)  # gamma folded

    rep_tm = pl.pallas_call(
        elmo_fused_kernel,
        out_shape=jax.ShapeDtypeStruct((N, OUT), jnp.float32),
        in_specs=[SMEM()] + [VMEM()] * 24,
        out_specs=VMEM(),
        scratch_shapes=[pltpu.VMEM((N, OUT), jnp.float32),   # layer-1 hidden states
                        pltpu.VMEM((N, OUT), jnp.float32)],  # layer-2 hidden states
    )(mix, id0, id1, id2, mask_tm, *kernel_params)           # (S*B, OUT), time-major rows

    rep = jnp.transpose(rep_tm.reshape(S, B, OUT), (1, 0, 2))                    # (B, S, OUT)

    out = dict(batch)
    out[output_key] = rep
    out['label_mask'] = mask
    return out


if __name__ == "__main__":
    key = jax.random.PRNGKey(0)
    pkey, ikey = jax.random.split(key)
    params = init_params(pkey)
    kernel_params = pack_kernel_params(params)

    ids = jax.random.randint(ikey, (B, S, C), 1, V, dtype=jnp.int32)
    ids = ids.at[1, 5:, :].set(0)          # last 3 tokens of sample 1 are padding
    batch = {'input_ids': ids}

    out = elmo_embedding_forward(batch, params, kernel_params)
    jax.block_until_ready(out['elmo_embedding'])
    jax.block_until_ready(out['label_mask'])

    assert out['elmo_embedding'].shape == (B, S, OUT)
    assert out['elmo_embedding'].dtype == jnp.float32
    assert out['label_mask'].shape == (B, S)
    assert out['label_mask'].dtype == jnp.bool_
    # padded tokens must produce zero representations
    assert float(jnp.abs(out['elmo_embedding'][1, 5:]).max()) == 0.0
    print("KERNEL_OK")
</pallas_src>

<mosaic_0001>
module attributes {stable_mosaic.version = 11 : i64} {
  func.func @elmo_fused_kernel(%arg0: memref<3xf32, #tpu.memory_space<smem>>, %arg1: memref<128x1xi32, #tpu.memory_space<vmem>>, %arg2: memref<128x1xi32, #tpu.memory_space<vmem>>, %arg3: memref<128x1xi32, #tpu.memory_space<vmem>>, %arg4: memref<16x1xf32, #tpu.memory_space<vmem>>, %arg5: memref<128x48xf32, #tpu.memory_space<vmem>>, %arg6: memref<64x48xbf16, #tpu.memory_space<vmem>>, %arg7: memref<64x48xbf16, #tpu.memory_space<vmem>>, %arg8: memref<64x48xbf16, #tpu.memory_space<vmem>>, %arg9: memref<1x48xf32, #tpu.memory_space<vmem>>, %arg10: memref<48x96xbf16, #tpu.memory_space<vmem>>, %arg11: memref<1x96xf32, #tpu.memory_space<vmem>>, %arg12: memref<48x96xbf16, #tpu.memory_space<vmem>>, %arg13: memref<1x96xf32, #tpu.memory_space<vmem>>, %arg14: memref<48x64xbf16, #tpu.memory_space<vmem>>, %arg15: memref<1x64xf32, #tpu.memory_space<vmem>>, %arg16: memref<16x16xf32, #tpu.memory_space<vmem>>, %arg17: memref<64x256xf32, #tpu.memory_space<vmem>>, %arg18: memref<64x256xf32, #tpu.memory_space<vmem>>, %arg19: memref<1x256xf32, #tpu.memory_space<vmem>>, %arg20: memref<64x256xf32, #tpu.memory_space<vmem>>, %arg21: memref<64x256xf32, #tpu.memory_space<vmem>>, %arg22: memref<64x256xf32, #tpu.memory_space<vmem>>, %arg23: memref<1x256xf32, #tpu.memory_space<vmem>>, %arg24: memref<64x256xf32, #tpu.memory_space<vmem>>, %arg25: memref<16x64xf32, #tpu.memory_space<vmem>>, %arg26: memref<16x64xf32, #tpu.memory_space<vmem>>, %arg27: memref<16x64xf32, #tpu.memory_space<vmem>>) attributes {dimension_semantics = [], scalar_prefetch = 0 : i64, scratch_operands = 2 : i64, tpu.core_type = #tpu.core_type<tc>} {
    %0 = tpu.iota {dimensions = array<i32: 1>} : vector<128x64xi32>
    %c0 = arith.constant 0 : index
    %c0_0 = arith.constant 0 : index
    %1 = vector.load %arg1[%c0, %c0_0] : memref<128x1xi32, #tpu.memory_space<vmem>>, vector<128x1xi32>
    %2 = vector.broadcast %1 : vector<128x1xi32> to vector<128x64xi32>
    %3 = arith.cmpi eq, %0, %2 : vector<128x64xi32>
    %4 = arith.extui %3 : vector<128x64xi1> to vector<128x64xi32>
    %5 = arith.sitofp %4 : vector<128x64xi32> to vector<128x64xf32>
    %6 = arith.truncf %5 : vector<128x64xf32> to vector<128x64xbf16>
    %c0_1 = arith.constant 0 : index
    %c0_2 = arith.constant 0 : index
    %7 = vector.load %arg6[%c0_1, %c0_2] : memref<64x48xbf16, #tpu.memory_space<vmem>>, vector<64x48xbf16>
    %cst = arith.constant dense<0.000000e+00> : vector<128x48xf32>
    %8 = tpu.matmul %6, %7, %cst {dimension_numbers = #tpu.dot_dimension_numbers<[1], [0], [0], [1], [0, 0, 1, 1], [], []>} : vector<128x64xbf16>, vector<64x48xbf16>, vector<128x48xf32> -> vector<128x48xf32>
    %c0_3 = arith.constant 0 : index
    %c0_4 = arith.constant 0 : index
    %9 = vector.load %arg2[%c0_3, %c0_4] : memref<128x1xi32, #tpu.memory_space<vmem>>, vector<128x1xi32>
    %10 = vector.broadcast %9 : vector<128x1xi32> to vector<128x64xi32>
    %11 = arith.cmpi eq, %0, %10 : vector<128x64xi32>
    %12 = arith.extui %11 : vector<128x64xi1> to vector<128x64xi32>
    %13 = arith.sitofp %12 : vector<128x64xi32> to vector<128x64xf32>
    %14 = arith.truncf %13 : vector<128x64xf32> to vector<128x64xbf16>
    %c0_5 = arith.constant 0 : index
    %c0_6 = arith.constant 0 : index
    %15 = vector.load %arg7[%c0_5, %c0_6] : memref<64x48xbf16, #tpu.memory_space<vmem>>, vector<64x48xbf16>
    %cst_7 = arith.constant dense<0.000000e+00> : vector<128x48xf32>
    %16 = tpu.matmul %14, %15, %cst_7 {dimension_numbers = #tpu.dot_dimension_numbers<[1], [0], [0], [1], [0, 0, 1, 1], [], []>} : vector<128x64xbf16>, vector<64x48xbf16>, vector<128x48xf32> -> vector<128x48xf32>
    %17 = arith.addf %8, %16 : vector<128x48xf32>
    %c0_8 = arith.constant 0 : index
    %c0_9 = arith.constant 0 : index
    %18 = vector.load %arg3[%c0_8, %c0_9] : memref<128x1xi32, #tpu.memory_space<vmem>>, vector<128x1xi32>
    %19 = vector.broadcast %18 : vector<128x1xi32> to vector<128x64xi32>
    %20 = arith.cmpi eq, %0, %19 : vector<128x64xi32>
    %21 = arith.extui %20 : vector<128x64xi1> to vector<128x64xi32>
    %22 = arith.sitofp %21 : vector<128x64xi32> to vector<128x64xf32>
    %23 = arith.truncf %22 : vector<128x64xf32> to vector<128x64xbf16>
    %c0_10 = arith.constant 0 : index
    %c0_11 = arith.constant 0 : index
    %24 = vector.load %arg8[%c0_10, %c0_11] : memref<64x48xbf16, #tpu.memory_space<vmem>>, vector<64x48xbf16>
    %cst_12 = arith.constant dense<0.000000e+00> : vector<128x48xf32>
    %25 = tpu.matmul %23, %24, %cst_12 {dimension_numbers = #tpu.dot_dimension_numbers<[1], [0], [0], [1], [0, 0, 1, 1], [], []>} : vector<128x64xbf16>, vector<64x48xbf16>, vector<128x48xf32> -> vector<128x48xf32>
    %26 = arith.addf %17, %25 : vector<128x48xf32>
    %c0_13 = arith.constant 0 : index
    %c0_14 = arith.constant 0 : index
    %27 = vector.load %arg5[%c0_13, %c0_14] : memref<128x48xf32, #tpu.memory_space<vmem>>, vector<128x48xf32>
    %28 = arith.addf %26, %27 : vector<128x48xf32>
    %29 = vector.extract_strided_slice %28 {offsets = [0, 0], sizes = [16, 48], strides = [1, 1]} : vector<128x48xf32> to vector<16x48xf32>
    %30 = vector.extract_strided_slice %28 {offsets = [16, 0], sizes = [16, 48], strides = [1, 1]} : vector<128x48xf32> to vector<16x48xf32>
    %31 = arith.maximumf %29, %30 : vector<16x48xf32>
    %32 = vector.extract_strided_slice %28 {offsets = [32, 0], sizes = [16, 48], strides = [1, 1]} : vector<128x48xf32> to vector<16x48xf32>
    %33 = arith.maximumf %31, %32 : vector<16x48xf32>
    %34 = vector.extract_strided_slice %28 {offsets = [48, 0], sizes = [16, 48], strides = [1, 1]} : vector<128x48xf32> to vector<16x48xf32>
    %35 = arith.maximumf %33, %34 : vector<16x48xf32>
    %36 = vector.extract_strided_slice %28 {offsets = [64, 0], sizes = [16, 48], strides = [1, 1]} : vector<128x48xf32> to vector<16x48xf32>
    %37 = arith.maximumf %35, %36 : vector<16x48xf32>
    %38 = vector.extract_strided_slice %28 {offsets = [80, 0], sizes = [16, 48], strides = [1, 1]} : vector<128x48xf32> to vector<16x48xf32>
    %39 = arith.maximumf %37, %38 : vector<16x48xf32>
    %40 = vector.extract_strided_slice %28 {offsets = [96, 0], sizes = [16, 48], strides = [1, 1]} : vector<128x48xf32> to vector<16x48xf32>
    %41 = arith.maximumf %39, %40 : vector<16x48xf32>
    %42 = vector.extract_strided_slice %28 {offsets = [112, 0], sizes = [16, 48], strides = [1, 1]} : vector<128x48xf32> to vector<16x48xf32>
    %43 = arith.maximumf %41, %42 : vector<16x48xf32>
    %c0_15 = arith.constant 0 : index
    %c0_16 = arith.constant 0 : index
    %44 = vector.load %arg9[%c0_15, %c0_16] : memref<1x48xf32, #tpu.memory_space<vmem>>, vector<1x48xf32>
    %45 = vector.broadcast %44 : vector<1x48xf32> to vector<16x48xf32>
    %46 = arith.addf %43, %45 : vector<16x48xf32>
    %cst_17 = arith.constant 0.000000e+00 : f32
    %47 = vector.broadcast %cst_17 : f32 to vector<16x48xf32>
    %48 = arith.maximumf %46, %47 : vector<16x48xf32>
    %49 = arith.truncf %48 : vector<16x48xf32> to vector<16x48xbf16>
    %c0_18 = arith.constant 0 : index
    %c0_19 = arith.constant 0 : index
    %50 = vector.load %arg10[%c0_18, %c0_19] : memref<48x96xbf16, #tpu.memory_space<vmem>>, vector<48x96xbf16>
    %cst_20 = arith.constant dense<0.000000e+00> : vector<16x96xf32>
    %51 = tpu.matmul %49, %50, %cst_20 {dimension_numbers = #tpu.dot_dimension_numbers<[1], [0], [0], [1], [0, 0, 1, 1], [], []>} : vector<16x48xbf16>, vector<48x96xbf16>, vector<16x96xf32> -> vector<16x96xf32>
    %c0_21 = arith.constant 0 : index
    %c0_22 = arith.constant 0 : index
    %52 = vector.load %arg11[%c0_21, %c0_22] : memref<1x96xf32, #tpu.memory_space<vmem>>, vector<1x96xf32>
    %53 = vector.broadcast %52 : vector<1x96xf32> to vector<16x96xf32>
    %54 = arith.addf %51, %53 : vector<16x96xf32>
    %55 = vector.extract_strided_slice %54 {offsets = [0, 0], sizes = [16, 48], strides = [1, 1]} : vector<16x96xf32> to vector<16x48xf32>
    %cst_23 = arith.constant 0.000000e+00 : f32
    %56 = vector.broadcast %cst_23 : f32 to vector<16x48xf32>
    %57 = arith.maximumf %55, %56 : vector<16x48xf32>
    %58 = vector.extract_strided_slice %54 {offsets = [0, 48], sizes = [16, 48], strides = [1, 1]} : vector<16x96xf32> to vector<16x48xf32>
    %59 = arith.negf %58 : vector<16x48xf32>
    %60 = math.exp %59 : vector<16x48xf32>
    %cst_24 = arith.constant 1.000000e+00 : f32
    %61 = vector.broadcast %cst_24 : f32 to vector<16x48xf32>
    %62 = arith.addf %61, %60 : vector<16x48xf32>
    %63 = arith.divf %61, %62 : vector<16x48xf32>
    %64 = arith.mulf %63, %48 : vector<16x48xf32>
    %cst_25 = arith.constant 1.000000e+00 : f32
    %65 = vector.broadcast %cst_25 : f32 to vector<16x48xf32>
    %66 = arith.subf %65, %63 : vector<16x48xf32>
    %67 = arith.mulf %66, %57 : vector<16x48xf32>
    %68 = arith.addf %64, %67 : vector<16x48xf32>
    %69 = arith.truncf %68 : vector<16x48xf32> to vector<16x48xbf16>
    %c0_26 = arith.constant 0 : index
    %c0_27 = arith.constant 0 : index
    %70 = vector.load %arg12[%c0_26, %c0_27] : memref<48x96xbf16, #tpu.memory_space<vmem>>, vector<48x96xbf16>
    %cst_28 = arith.constant dense<0.000000e+00> : vector<16x96xf32>
    %71 = tpu.matmul %69, %70, %cst_28 {dimension_numbers = #tpu.dot_dimension_numbers<[1], [0], [0], [1], [0, 0, 1, 1], [], []>} : vector<16x48xbf16>, vector<48x96xbf16>, vector<16x96xf32> -> vector<16x96xf32>
    %c0_29 = arith.constant 0 : index
    %c0_30 = arith.constant 0 : index
    %72 = vector.load %arg13[%c0_29, %c0_30] : memref<1x96xf32, #tpu.memory_space<vmem>>, vector<1x96xf32>
    %73 = vector.broadcast %72 : vector<1x96xf32> to vector<16x96xf32>
    %74 = arith.addf %71, %73 : vector<16x96xf32>
    %75 = vector.extract_strided_slice %74 {offsets = [0, 0], sizes = [16, 48], strides = [1, 1]} : vector<16x96xf32> to vector<16x48xf32>
    %cst_31 = arith.constant 0.000000e+00 : f32
    %76 = vector.broadcast %cst_31 : f32 to vector<16x48xf32>
    %77 = arith.maximumf %75, %76 : vector<16x48xf32>
    %78 = vector.extract_strided_slice %74 {offsets = [0, 48], sizes = [16, 48], strides = [1, 1]} : vector<16x96xf32> to vector<16x48xf32>
    %79 = arith.negf %78 : vector<16x48xf32>
    %80 = math.exp %79 : vector<16x48xf32>
    %cst_32 = arith.constant 1.000000e+00 : f32
    %81 = vector.broadcast %cst_32 : f32 to vector<16x48xf32>
    %82 = arith.addf %81, %80 : vector<16x48xf32>
    %83 = arith.divf %81, %82 : vector<16x48xf32>
    %84 = arith.mulf %83, %68 : vector<16x48xf32>
    %cst_33 = arith.constant 1.000000e+00 : f32
    %85 = vector.broadcast %cst_33 : f32 to vector<16x48xf32>
    %86 = arith.subf %85, %83 : vector<16x48xf32>
    %87 = arith.mulf %86, %77 : vector<16x48xf32>
    %88 = arith.addf %84, %87 : vector<16x48xf32>
    %89 = arith.truncf %88 : vector<16x48xf32> to vector<16x48xbf16>
    %c0_34 = arith.constant 0 : index
    %c0_35 = arith.constant 0 : index
    %90 = vector.load %arg14[%c0_34, %c0_35] : memref<48x64xbf16, #tpu.memory_space<vmem>>, vector<48x64xbf16>
    %cst_36 = arith.constant dense<0.000000e+00> : vector<16x64xf32>
    %91 = tpu.matmul %89, %90, %cst_36 {dimension_numbers = #tpu.dot_dimension_numbers<[1], [0], [0], [1], [0, 0, 1, 1], [], []>} : vector<16x48xbf16>, vector<48x64xbf16>, vector<16x64xf32> -> vector<16x64xf32>
    %c0_37 = arith.constant 0 : index
    %c0_38 = arith.constant 0 : index
    %92 = vector.load %arg15[%c0_37, %c0_38] : memref<1x64xf32, #tpu.memory_space<vmem>>, vector<1x64xf32>
    %93 = vector.broadcast %92 : vector<1x64xf32> to vector<16x64xf32>
    %94 = arith.addf %91, %93 : vector<16x64xf32>
    %c0_39 = arith.constant 0 : index
    %c0_40 = arith.constant 0 : index
    %95 = vector.load %arg16[%c0_39, %c0_40] : memref<16x16xf32, #tpu.memory_space<vmem>>, vector<16x16xf32>
    %cst_41 = arith.constant dense<0.000000e+00> : vector<16x64xf32>
    %96 = tpu.matmul %95, %94, %cst_41 {dimension_numbers = #tpu.dot_dimension_numbers<[1], [0], [0], [1], [0, 0, 1, 1], [], []>} : vector<16x16xf32>, vector<16x64xf32>, vector<16x64xf32> -> vector<16x64xf32>
    %c0_42 = arith.constant 0 : index
    %c0_43 = arith.constant 0 : index
    %97 = vector.load %arg17[%c0_42, %c0_43] : memref<64x256xf32, #tpu.memory_space<vmem>>, vector<64x256xf32>
    %cst_44 = arith.constant dense<0.000000e+00> : vector<16x256xf32>
    %98 = tpu.matmul %94, %97, %cst_44 {dimension_numbers = #tpu.dot_dimension_numbers<[1], [0], [0], [1], [0, 0, 1, 1], [], []>} : vector<16x64xf32>, vector<64x256xf32>, vector<16x256xf32> -> vector<16x256xf32>
    %c0_45 = arith.constant 0 : index
    %c0_46 = arith.constant 0 : index
    %99 = vector.load %arg18[%c0_45, %c0_46] : memref<64x256xf32, #tpu.memory_space<vmem>>, vector<64x256xf32>
    %cst_47 = arith.constant dense<0.000000e+00> : vector<16x256xf32>
    %100 = tpu.matmul %96, %99, %cst_47 {dimension_numbers = #tpu.dot_dimension_numbers<[1], [0], [0], [1], [0, 0, 1, 1], [], []>} : vector<16x64xf32>, vector<64x256xf32>, vector<16x256xf32> -> vector<16x256xf32>
    %101 = arith.addf %98, %100 : vector<16x256xf32>
    %c0_48 = arith.constant 0 : index
    %c0_49 = arith.constant 0 : index
    %102 = vector.load %arg19[%c0_48, %c0_49] : memref<1x256xf32, #tpu.memory_space<vmem>>, vector<1x256xf32>
    %103 = vector.broadcast %102 : vector<1x256xf32> to vector<16x256xf32>
    %104 = arith.addf %101, %103 : vector<16x256xf32>
    %c0_50 = arith.constant 0 : index
    %c0_51 = arith.constant 0 : index
    %105 = vector.load %arg20[%c0_50, %c0_51] : memref<64x256xf32, #tpu.memory_space<vmem>>, vector<64x256xf32>
    %cst_52 = arith.constant 0.000000e+00 : f32
    %106 = vector.broadcast %cst_52 : f32 to vector<2x64xf32>
    %cst_53 = arith.constant 0.000000e+00 : f32
    %107 = vector.broadcast %cst_53 : f32 to vector<2x64xf32>
    %108 = vector.extract_strided_slice %104 {offsets = [0, 0], sizes = [2, 256], strides = [1, 1]} : vector<16x256xf32> to vector<2x256xf32>
    %cst_54 = arith.constant dense<0.000000e+00> : vector<2x256xf32>
    %109 = tpu.matmul %106, %105, %cst_54 {dimension_numbers = #tpu.dot_dimension_numbers<[1], [0], [0], [1], [0, 0, 1, 1], [], []>} : vector<2x64xf32>, vector<64x256xf32>, vector<2x256xf32> -> vector<2x256xf32>
    %110 = arith.addf %108, %109 : vector<2x256xf32>
    %111 = arith.negf %110 : vector<2x256xf32>
    %112 = math.exp %111 : vector<2x256xf32>
    %cst_55 = arith.constant 1.000000e+00 : f32
    %113 = vector.broadcast %cst_55 : f32 to vector<2x256xf32>
    %114 = arith.addf %113, %112 : vector<2x256xf32>
    %115 = arith.divf %113, %114 : vector<2x256xf32>
    %116 = vector.extract_strided_slice %110 {offsets = [0, 128], sizes = [2, 64], strides = [1, 1]} : vector<2x256xf32> to vector<2x64xf32>
    %117 = math.tanh %116 : vector<2x64xf32>
    %118 = vector.extract_strided_slice %115 {offsets = [0, 64], sizes = [2, 64], strides = [1, 1]} : vector<2x256xf32> to vector<2x64xf32>
    %119 = arith.mulf %118, %107 : vector<2x64xf32>
    %120 = vector.extract_strided_slice %115 {offsets = [0, 0], sizes = [2, 64], strides = [1, 1]} : vector<2x256xf32> to vector<2x64xf32>
    %121 = arith.mulf %120, %117 : vector<2x64xf32>
    %122 = arith.addf %119, %121 : vector<2x64xf32>
    %123 = vector.extract_strided_slice %115 {offsets = [0, 192], sizes = [2, 64], strides = [1, 1]} : vector<2x256xf32> to vector<2x64xf32>
    %124 = math.tanh %122 : vector<2x64xf32>
    %125 = arith.mulf %123, %124 : vector<2x64xf32>
    %126 = vector.extract_strided_slice %125 {offsets = [0, 0], sizes = [2, 32], strides = [1, 1]} : vector<2x64xf32> to vector<2x32xf32>
    %c0_56 = arith.constant 0 : index
    %c0_57 = arith.constant 0 : index
    %127 = vector.load %arg26[%c0_56, %c0_57] : memref<16x64xf32, #tpu.memory_space<vmem>>, vector<2x32xf32>
    tpu.vector_store %arg26[%c0_56, %c0_57], %126 {strides = array<i32>} : memref<16x64xf32, #tpu.memory_space<vmem>>, vector<2x32xf32>,
    %128 = vector.extract_strided_slice %125 {offsets = [0, 32], sizes = [2, 32], strides = [1, 1]} : vector<2x64xf32> to vector<2x32xf32>
    %c14 = arith.constant 14 : index
    %c32 = arith.constant 32 : index
    %129 = vector.load %arg26[%c14, %c32] : memref<16x64xf32, #tpu.memory_space<vmem>>, vector<2x32xf32>
    tpu.vector_store %arg26[%c14, %c32], %128 {strides = array<i32>} : memref<16x64xf32, #tpu.memory_space<vmem>>, vector<2x32xf32>,
    %130 = vector.extract_strided_slice %104 {offsets = [2, 0], sizes = [2, 256], strides = [1, 1]} : vector<16x256xf32> to vector<2x256xf32>
    %cst_58 = arith.constant dense<0.000000e+00> : vector<2x256xf32>
    %131 = tpu.matmul %125, %105, %cst_58 {dimension_numbers = #tpu.dot_dimension_numbers<[1], [0], [0], [1], [0, 0, 1, 1], [], []>} : vector<2x64xf32>, vector<64x256xf32>, vector<2x256xf32> -> vector<2x256xf32>
    %132 = arith.addf %130, %131 : vector<2x256xf32>
    %133 = arith.negf %132 : vector<2x256xf32>
    %134 = math.exp %133 : vector<2x256xf32>
    %cst_59 = arith.constant 1.000000e+00 : f32
    %135 = vector.broadcast %cst_59 : f32 to vector<2x256xf32>
    %136 = arith.addf %135, %134 : vector<2x256xf32>
    %137 = arith.divf %135, %136 : vector<2x256xf32>
    %138 = vector.extract_strided_slice %132 {offsets = [0, 128], sizes = [2, 64], strides = [1, 1]} : vector<2x256xf32> to vector<2x64xf32>
    %139 = math.tanh %138 : vector<2x64xf32>
    %140 = vector.extract_strided_slice %137 {offsets = [0, 64], sizes = [2, 64], strides = [1, 1]} : vector<2x256xf32> to vector<2x64xf32>
    %141 = arith.mulf %140, %122 : vector<2x64xf32>
    %142 = vector.extract_strided_slice %137 {offsets = [0, 0], sizes = [2, 64], strides = [1, 1]} : vector<2x256xf32> to vector<2x64xf32>
    %143 = arith.mulf %142, %139 : vector<2x64xf32>
    %144 = arith.addf %141, %143 : vector<2x64xf32>
    %145 = vector.extract_strided_slice %137 {offsets = [0, 192], sizes = [2, 64], strides = [1, 1]} : vector<2x256xf32> to vector<2x64xf32>
    %146 = math.tanh %144 : vector<2x64xf32>
    %147 = arith.mulf %145, %146 : vector<2x64xf32>
    %148 = vector.extract_strided_slice %147 {offsets = [0, 0], sizes = [2, 32], strides = [1, 1]} : vector<2x64xf32> to vector<2x32xf32>
    %c2 = arith.constant 2 : index
    %c0_60 = arith.constant 0 : index
    %149 = vector.load %arg26[%c2, %c0_60] : memref<16x64xf32, #tpu.memory_space<vmem>>, vector<2x32xf32>
    tpu.vector_store %arg26[%c2, %c0_60], %148 {strides = array<i32>} : memref<16x64xf32, #tpu.memory_space<vmem>>, vector<2x32xf32>,
    %150 = vector.extract_strided_slice %147 {offsets = [0, 32], sizes = [2, 32], strides = [1, 1]} : vector<2x64xf32> to vector<2x32xf32>
    %c12 = arith.constant 12 : index
    %c32_61 = arith.constant 32 : index
    %151 = vector.load %arg26[%c12, %c32_61] : memref<16x64xf32, #tpu.memory_space<vmem>>, vector<2x32xf32>
    tpu.vector_store %arg26[%c12, %c32_61], %150 {strides = array<i32>} : memref<16x64xf32, #tpu.memory_space<vmem>>, vector<2x32xf32>,
    %152 = vector.extract_strided_slice %104 {offsets = [4, 0], sizes = [2, 256], strides = [1, 1]} : vector<16x256xf32> to vector<2x256xf32>
    %cst_62 = arith.constant dense<0.000000e+00> : vector<2x256xf32>
    %153 = tpu.matmul %147, %105, %cst_62 {dimension_numbers = #tpu.dot_dimension_numbers<[1], [0], [0], [1], [0, 0, 1, 1], [], []>} : vector<2x64xf32>, vector<64x256xf32>, vector<2x256xf32> -> vector<2x256xf32>
    %154 = arith.addf %152, %153 : vector<2x256xf32>
    %155 = arith.negf %154 : vector<2x256xf32>
    %156 = math.exp %155 : vector<2x256xf32>
    %cst_63 = arith.constant 1.000000e+00 : f32
    %157 = vector.broadcast %cst_63 : f32 to vector<2x256xf32>
    %158 = arith.addf %157, %156 : vector<2x256xf32>
    %159 = arith.divf %157, %158 : vector<2x256xf32>
    %160 = vector.extract_strided_slice %154 {offsets = [0, 128], sizes = [2, 64], strides = [1, 1]} : vector<2x256xf32> to vector<2x64xf32>
    %161 = math.tanh %160 : vector<2x64xf32>
    %162 = vector.extract_strided_slice %159 {offsets = [0, 64], sizes = [2, 64], strides = [1, 1]} : vector<2x256xf32> to vector<2x64xf32>
    %163 = arith.mulf %162, %144 : vector<2x64xf32>
    %164 = vector.extract_strided_slice %159 {offsets = [0, 0], sizes = [2, 64], strides = [1, 1]} : vector<2x256xf32> to vector<2x64xf32>
    %165 = arith.mulf %164, %161 : vector<2x64xf32>
    %166 = arith.addf %163, %165 : vector<2x64xf32>
    %167 = vector.extract_strided_slice %159 {offsets = [0, 192], sizes = [2, 64], strides = [1, 1]} : vector<2x256xf32> to vector<2x64xf32>
    %168 = math.tanh %166 : vector<2x64xf32>
    %169 = arith.mulf %167, %168 : vector<2x64xf32>
    %170 = vector.extract_strided_slice %169 {offsets = [0, 0], sizes = [2, 32], strides = [1, 1]} : vector<2x64xf32> to vector<2x32xf32>
    %c4 = arith.constant 4 : index
    %c0_64 = arith.constant 0 : index
    %171 = vector.load %arg26[%c4, %c0_64] : memref<16x64xf32, #tpu.memory_space<vmem>>, vector<2x32xf32>
    tpu.vector_store %arg26[%c4, %c0_64], %170 {strides = array<i32>} : memref<16x64xf32, #tpu.memory_space<vmem>>, vector<2x32xf32>,
    %172 = vector.extract_strided_slice %169 {offsets = [0, 32], sizes = [2, 32], strides = [1, 1]} : vector<2x64xf32> to vector<2x32xf32>
    %c10 = arith.constant 10 : index
    %c32_65 = arith.constant 32 : index
    %173 = vector.load %arg26[%c10, %c32_65] : memref<16x64xf32, #tpu.memory_space<vmem>>, vector<2x32xf32>
    tpu.vector_store %arg26[%c10, %c32_65], %172 {strides = array<i32>} : memref<16x64xf32, #tpu.memory_space<vmem>>, vector<2x32xf32>,
    %174 = vector.extract_strided_slice %104 {offsets = [6, 0], sizes = [2, 256], strides = [1, 1]} : vector<16x256xf32> to vector<2x256xf32>
    %cst_66 = arith.constant dense<0.000000e+00> : vector<2x256xf32>
    %175 = tpu.matmul %169, %105, %cst_66 {dimension_numbers = #tpu.dot_dimension_numbers<[1], [0], [0], [1], [0, 0, 1, 1], [], []>} : vector<2x64xf32>, vector<64x256xf32>, vector<2x256xf32> -> vector<2x256xf32>
    %176 = arith.addf %174, %175 : vector<2x256xf32>
    %177 = arith.negf %176 : vector<2x256xf32>
    %178 = math.exp %177 : vector<2x256xf32>
    %cst_67 = arith.constant 1.000000e+00 : f32
    %179 = vector.broadcast %cst_67 : f32 to vector<2x256xf32>
    %180 = arith.addf %179, %178 : vector<2x256xf32>
    %181 = arith.divf %179, %180 : vector<2x256xf32>
    %182 = vector.extract_strided_slice %176 {offsets = [0, 128], sizes = [2, 64], strides = [1, 1]} : vector<2x256xf32> to vector<2x64xf32>
    %183 = math.tanh %182 : vector<2x64xf32>
    %184 = vector.extract_strided_slice %181 {offsets = [0, 64], sizes = [2, 64], strides = [1, 1]} : vector<2x256xf32> to vector<2x64xf32>
    %185 = arith.mulf %184, %166 : vector<2x64xf32>
    %186 = vector.extract_strided_slice %181 {offsets = [0, 0], sizes = [2, 64], strides = [1, 1]} : vector<2x256xf32> to vector<2x64xf32>
    %187 = arith.mulf %186, %183 : vector<2x64xf32>
    %188 = arith.addf %185, %187 : vector<2x64xf32>
    %189 = vector.extract_strided_slice %181 {offsets = [0, 192], sizes = [2, 64], strides = [1, 1]} : vector<2x256xf32> to vector<2x64xf32>
    %190 = math.tanh %188 : vector<2x64xf32>
    %191 = arith.mulf %189, %190 : vector<2x64xf32>
    %192 = vector.extract_strided_slice %191 {offsets = [0, 0], sizes = [2, 32], strides = [1, 1]} : vector<2x64xf32> to vector<2x32xf32>
    %c6 = arith.constant 6 : index
    %c0_68 = arith.constant 0 : index
    %193 = vector.load %arg26[%c6, %c0_68] : memref<16x64xf32, #tpu.memory_space<vmem>>, vector<2x32xf32>
    tpu.vector_store %arg26[%c6, %c0_68], %192 {strides = array<i32>} : memref<16x64xf32, #tpu.memory_space<vmem>>, vector<2x32xf32>,
    %194 = vector.extract_strided_slice %191 {offsets = [0, 32], sizes = [2, 32], strides = [1, 1]} : vector<2x64xf32> to vector<2x32xf32>
    %c8 = arith.constant 8 : index
    %c32_69 = arith.constant 32 : index
    %195 = vector.load %arg26[%c8, %c32_69] : memref<16x64xf32, #tpu.memory_space<vmem>>, vector<2x32xf32>
    tpu.vector_store %arg26[%c8, %c32_69], %194 {strides = array<i32>} : memref<16x64xf32, #tpu.memory_space<vmem>>, vector<2x32xf32>,
    %196 = vector.extract_strided_slice %104 {offsets = [8, 0], sizes = [2, 256], strides = [1, 1]} : vector<16x256xf32> to vector<2x256xf32>
    %cst_70 = arith.constant dense<0.000000e+00> : vector<2x256xf32>
    %197 = tpu.matmul %191, %105, %cst_70 {dimension_numbers = #tpu.dot_dimension_numbers<[1], [0], [0], [1], [0, 0, 1, 1], [], []>} : vector<2x64xf32>, vector<64x256xf32>, vector<2x256xf32> -> vector<2x256xf32>
    %198 = arith.addf %196, %197 : vector<2x256xf32>
    %199 = arith.negf %198 : vector<2x256xf32>
    %200 = math.exp %199 : vector<2x256xf32>
    %cst_71 = arith.constant 1.000000e+00 : f32
    %201 = vector.broadcast %cst_71 : f32 to vector<2x256xf32>
    %202 = arith.addf %201, %200 : vector<2x256xf32>
    %203 = arith.divf %201, %202 : vector<2x256xf32>
    %204 = vector.extract_strided_slice %198 {offsets = [0, 128], sizes = [2, 64], strides = [1, 1]} : vector<2x256xf32> to vector<2x64xf32>
    %205 = math.tanh %204 : vector<2x64xf32>
    %206 = vector.extract_strided_slice %203 {offsets = [0, 64], sizes = [2, 64], strides = [1, 1]} : vector<2x256xf32> to vector<2x64xf32>
    %207 = arith.mulf %206, %188 : vector<2x64xf32>
    %208 = vector.extract_strided_slice %203 {offsets = [0, 0], sizes = [2, 64], strides = [1, 1]} : vector<2x256xf32> to vector<2x64xf32>
    %209 = arith.mulf %208, %205 : vector<2x64xf32>
    %210 = arith.addf %207, %209 : vector<2x64xf32>
    %211 = vector.extract_strided_slice %203 {offsets = [0, 192], sizes = [2, 64], strides = [1, 1]} : vector<2x256xf32> to vector<2x64xf32>
    %212 = math.tanh %210 : vector<2x64xf32>
    %213 = arith.mulf %211, %212 : vector<2x64xf32>
    %214 = vector.extract_strided_slice %213 {offsets = [0, 0], sizes = [2, 32], strides = [1, 1]} : vector<2x64xf32> to vector<2x32xf32>
    %c8_72 = arith.constant 8 : index
    %c0_73 = arith.constant 0 : index
    %215 = vector.load %arg26[%c8_72, %c0_73] : memref<16x64xf32, #tpu.memory_space<vmem>>, vector<2x32xf32>
    tpu.vector_store %arg26[%c8_72, %c0_73], %214 {strides = array<i32>} : memref<16x64xf32, #tpu.memory_space<vmem>>, vector<2x32xf32>,
    %216 = vector.extract_strided_slice %213 {offsets = [0, 32], sizes = [2, 32], strides = [1, 1]} : vector<2x64xf32> to vector<2x32xf32>
    %c6_74 = arith.constant 6 : index
    %c32_75 = arith.constant 32 : index
    %217 = vector.load %arg26[%c6_74, %c32_75] : memref<16x64xf32, #tpu.memory_space<vmem>>, vector<2x32xf32>
    tpu.vector_store %arg26[%c6_74, %c32_75], %216 {strides = array<i32>} : memref<16x64xf32, #tpu.memory_space<vmem>>, vector<2x32xf32>,
    %218 = vector.extract_strided_slice %104 {offsets = [10, 0], sizes = [2, 256], strides = [1, 1]} : vector<16x256xf32> to vector<2x256xf32>
    %cst_76 = arith.constant dense<0.000000e+00> : vector<2x256xf32>
    %219 = tpu.matmul %213, %105, %cst_76 {dimension_numbers = #tpu.dot_dimension_numbers<[1], [0], [0], [1], [0, 0, 1, 1], [], []>} : vector<2x64xf32>, vector<64x256xf32>, vector<2x256xf32> -> vector<2x256xf32>
    %220 = arith.addf %218, %219 : vector<2x256xf32>
    %221 = arith.negf %220 : vector<2x256xf32>
    %222 = math.exp %221 : vector<2x256xf32>
    %cst_77 = arith.constant 1.000000e+00 : f32
    %223 = vector.broadcast %cst_77 : f32 to vector<2x256xf32>
    %224 = arith.addf %223, %222 : vector<2x256xf32>
    %225 = arith.divf %223, %224 : vector<2x256xf32>
    %226 = vector.extract_strided_slice %220 {offsets = [0, 128], sizes = [2, 64], strides = [1, 1]} : vector<2x256xf32> to vector<2x64xf32>
    %227 = math.tanh %226 : vector<2x64xf32>
    %228 = vector.extract_strided_slice %225 {offsets = [0, 64], sizes = [2, 64], strides = [1, 1]} : vector<2x256xf32> to vector<2x64xf32>
    %229 = arith.mulf %228, %210 : vector<2x64xf32>
    %230 = vector.extract_strided_slice %225 {offsets = [0, 0], sizes = [2, 64], strides = [1, 1]} : vector<2x256xf32> to vector<2x64xf32>
    %231 = arith.mulf %230, %227 : vector<2x64xf32>
    %232 = arith.addf %229, %231 : vector<2x64xf32>
    %233 = vector.extract_strided_slice %225 {offsets = [0, 192], sizes = [2, 64], strides = [1, 1]} : vector<2x256xf32> to vector<2x64xf32>
    %234 = math.tanh %232 : vector<2x64xf32>
    %235 = arith.mulf %233, %234 : vector<2x64xf32>
    %236 = vector.extract_strided_slice %235 {offsets = [0, 0], sizes = [2, 32], strides = [1, 1]} : vector<2x64xf32> to vector<2x32xf32>
    %c10_78 = arith.constant 10 : index
    %c0_79 = arith.constant 0 : index
    %237 = vector.load %arg26[%c10_78, %c0_79] : memref<16x64xf32, #tpu.memory_space<vmem>>, vector<2x32xf32>
    tpu.vector_store %arg26[%c10_78, %c0_79], %236 {strides = array<i32>} : memref<16x64xf32, #tpu.memory_space<vmem>>, vector<2x32xf32>,
    %238 = vector.extract_strided_slice %235 {offsets = [0, 32], sizes = [2, 32], strides = [1, 1]} : vector<2x64xf32> to vector<2x32xf32>
    %c4_80 = arith.constant 4 : index
    %c32_81 = arith.constant 32 : index
    %239 = vector.load %arg26[%c4_80, %c32_81] : memref<16x64xf32, #tpu.memory_space<vmem>>, vector<2x32xf32>
    tpu.vector_store %arg26[%c4_80, %c32_81], %238 {strides = array<i32>} : memref<16x64xf32, #tpu.memory_space<vmem>>, vector<2x32xf32>,
    %240 = vector.extract_strided_slice %104 {offsets = [12, 0], sizes = [2, 256], strides = [1, 1]} : vector<16x256xf32> to vector<2x256xf32>
    %cst_82 = arith.constant dense<0.000000e+00> : vector<2x256xf32>
    %241 = tpu.matmul %235, %105, %cst_82 {dimension_numbers = #tpu.dot_dimension_numbers<[1], [0], [0], [1], [0, 0, 1, 1], [], []>} : vector<2x64xf32>, vector<64x256xf32>, vector<2x256xf32> -> vector<2x256xf32>
    %242 = arith.addf %240, %241 : vector<2x256xf32>
    %243 = arith.negf %242 : vector<2x256xf32>
    %244 = math.exp %243 : vector<2x256xf32>
    %cst_83 = arith.constant 1.000000e+00 : f32
    %245 = vector.broadcast %cst_83 : f32 to vector<2x256xf32>
    %246 = arith.addf %245, %244 : vector<2x256xf32>
    %247 = arith.divf %245, %246 : vector<2x256xf32>
    %248 = vector.extract_strided_slice %242 {offsets = [0, 128], sizes = [2, 64], strides = [1, 1]} : vector<2x256xf32> to vector<2x64xf32>
    %249 = math.tanh %248 : vector<2x64xf32>
    %250 = vector.extract_strided_slice %247 {offsets = [0, 64], sizes = [2, 64], strides = [1, 1]} : vector<2x256xf32> to vector<2x64xf32>
    %251 = arith.mulf %250, %232 : vector<2x64xf32>
    %252 = vector.extract_strided_slice %247 {offsets = [0, 0], sizes = [2, 64], strides = [1, 1]} : vector<2x256xf32> to vector<2x64xf32>
    %253 = arith.mulf %252, %249 : vector<2x64xf32>
    %254 = arith.addf %251, %253 : vector<2x64xf32>
    %255 = vector.extract_strided_slice %247 {offsets = [0, 192], sizes = [2, 64], strides = [1, 1]} : vector<2x256xf32> to vector<2x64xf32>
    %256 = math.tanh %254 : vector<2x64xf32>
    %257 = arith.mulf %255, %256 : vector<2x64xf32>
    %258 = vector.extract_strided_slice %257 {offsets = [0, 0], sizes = [2, 32], strides = [1, 1]} : vector<2x64xf32> to vector<2x32xf32>
    %c12_84 = arith.constant 12 : index
    %c0_85 = arith.constant 0 : index
    %259 = vector.load %arg26[%c12_84, %c0_85] : memref<16x64xf32, #tpu.memory_space<vmem>>, vector<2x32xf32>
    tpu.vector_store %arg26[%c12_84, %c0_85], %258 {strides = array<i32>} : memref<16x64xf32, #tpu.memory_space<vmem>>, vector<2x32xf32>,
    %260 = vector.extract_strided_slice %257 {offsets = [0, 32], sizes = [2, 32], strides = [1, 1]} : vector<2x64xf32> to vector<2x32xf32>
    %c2_86 = arith.constant 2 : index
    %c32_87 = arith.constant 32 : index
    %261 = vector.load %arg26[%c2_86, %c32_87] : memref<16x64xf32, #tpu.memory_space<vmem>>, vector<2x32xf32>
    tpu.vector_store %arg26[%c2_86, %c32_87], %260 {strides = array<i32>} : memref<16x64xf32, #tpu.memory_space<vmem>>, vector<2x32xf32>,
    %262 = vector.extract_strided_slice %104 {offsets = [14, 0], sizes = [2, 256], strides = [1, 1]} : vector<16x256xf32> to vector<2x256xf32>
    %cst_88 = arith.constant dense<0.000000e+00> : vector<2x256xf32>
    %263 = tpu.matmul %257, %105, %cst_88 {dimension_numbers = #tpu.dot_dimension_numbers<[1], [0], [0], [1], [0, 0, 1, 1], [], []>} : vector<2x64xf32>, vector<64x256xf32>, vector<2x256xf32> -> vector<2x256xf32>
    %264 = arith.addf %262, %263 : vector<2x256xf32>
    %265 = arith.negf %264 : vector<2x256xf32>
    %266 = math.exp %265 : vector<2x256xf32>
    %cst_89 = arith.constant 1.000000e+00 : f32
    %267 = vector.broadcast %cst_89 : f32 to vector<2x256xf32>
    %268 = arith.addf %267, %266 : vector<2x256xf32>
    %269 = arith.divf %267, %268 : vector<2x256xf32>
    %270 = vector.extract_strided_slice %264 {offsets = [0, 128], sizes = [2, 64], strides = [1, 1]} : vector<2x256xf32> to vector<2x64xf32>
    %271 = math.tanh %270 : vector<2x64xf32>
    %272 = vector.extract_strided_slice %269 {offsets = [0, 64], sizes = [2, 64], strides = [1, 1]} : vector<2x256xf32> to vector<2x64xf32>
    %273 = arith.mulf %272, %254 : vector<2x64xf32>
    %274 = vector.extract_strided_slice %269 {offsets = [0, 0], sizes = [2, 64], strides = [1, 1]} : vector<2x256xf32> to vector<2x64xf32>
    %275 = arith.mulf %274, %271 : vector<2x64xf32>
    %276 = arith.addf %273, %275 : vector<2x64xf32>
    %277 = vector.extract_strided_slice %269 {offsets = [0, 192], sizes = [2, 64], strides = [1, 1]} : vector<2x256xf32> to vector<2x64xf32>
    %278 = math.tanh %276 : vector<2x64xf32>
    %279 = arith.mulf %277, %278 : vector<2x64xf32>
    %280 = vector.extract_strided_slice %279 {offsets = [0, 0], sizes = [2, 32], strides = [1, 1]} : vector<2x64xf32> to vector<2x32xf32>
    %c14_90 = arith.constant 14 : index
    %c0_91 = arith.constant 0 : index
    %281 = vector.load %arg26[%c14_90, %c0_91] : memref<16x64xf32, #tpu.memory_space<vmem>>, vector<2x32xf32>
    tpu.vector_store %arg26[%c14_90, %c0_91], %280 {strides = array<i32>} : memref<16x64xf32, #tpu.memory_space<vmem>>, vector<2x32xf32>,
    %282 = vector.extract_strided_slice %279 {offsets = [0, 32], sizes = [2, 32], strides = [1, 1]} : vector<2x64xf32> to vector<2x32xf32>
    %c0_92 = arith.constant 0 : index
    %c32_93 = arith.constant 32 : index
    %283 = vector.load %arg26[%c0_92, %c32_93] : memref<16x64xf32, #tpu.memory_space<vmem>>, vector<2x32xf32>
    tpu.vector_store %arg26[%c0_92, %c32_93], %282 {strides = array<i32>} : memref<16x64xf32, #tpu.memory_space<vmem>>, vector<2x32xf32>,
    %c0_94 = arith.constant 0 : index
    %c0_95 = arith.constant 0 : index
    %284 = vector.load %arg26[%c0_94, %c0_95] : memref<16x64xf32, #tpu.memory_space<vmem>>, vector<16x64xf32>
    %cst_96 = arith.constant dense<0.000000e+00> : vector<16x64xf32>
    %285 = tpu.matmul %95, %284, %cst_96 {dimension_numbers = #tpu.dot_dimension_numbers<[1], [0], [0], [1], [0, 0, 1, 1], [], []>} : vector<16x16xf32>, vector<16x64xf32>, vector<16x64xf32> -> vector<16x64xf32>
    %c0_97 = arith.constant 0 : index
    %c0_98 = arith.constant 0 : index
    %286 = vector.load %arg21[%c0_97, %c0_98] : memref<64x256xf32, #tpu.memory_space<vmem>>, vector<64x256xf32>
    %cst_99 = arith.constant dense<0.000000e+00> : vector<16x256xf32>
    %287 = tpu.matmul %284, %286, %cst_99 {dimension_numbers = #tpu.dot_dimension_numbers<[1], [0], [0], [1], [0, 0, 1, 1], [], []>} : vector<16x64xf32>, vector<64x256xf32>, vector<16x256xf32> -> vector<16x256xf32>
    %c0_100 = arith.constant 0 : index
    %c0_101 = arith.constant 0 : index
    %288 = vector.load %arg22[%c0_100, %c0_101] : memref<64x256xf32, #tpu.memory_space<vmem>>, vector<64x256xf32>
    %cst_102 = arith.constant dense<0.000000e+00> : vector<16x256xf32>
    %289 = tpu.matmul %285, %288, %cst_102 {dimension_numbers = #tpu.dot_dimension_numbers<[1], [0], [0], [1], [0, 0, 1, 1], [], []>} : vector<16x64xf32>, vector<64x256xf32>, vector<16x256xf32> -> vector<16x256xf32>
    %290 = arith.addf %287, %289 : vector<16x256xf32>
    %c0_103 = arith.constant 0 : index
    %c0_104 = arith.constant 0 : index
    %291 = vector.load %arg23[%c0_103, %c0_104] : memref<1x256xf32, #tpu.memory_space<vmem>>, vector<1x256xf32>
    %292 = vector.broadcast %291 : vector<1x256xf32> to vector<16x256xf32>
    %293 = arith.addf %290, %292 : vector<16x256xf32>
    %c0_105 = arith.constant 0 : index
    %c0_106 = arith.constant 0 : index
    %294 = vector.load %arg24[%c0_105, %c0_106] : memref<64x256xf32, #tpu.memory_space<vmem>>, vector<64x256xf32>
    %cst_107 = arith.constant 0.000000e+00 : f32
    %295 = vector.broadcast %cst_107 : f32 to vector<2x64xf32>
    %cst_108 = arith.constant 0.000000e+00 : f32
    %296 = vector.broadcast %cst_108 : f32 to vector<2x64xf32>
    %297 = vector.extract_strided_slice %293 {offsets = [0, 0], sizes = [2, 256], strides = [1, 1]} : vector<16x256xf32> to vector<2x256xf32>
    %cst_109 = arith.constant dense<0.000000e+00> : vector<2x256xf32>
    %298 = tpu.matmul %295, %294, %cst_109 {dimension_numbers = #tpu.dot_dimension_numbers<[1], [0], [0], [1], [0, 0, 1, 1], [], []>} : vector<2x64xf32>, vector<64x256xf32>, vector<2x256xf32> -> vector<2x256xf32>
    %299 = arith.addf %297, %298 : vector<2x256xf32>
    %300 = arith.negf %299 : vector<2x256xf32>
    %301 = math.exp %300 : vector<2x256xf32>
    %cst_110 = arith.constant 1.000000e+00 : f32
    %302 = vector.broadcast %cst_110 : f32 to vector<2x256xf32>
    %303 = arith.addf %302, %301 : vector<2x256xf32>
    %304 = arith.divf %302, %303 : vector<2x256xf32>
    %305 = vector.extract_strided_slice %299 {offsets = [0, 128], sizes = [2, 64], strides = [1, 1]} : vector<2x256xf32> to vector<2x64xf32>
    %306 = math.tanh %305 : vector<2x64xf32>
    %307 = vector.extract_strided_slice %304 {offsets = [0, 64], sizes = [2, 64], strides = [1, 1]} : vector<2x256xf32> to vector<2x64xf32>
    %308 = arith.mulf %307, %296 : vector<2x64xf32>
    %309 = vector.extract_strided_slice %304 {offsets = [0, 0], sizes = [2, 64], strides = [1, 1]} : vector<2x256xf32> to vector<2x64xf32>
    %310 = arith.mulf %309, %306 : vector<2x64xf32>
    %311 = arith.addf %308, %310 : vector<2x64xf32>
    %312 = vector.extract_strided_slice %304 {offsets = [0, 192], sizes = [2, 64], strides = [1, 1]} : vector<2x256xf32> to vector<2x64xf32>
    %313 = math.tanh %311 : vector<2x64xf32>
    %314 = arith.mulf %312, %313 : vector<2x64xf32>
    %315 = vector.extract_strided_slice %314 {offsets = [0, 0], sizes = [2, 32], strides = [1, 1]} : vector<2x64xf32> to vector<2x32xf32>
    %c0_111 = arith.constant 0 : index
    %c0_112 = arith.constant 0 : index
    %316 = vector.load %arg27[%c0_111, %c0_112] : memref<16x64xf32, #tpu.memory_space<vmem>>, vector<2x32xf32>
    tpu.vector_store %arg27[%c0_111, %c0_112], %315 {strides = array<i32>} : memref<16x64xf32, #tpu.memory_space<vmem>>, vector<2x32xf32>,
    %317 = vector.extract_strided_slice %314 {offsets = [0, 32], sizes = [2, 32], strides = [1, 1]} : vector<2x64xf32> to vector<2x32xf32>
    %c14_113 = arith.constant 14 : index
    %c32_114 = arith.constant 32 : index
    %318 = vector.load %arg27[%c14_113, %c32_114] : memref<16x64xf32, #tpu.memory_space<vmem>>, vector<2x32xf32>
    tpu.vector_store %arg27[%c14_113, %c32_114], %317 {strides = array<i32>} : memref<16x64xf32, #tpu.memory_space<vmem>>, vector<2x32xf32>,
    %319 = vector.extract_strided_slice %293 {offsets = [2, 0], sizes = [2, 256], strides = [1, 1]} : vector<16x256xf32> to vector<2x256xf32>
    %cst_115 = arith.constant dense<0.000000e+00> : vector<2x256xf32>
    %320 = tpu.matmul %314, %294, %cst_115 {dimension_numbers = #tpu.dot_dimension_numbers<[1], [0], [0], [1], [0, 0, 1, 1], [], []>} : vector<2x64xf32>, vector<64x256xf32>, vector<2x256xf32> -> vector<2x256xf32>
    %321 = arith.addf %319, %320 : vector<2x256xf32>
    %322 = arith.negf %321 : vector<2x256xf32>
    %323 = math.exp %322 : vector<2x256xf32>
    %cst_116 = arith.constant 1.000000e+00 : f32
    %324 = vector.broadcast %cst_116 : f32 to vector<2x256xf32>
    %325 = arith.addf %324, %323 : vector<2x256xf32>
    %326 = arith.divf %324, %325 : vector<2x256xf32>
    %327 = vector.extract_strided_slice %321 {offsets = [0, 128], sizes = [2, 64], strides = [1, 1]} : vector<2x256xf32> to vector<2x64xf32>
    %328 = math.tanh %327 : vector<2x64xf32>
    %329 = vector.extract_strided_slice %326 {offsets = [0, 64], sizes = [2, 64], strides = [1, 1]} : vector<2x256xf32> to vector<2x64xf32>
    %330 = arith.mulf %329, %311 : vector<2x64xf32>
    %331 = vector.extract_strided_slice %326 {offsets = [0, 0], sizes = [2, 64], strides = [1, 1]} : vector<2x256xf32> to vector<2x64xf32>
    %332 = arith.mulf %331, %328 : vector<2x64xf32>
    %333 = arith.addf %330, %332 : vector<2x64xf32>
    %334 = vector.extract_strided_slice %326 {offsets = [0, 192], sizes = [2, 64], strides = [1, 1]} : vector<2x256xf32> to vector<2x64xf32>
    %335 = math.tanh %333 : vector<2x64xf32>
    %336 = arith.mulf %334, %335 : vector<2x64xf32>
    %337 = vector.extract_strided_slice %336 {offsets = [0, 0], sizes = [2, 32], strides = [1, 1]} : vector<2x64xf32> to vector<2x32xf32>
    %c2_117 = arith.constant 2 : index
    %c0_118 = arith.constant 0 : index
    %338 = vector.load %arg27[%c2_117, %c0_118] : memref<16x64xf32, #tpu.memory_space<vmem>>, vector<2x32xf32>
    tpu.vector_store %arg27[%c2_117, %c0_118], %337 {strides = array<i32>} : memref<16x64xf32, #tpu.memory_space<vmem>>, vector<2x32xf32>,
    %339 = vector.extract_strided_slice %336 {offsets = [0, 32], sizes = [2, 32], strides = [1, 1]} : vector<2x64xf32> to vector<2x32xf32>
    %c12_119 = arith.constant 12 : index
    %c32_120 = arith.constant 32 : index
    %340 = vector.load %arg27[%c12_119, %c32_120] : memref<16x64xf32, #tpu.memory_space<vmem>>, vector<2x32xf32>
    tpu.vector_store %arg27[%c12_119, %c32_120], %339 {strides = array<i32>} : memref<16x64xf32, #tpu.memory_space<vmem>>, vector<2x32xf32>,
    %341 = vector.extract_strided_slice %293 {offsets = [4, 0], sizes = [2, 256], strides = [1, 1]} : vector<16x256xf32> to vector<2x256xf32>
    %cst_121 = arith.constant dense<0.000000e+00> : vector<2x256xf32>
    %342 = tpu.matmul %336, %294, %cst_121 {dimension_numbers = #tpu.dot_dimension_numbers<[1], [0], [0], [1], [0, 0, 1, 1], [], []>} : vector<2x64xf32>, vector<64x256xf32>, vector<2x256xf32> -> vector<2x256xf32>
    %343 = arith.addf %341, %342 : vector<2x256xf32>
    %344 = arith.negf %343 : vector<2x256xf32>
    %345 = math.exp %344 : vector<2x256xf32>
    %cst_122 = arith.constant 1.000000e+00 : f32
    %346 = vector.broadcast %cst_122 : f32 to vector<2x256xf32>
    %347 = arith.addf %346, %345 : vector<2x256xf32>
    %348 = arith.divf %346, %347 : vector<2x256xf32>
    %349 = vector.extract_strided_slice %343 {offsets = [0, 128], sizes = [2, 64], strides = [1, 1]} : vector<2x256xf32> to vector<2x64xf32>
    %350 = math.tanh %349 : vector<2x64xf32>
    %351 = vector.extract_strided_slice %348 {offsets = [0, 64], sizes = [2, 64], strides = [1, 1]} : vector<2x256xf32> to vector<2x64xf32>
    %352 = arith.mulf %351, %333 : vector<2x64xf32>
    %353 = vector.extract_strided_slice %348 {offsets = [0, 0], sizes = [2, 64], strides = [1, 1]} : vector<2x256xf32> to vector<2x64xf32>
    %354 = arith.mulf %353, %350 : vector<2x64xf32>
    %355 = arith.addf %352, %354 : vector<2x64xf32>
    %356 = vector.extract_strided_slice %348 {offsets = [0, 192], sizes = [2, 64], strides = [1, 1]} : vector<2x256xf32> to vector<2x64xf32>
    %357 = math.tanh %355 : vector<2x64xf32>
    %358 = arith.mulf %356, %357 : vector<2x64xf32>
    %359 = vector.extract_strided_slice %358 {offsets = [0, 0], sizes = [2, 32], strides = [1, 1]} : vector<2x64xf32> to vector<2x32xf32>
    %c4_123 = arith.constant 4 : index
    %c0_124 = arith.constant 0 : index
    %360 = vector.load %arg27[%c4_123, %c0_124] : memref<16x64xf32, #tpu.memory_space<vmem>>, vector<2x32xf32>
    tpu.vector_store %arg27[%c4_123, %c0_124], %359 {strides = array<i32>} : memref<16x64xf32, #tpu.memory_space<vmem>>, vector<2x32xf32>,
    %361 = vector.extract_strided_slice %358 {offsets = [0, 32], sizes = [2, 32], strides = [1, 1]} : vector<2x64xf32> to vector<2x32xf32>
    %c10_125 = arith.constant 10 : index
    %c32_126 = arith.constant 32 : index
    %362 = vector.load %arg27[%c10_125, %c32_126] : memref<16x64xf32, #tpu.memory_space<vmem>>, vector<2x32xf32>
    tpu.vector_store %arg27[%c10_125, %c32_126], %361 {strides = array<i32>} : memref<16x64xf32, #tpu.memory_space<vmem>>, vector<2x32xf32>,
    %363 = vector.extract_strided_slice %293 {offsets = [6, 0], sizes = [2, 256], strides = [1, 1]} : vector<16x256xf32> to vector<2x256xf32>
    %cst_127 = arith.constant dense<0.000000e+00> : vector<2x256xf32>
    %364 = tpu.matmul %358, %294, %cst_127 {dimension_numbers = #tpu.dot_dimension_numbers<[1], [0], [0], [1], [0, 0, 1, 1], [], []>} : vector<2x64xf32>, vector<64x256xf32>, vector<2x256xf32> -> vector<2x256xf32>
    %365 = arith.addf %363, %364 : vector<2x256xf32>
    %366 = arith.negf %365 : vector<2x256xf32>
    %367 = math.exp %366 : vector<2x256xf32>
    %cst_128 = arith.constant 1.000000e+00 : f32
    %368 = vector.broadcast %cst_128 : f32 to vector<2x256xf32>
    %369 = arith.addf %368, %367 : vector<2x256xf32>
    %370 = arith.divf %368, %369 : vector<2x256xf32>
    %371 = vector.extract_strided_slice %365 {offsets = [0, 128], sizes = [2, 64], strides = [1, 1]} : vector<2x256xf32> to vector<2x64xf32>
    %372 = math.tanh %371 : vector<2x64xf32>
    %373 = vector.extract_strided_slice %370 {offsets = [0, 64], sizes = [2, 64], strides = [1, 1]} : vector<2x256xf32> to vector<2x64xf32>
    %374 = arith.mulf %373, %355 : vector<2x64xf32>
    %375 = vector.extract_strided_slice %370 {offsets = [0, 0], sizes = [2, 64], strides = [1, 1]} : vector<2x256xf32> to vector<2x64xf32>
    %376 = arith.mulf %375, %372 : vector<2x64xf32>
    %377 = arith.addf %374, %376 : vector<2x64xf32>
    %378 = vector.extract_strided_slice %370 {offsets = [0, 192], sizes = [2, 64], strides = [1, 1]} : vector<2x256xf32> to vector<2x64xf32>
    %379 = math.tanh %377 : vector<2x64xf32>
    %380 = arith.mulf %378, %379 : vector<2x64xf32>
    %381 = vector.extract_strided_slice %380 {offsets = [0, 0], sizes = [2, 32], strides = [1, 1]} : vector<2x64xf32> to vector<2x32xf32>
    %c6_129 = arith.constant 6 : index
    %c0_130 = arith.constant 0 : index
    %382 = vector.load %arg27[%c6_129, %c0_130] : memref<16x64xf32, #tpu.memory_space<vmem>>, vector<2x32xf32>
    tpu.vector_store %arg27[%c6_129, %c0_130], %381 {strides = array<i32>} : memref<16x64xf32, #tpu.memory_space<vmem>>, vector<2x32xf32>,
    %383 = vector.extract_strided_slice %380 {offsets = [0, 32], sizes = [2, 32], strides = [1, 1]} : vector<2x64xf32> to vector<2x32xf32>
    %c8_131 = arith.constant 8 : index
    %c32_132 = arith.constant 32 : index
    %384 = vector.load %arg27[%c8_131, %c32_132] : memref<16x64xf32, #tpu.memory_space<vmem>>, vector<2x32xf32>
    tpu.vector_store %arg27[%c8_131, %c32_132], %383 {strides = array<i32>} : memref<16x64xf32, #tpu.memory_space<vmem>>, vector<2x32xf32>,
    %385 = vector.extract_strided_slice %293 {offsets = [8, 0], sizes = [2, 256], strides = [1, 1]} : vector<16x256xf32> to vector<2x256xf32>
    %cst_133 = arith.constant dense<0.000000e+00> : vector<2x256xf32>
    %386 = tpu.matmul %380, %294, %cst_133 {dimension_numbers = #tpu.dot_dimension_numbers<[1], [0], [0], [1], [0, 0, 1, 1], [], []>} : vector<2x64xf32>, vector<64x256xf32>, vector<2x256xf32> -> vector<2x256xf32>
    %387 = arith.addf %385, %386 : vector<2x256xf32>
    %388 = arith.negf %387 : vector<2x256xf32>
    %389 = math.exp %388 : vector<2x256xf32>
    %cst_134 = arith.constant 1.000000e+00 : f32
    %390 = vector.broadcast %cst_134 : f32 to vector<2x256xf32>
    %391 = arith.addf %390, %389 : vector<2x256xf32>
    %392 = arith.divf %390, %391 : vector<2x256xf32>
    %393 = vector.extract_strided_slice %387 {offsets = [0, 128], sizes = [2, 64], strides = [1, 1]} : vector<2x256xf32> to vector<2x64xf32>
    %394 = math.tanh %393 : vector<2x64xf32>
    %395 = vector.extract_strided_slice %392 {offsets = [0, 64], sizes = [2, 64], strides = [1, 1]} : vector<2x256xf32> to vector<2x64xf32>
    %396 = arith.mulf %395, %377 : vector<2x64xf32>
    %397 = vector.extract_strided_slice %392 {offsets = [0, 0], sizes = [2, 64], strides = [1, 1]} : vector<2x256xf32> to vector<2x64xf32>
    %398 = arith.mulf %397, %394 : vector<2x64xf32>
    %399 = arith.addf %396, %398 : vector<2x64xf32>
    %400 = vector.extract_strided_slice %392 {offsets = [0, 192], sizes = [2, 64], strides = [1, 1]} : vector<2x256xf32> to vector<2x64xf32>
    %401 = math.tanh %399 : vector<2x64xf32>
    %402 = arith.mulf %400, %401 : vector<2x64xf32>
    %403 = vector.extract_strided_slice %402 {offsets = [0, 0], sizes = [2, 32], strides = [1, 1]} : vector<2x64xf32> to vector<2x32xf32>
    %c8_135 = arith.constant 8 : index
    %c0_136 = arith.constant 0 : index
    %404 = vector.load %arg27[%c8_135, %c0_136] : memref<16x64xf32, #tpu.memory_space<vmem>>, vector<2x32xf32>
    tpu.vector_store %arg27[%c8_135, %c0_136], %403 {strides = array<i32>} : memref<16x64xf32, #tpu.memory_space<vmem>>, vector<2x32xf32>,
    %405 = vector.extract_strided_slice %402 {offsets = [0, 32], sizes = [2, 32], strides = [1, 1]} : vector<2x64xf32> to vector<2x32xf32>
    %c6_137 = arith.constant 6 : index
    %c32_138 = arith.constant 32 : index
    %406 = vector.load %arg27[%c6_137, %c32_138] : memref<16x64xf32, #tpu.memory_space<vmem>>, vector<2x32xf32>
    tpu.vector_store %arg27[%c6_137, %c32_138], %405 {strides = array<i32>} : memref<16x64xf32, #tpu.memory_space<vmem>>, vector<2x32xf32>,
    %407 = vector.extract_strided_slice %293 {offsets = [10, 0], sizes = [2, 256], strides = [1, 1]} : vector<16x256xf32> to vector<2x256xf32>
    %cst_139 = arith.constant dense<0.000000e+00> : vector<2x256xf32>
    %408 = tpu.matmul %402, %294, %cst_139 {dimension_numbers = #tpu.dot_dimension_numbers<[1], [0], [0], [1], [0, 0, 1, 1], [], []>} : vector<2x64xf32>, vector<64x256xf32>, vector<2x256xf32> -> vector<2x256xf32>
    %409 = arith.addf %407, %408 : vector<2x256xf32>
    %410 = arith.negf %409 : vector<2x256xf32>
    %411 = math.exp %410 : vector<2x256xf32>
    %cst_140 = arith.constant 1.000000e+00 : f32
    %412 = vector.broadcast %cst_140 : f32 to vector<2x256xf32>
    %413 = arith.addf %412, %411 : vector<2x256xf32>
    %414 = arith.divf %412, %413 : vector<2x256xf32>
    %415 = vector.extract_strided_slice %409 {offsets = [0, 128], sizes = [2, 64], strides = [1, 1]} : vector<2x256xf32> to vector<2x64xf32>
    %416 = math.tanh %415 : vector<2x64xf32>
    %417 = vector.extract_strided_slice %414 {offsets = [0, 64], sizes = [2, 64], strides = [1, 1]} : vector<2x256xf32> to vector<2x64xf32>
    %418 = arith.mulf %417, %399 : vector<2x64xf32>
    %419 = vector.extract_strided_slice %414 {offsets = [0, 0], sizes = [2, 64], strides = [1, 1]} : vector<2x256xf32> to vector<2x64xf32>
    %420 = arith.mulf %419, %416 : vector<2x64xf32>
    %421 = arith.addf %418, %420 : vector<2x64xf32>
    %422 = vector.extract_strided_slice %414 {offsets = [0, 192], sizes = [2, 64], strides = [1, 1]} : vector<2x256xf32> to vector<2x64xf32>
    %423 = math.tanh %421 : vector<2x64xf32>
    %424 = arith.mulf %422, %423 : vector<2x64xf32>
    %425 = vector.extract_strided_slice %424 {offsets = [0, 0], sizes = [2, 32], strides = [1, 1]} : vector<2x64xf32> to vector<2x32xf32>
    %c10_141 = arith.constant 10 : index
    %c0_142 = arith.constant 0 : index
    %426 = vector.load %arg27[%c10_141, %c0_142] : memref<16x64xf32, #tpu.memory_space<vmem>>, vector<2x32xf32>
    tpu.vector_store %arg27[%c10_141, %c0_142], %425 {strides = array<i32>} : memref<16x64xf32, #tpu.memory_space<vmem>>, vector<2x32xf32>,
    %427 = vector.extract_strided_slice %424 {offsets = [0, 32], sizes = [2, 32], strides = [1, 1]} : vector<2x64xf32> to vector<2x32xf32>
    %c4_143 = arith.constant 4 : index
    %c32_144 = arith.constant 32 : index
    %428 = vector.load %arg27[%c4_143, %c32_144] : memref<16x64xf32, #tpu.memory_space<vmem>>, vector<2x32xf32>
    tpu.vector_store %arg27[%c4_143, %c32_144], %427 {strides = array<i32>} : memref<16x64xf32, #tpu.memory_space<vmem>>, vector<2x32xf32>,
    %429 = vector.extract_strided_slice %293 {offsets = [12, 0], sizes = [2, 256], strides = [1, 1]} : vector<16x256xf32> to vector<2x256xf32>
    %cst_145 = arith.constant dense<0.000000e+00> : vector<2x256xf32>
    %430 = tpu.matmul %424, %294, %cst_145 {dimension_numbers = #tpu.dot_dimension_numbers<[1], [0], [0], [1], [0, 0, 1, 1], [], []>} : vector<2x64xf32>, vector<64x256xf32>, vector<2x256xf32> -> vector<2x256xf32>
    %431 = arith.addf %429, %430 : vector<2x256xf32>
    %432 = arith.negf %431 : vector<2x256xf32>
    %433 = math.exp %432 : vector<2x256xf32>
    %cst_146 = arith.constant 1.000000e+00 : f32
    %434 = vector.broadcast %cst_146 : f32 to vector<2x256xf32>
    %435 = arith.addf %434, %433 : vector<2x256xf32>
    %436 = arith.divf %434, %435 : vector<2x256xf32>
    %437 = vector.extract_strided_slice %431 {offsets = [0, 128], sizes = [2, 64], strides = [1, 1]} : vector<2x256xf32> to vector<2x64xf32>
    %438 = math.tanh %437 : vector<2x64xf32>
    %439 = vector.extract_strided_slice %436 {offsets = [0, 64], sizes = [2, 64], strides = [1, 1]} : vector<2x256xf32> to vector<2x64xf32>
    %440 = arith.mulf %439, %421 : vector<2x64xf32>
    %441 = vector.extract_strided_slice %436 {offsets = [0, 0], sizes = [2, 64], strides = [1, 1]} : vector<2x256xf32> to vector<2x64xf32>
    %442 = arith.mulf %441, %438 : vector<2x64xf32>
    %443 = arith.addf %440, %442 : vector<2x64xf32>
    %444 = vector.extract_strided_slice %436 {offsets = [0, 192], sizes = [2, 64], strides = [1, 1]} : vector<2x256xf32> to vector<2x64xf32>
    %445 = math.tanh %443 : vector<2x64xf32>
    %446 = arith.mulf %444, %445 : vector<2x64xf32>
    %447 = vector.extract_strided_slice %446 {offsets = [0, 0], sizes = [2, 32], strides = [1, 1]} : vector<2x64xf32> to vector<2x32xf32>
    %c12_147 = arith.constant 12 : index
    %c0_148 = arith.constant 0 : index
    %448 = vector.load %arg27[%c12_147, %c0_148] : memref<16x64xf32, #tpu.memory_space<vmem>>, vector<2x32xf32>
    tpu.vector_store %arg27[%c12_147, %c0_148], %447 {strides = array<i32>} : memref<16x64xf32, #tpu.memory_space<vmem>>, vector<2x32xf32>,
    %449 = vector.extract_strided_slice %446 {offsets = [0, 32], sizes = [2, 32], strides = [1, 1]} : vector<2x64xf32> to vector<2x32xf32>
    %c2_149 = arith.constant 2 : index
    %c32_150 = arith.constant 32 : index
    %450 = vector.load %arg27[%c2_149, %c32_150] : memref<16x64xf32, #tpu.memory_space<vmem>>, vector<2x32xf32>
    tpu.vector_store %arg27[%c2_149, %c32_150], %449 {strides = array<i32>} : memref<16x64xf32, #tpu.memory_space<vmem>>, vector<2x32xf32>,
    %451 = vector.extract_strided_slice %293 {offsets = [14, 0], sizes = [2, 256], strides = [1, 1]} : vector<16x256xf32> to vector<2x256xf32>
    %cst_151 = arith.constant dense<0.000000e+00> : vector<2x256xf32>
    %452 = tpu.matmul %446, %294, %cst_151 {dimension_numbers = #tpu.dot_dimension_numbers<[1], [0], [0], [1], [0, 0, 1, 1], [], []>} : vector<2x64xf32>, vector<64x256xf32>, vector<2x256xf32> -> vector<2x256xf32>
    %453 = arith.addf %451, %452 : vector<2x256xf32>
    %454 = arith.negf %453 : vector<2x256xf32>
    %455 = math.exp %454 : vector<2x256xf32>
    %cst_152 = arith.constant 1.000000e+00 : f32
    %456 = vector.broadcast %cst_152 : f32 to vector<2x256xf32>
    %457 = arith.addf %456, %455 : vector<2x256xf32>
    %458 = arith.divf %456, %457 : vector<2x256xf32>
    %459 = vector.extract_strided_slice %453 {offsets = [0, 128], sizes = [2, 64], strides = [1, 1]} : vector<2x256xf32> to vector<2x64xf32>
    %460 = math.tanh %459 : vector<2x64xf32>
    %461 = vector.extract_strided_slice %458 {offsets = [0, 64], sizes = [2, 64], strides = [1, 1]} : vector<2x256xf32> to vector<2x64xf32>
    %462 = arith.mulf %461, %443 : vector<2x64xf32>
    %463 = vector.extract_strided_slice %458 {offsets = [0, 0], sizes = [2, 64], strides = [1, 1]} : vector<2x256xf32> to vector<2x64xf32>
    %464 = arith.mulf %463, %460 : vector<2x64xf32>
    %465 = arith.addf %462, %464 : vector<2x64xf32>
    %466 = vector.extract_strided_slice %458 {offsets = [0, 192], sizes = [2, 64], strides = [1, 1]} : vector<2x256xf32> to vector<2x64xf32>
    %467 = math.tanh %465 : vector<2x64xf32>
    %468 = arith.mulf %466, %467 : vector<2x64xf32>
    %469 = vector.extract_strided_slice %468 {offsets = [0, 0], sizes = [2, 32], strides = [1, 1]} : vector<2x64xf32> to vector<2x32xf32>
    %c14_153 = arith.constant 14 : index
    %c0_154 = arith.constant 0 : index
    %470 = vector.load %arg27[%c14_153, %c0_154] : memref<16x64xf32, #tpu.memory_space<vmem>>, vector<2x32xf32>
    tpu.vector_store %arg27[%c14_153, %c0_154], %469 {strides = array<i32>} : memref<16x64xf32, #tpu.memory_space<vmem>>, vector<2x32xf32>,
    %471 = vector.extract_strided_slice %468 {offsets = [0, 32], sizes = [2, 32], strides = [1, 1]} : vector<2x64xf32> to vector<2x32xf32>
    %c0_155 = arith.constant 0 : index
    %c32_156 = arith.constant 32 : index
    %472 = vector.load %arg27[%c0_155, %c32_156] : memref<16x64xf32, #tpu.memory_space<vmem>>, vector<2x32xf32>
    tpu.vector_store %arg27[%c0_155, %c32_156], %471 {strides = array<i32>} : memref<16x64xf32, #tpu.memory_space<vmem>>, vector<2x32xf32>,
    %c0_157 = arith.constant 0 : index
    %c0_158 = arith.constant 0 : index
    %473 = vector.load %arg27[%c0_157, %c0_158] : memref<16x64xf32, #tpu.memory_space<vmem>>, vector<16x64xf32>
    %c0_159 = arith.constant 0 : index
    %474 = memref.load %arg0[%c0_159] : memref<3xf32, #tpu.memory_space<smem>>
    %c1 = arith.constant 1 : index
    %475 = memref.load %arg0[%c1] : memref<3xf32, #tpu.memory_space<smem>>
    %c2_160 = arith.constant 2 : index
    %476 = memref.load %arg0[%c2_160] : memref<3xf32, #tpu.memory_space<smem>>
    %477 = vector.broadcast %474 : f32 to vector<16x64xf32>
    %478 = arith.mulf %477, %94 : vector<16x64xf32>
    %479 = vector.broadcast %475 : f32 to vector<16x64xf32>
    %480 = arith.mulf %479, %284 : vector<16x64xf32>
    %481 = arith.addf %478, %480 : vector<16x64xf32>
    %482 = vector.broadcast %476 : f32 to vector<16x64xf32>
    %483 = arith.mulf %482, %473 : vector<16x64xf32>
    %484 = arith.addf %481, %483 : vector<16x64xf32>
    %c0_161 = arith.constant 0 : index
    %c0_162 = arith.constant 0 : index
    %485 = vector.load %arg4[%c0_161, %c0_162] : memref<16x1xf32, #tpu.memory_space<vmem>>, vector<16x1xf32>
    %486 = vector.broadcast %485 : vector<16x1xf32> to vector<16x64xf32>
    %487 = arith.mulf %484, %486 : vector<16x64xf32>
    %c0_163 = arith.constant 0 : index
    %c0_164 = arith.constant 0 : index
    %488 = vector.load %arg25[%c0_163, %c0_164] : memref<16x64xf32, #tpu.memory_space<vmem>>, vector<16x64xf32>
    tpu.vector_store %arg25[%c0_163, %c0_164], %487 {strides = array<i32>} : memref<16x64xf32, #tpu.memory_space<vmem>>, vector<16x64xf32>,
    return
  }
}

</mosaic_0001>

<bundles_post_ra>
// kernel: tpu_custom_call.1
= control target key start
LH: loop header
LB: loop body
LE: loop exit
PB: predicated region body
PF: predicated region fallthrough
CT: control target
= control target key end

     0   :  { %s5246_s0 = inlined_call_operand.vmem [shape: f32[3], index: 0, kind: input, shape index: {}]   ;;  %s5247_s1 = inlined_call_operand.vmem [shape: s32[128,1], index: 1, kind: input, shape index: {}]   ;;  %s5248_s2 = inlined_call_operand.vmem [shape: s32[128,1], index: 2, kind: input, shape index: {}]   ;;  %s5249_s3 = inlined_call_operand.vmem [shape: s32[128,1], index: 3, kind: input, shape index: {}]   ;;  %s5250_s4 = inlined_call_operand.vmem [shape: f32[16,1], index: 4, kind: input, shape index: {}]   ;;  %s5251_s5 = inlined_call_operand.vmem [shape: f32[128,48], index: 5, kind: input, shape index: {}]   ;;  %s5252_s6 = inlined_call_operand.vmem [shape: bf16[64,48], index: 6, kind: input, shape index: {}]   ;;  %s5253_s7 = inlined_call_operand.vmem [shape: bf16[64,48], index: 7, kind: input, shape index: {}]   ;;  %s5254_s8 = inlined_call_operand.vmem [shape: bf16[64,48], index: 8, kind: input, shape index: {}]   ;;  %s5255_s9 = inlined_call_operand.vmem [shape: f32[1,48], index: 9, kind: input, shape index: {}]   ;;  %s5256_s10 = inlined_call_operand.vmem [shape: bf16[48,96], index: 10, kind: input, shape index: {}]   ;;  %s5257_s11 = inlined_call_operand.vmem [shape: f32[1,96], index: 11, kind: input, shape index: {}]   ;;  %s5258_s12 = inlined_call_operand.vmem [shape: bf16[48,96], index: 12, kind: input, shape index: {}]   ;;  %s5259_s13 = inlined_call_operand.vmem [shape: f32[1,96], index: 13, kind: input, shape index: {}]   ;;  %s5260_s14 = inlined_call_operand.vmem [shape: bf16[48,64], index: 14, kind: input, shape index: {}]   ;;  %s5261_s15 = inlined_call_operand.vmem [shape: f32[1,64], index: 15, kind: input, shape index: {}]   ;;  %s5262_s16 = inlined_call_operand.vmem [shape: f32[16,16], index: 16, kind: input, shape index: {}]   ;;  %s5263_s17 = inlined_call_operand.vmem [shape: f32[64,256], index: 17, kind: input, shape index: {}]   ;;  %s5264_s18 = inlined_call_operand.vmem [shape: f32[64,256], index: 18, kind: input, shape index: {}]   ;;  %s5265_s19 = inlined_call_operand.vmem [shape: f32[1,256], index: 19, kind: input, shape index: {}]   ;;  %s5266_s20 = inlined_call_operand.vmem [shape: f32[64,256], index: 20, kind: input, shape index: {}]   ;;  %s5267_s21 = inlined_call_operand.vmem [shape: f32[64,256], index: 21, kind: input, shape index: {}]   ;;  %s5268_s22 = inlined_call_operand.hbm [shape: f32[64,256], index: 22, kind: input, shape index: {}]   ;;  %s5269_s23 = inlined_call_operand.vmem [shape: f32[1,256], index: 23, kind: input, shape index: {}]   ;;  %s5270_s24 = inlined_call_operand.hbm [shape: f32[64,256], index: 24, kind: input, shape index: {}]   ;;  %s5271_s25 = inlined_call_operand.hbm [shape: f32[16,64], index: 25, kind: output, shape index: {}]  }
   0x1   :  { %5280 = sst [smem:[#allocation16_spill]] %s5246_s0 }
   0x2   :  { %5281 = sst [smem:[#allocation17_spill]] %s5247_s1 }
   0x3   :  { %5282 = sst [smem:[#allocation18_spill]] %s5248_s2 }
   0x4   :  { %5283 = sst [smem:[#allocation19_spill]] %s5249_s3 }
   0x5   :  { %5284 = sst [smem:[#allocation20_spill]] %s5250_s4 }
   0x6   :  { %5285 = sst [smem:[#allocation21_spill]] %s5251_s5 }
   0x7   :  { %5286 = sst [smem:[#allocation22_spill]] %s5252_s6 }
   0x8   :  { %5287 = sst [smem:[#allocation23_spill]] %s5253_s7 }
   0x9   :  { %5288 = sst [smem:[#allocation24_spill]] %s5254_s8 }
   0xa   :  { %5289 = sst [smem:[#allocation25_spill]] %s5255_s9 }
   0xb   :  { %5290 = sst [smem:[#allocation26_spill]] %s5271_s25 }
   0xc   :  { %30 = vsyncpa [#allocation7], 0 }
   0xd   :  { %31 = vsyncpa [#allocation5], 0 }
   0xe   :  { %32 = vsyncpa [#allocation10], 0 }
   0xf   :  { %33 = vsyncpa [#allocation6], 0  ;;  %s5291_s6 = sld [smem:[#allocation16_spill]]  ;;  %s89_s26 = sshll.u32 %s5268_s22, 4  ;;  %s90_s26 = int_to_ptr.hbm [resolvable:$true] %s89_s26 }
  0x10   :  { %s3885_s1 = smov [#allocation4]   ;;  %s3886_s8 = smov [#allocation8]  }
  0x11   :  { %s91_s27 = sshll.u32 %s3886_s8, 4  ;;  %s3887_s4 = smov 256   ;;  %s92_s27 = int_to_ptr.vmem [resolvable:$true] %s91_s27 }
  0x12   :  { %s3888_s28 = smov 16   ;;  %s104_s0 = sshll.u32 %s5270_s24, 4  ;;  %s105_s0 = int_to_ptr.hbm [resolvable:$true] %s104_s0 }
  0x13   :  { %97 = dma.hbm_to_vmem [thread:$0]  %s90_s26, 2048, %s92_s27, [#allocation5], %s3887_s4, %s3887_s4, %s3888_s28  }
  0x14   :  { %s3889_s29 = smov [#allocation9]  }
  0x15   :  { %s39_s30 = sshll.u32 %s5291_s6, 4  ;;  %s106_s2 = sshll.u32 %s3889_s29, 4  ;;  %s40_s30 = int_to_ptr.vmem [resolvable:$true] %s39_s30  ;;  %s107_s2 = int_to_ptr.vmem [resolvable:$true] %s106_s2 }
  0x16   :  { %42 = dma.vmem_to_smem %s40_s30, 16, %s3885_s1, [#allocation7]  }
  0x17   :  { %112 = dma.hbm_to_vmem [thread:$0]  %s105_s0, 2048, %s107_s2, [#allocation10], %s3887_s4, %s3887_s4, %s3888_s28  }
  0x18   :  { %3877 = dma.done.wait [#allocation7], 16  }
  0x19   :  { %3878 = vsyncadd [#allocation7], 4294967280 }
  0x1a   :  { %3879 = dma.done.wait [#allocation5], 2048  }
  0x1b   :  { %3880 = vsyncadd [#allocation5], 4294965248 }
  0x1c   :  { %3881 = dma.done.wait [#allocation10], 2048  }
  0x1d   :  { %3882 = vsyncadd [#allocation10], 4294965248 }
  0x1e   :  { %125 = sfence }
  0x1f   :  { %s5292_s30 = sld [smem:[#allocation18_spill]]  ;;  %v3890_v3 = vmov 0   ;;  %v127_v47 = vlaneseq  ;;  %v3891_v55 = vmov 0.0   ;;  %vm409_vm2 = vcmask 523264   ;;  %s3892_s6 = smov 48  }
  0x20   :  { %s5293_s26 = sld [smem:[#allocation19_spill]]  ;;  %3576 = vset.pattern.permute.xlu2 %v3890_v3  ;;  %3575 = vset.pattern.permute.xlu1 %v3890_v3 }
  0x21   :  { %s5294_s8 = sld [smem:[#allocation17_spill]]  ;;  %3574 = vset.pattern.permute.xlu0 %v3890_v3  ;;  %v4175_v49 = vand.u32 127, %v127_v47 }
  0x22   :  { %s5295_s22 = sld [smem:[#allocation23_spill]] }
  0x23   :  { %s5296_s2 = sld [smem:[#allocation22_spill]] }
  0x24   :  { %s5297_s3 = sld [smem:[#allocation24_spill]] }
  0x25   :  { %v257_v0 = vld [vmem:[%s5292_s30] sm:$0xff]  ;;  %v258_v4 = vld [vmem:[%s5292_s30 + $0x8] sm:$0xff]  ;;  %v260_v10 = vld [vmem:[%s5292_s30 + $0x18] sm:$0xff]  ;;  %s3538_s4 = sld [smem:[#allocation4 + $0x1]] }
  0x26   :  { %v580_v1 = vld [vmem:[%s5293_s26] sm:$0xff]  ;;  %274 = vperm.xlu2 %3576, %v257_v0   ;;  %v581_v5 = vld [vmem:[%s5293_s26 + $0x8] sm:$0xff]  ;;  %v582_v8 = vld [vmem:[%s5293_s26 + $0x10] sm:$0xff]  ;;  %s3242_s28 = sld [smem:[#allocation4]] }
  0x27   :  { %v129_v2 = vld [vmem:[%s5294_s8] sm:$0xff]  ;;  %597 = vperm.xlu0 %3574, %v580_v1   ;;  %v130_v6 = vld [vmem:[%s5294_s8 + $0x8] sm:$0xff]  ;;  %v131_v7 = vld [vmem:[%s5294_s8 + $0x10] sm:$0xff] }
  0x28   :  { %146 = vperm.xlu1 %3575, %v129_v2   ;;  %v583_v9 = vld [vmem:[%s5293_s26 + $0x18] sm:$0xff]  ;;  %v259_v12 = vld [vmem:[%s5292_s30 + $0x10] sm:$0xff]  ;;  %v133_v13 = vld [vmem:[%s5294_s8 + $0x20] sm:$0xff] }
  0x29   :  { %v132_v11 = vld [vmem:[%s5294_s8 + $0x18] sm:$0xff]  ;;  %v584_v14 = vld [vmem:[%s5293_s26 + $0x20] sm:$0xff]  ;;  %v585_v15 = vld [vmem:[%s5293_s26 + $0x28] sm:$0xff] }
  0x2a   :  { %v262_v16 = vld [vmem:[%s5292_s30 + $0x28] sm:$0xff]  ;;  %v261_v18 = vld [vmem:[%s5292_s30 + $0x20] sm:$0xff]  ;;  %v135_v19 = vld [vmem:[%s5294_s8 + $0x30] sm:$0xff] }
  0x2b   :  { %v134_v17 = vld [vmem:[%s5294_s8 + $0x28] sm:$0xff]  ;;  %v586_v20 = vld [vmem:[%s5293_s26 + $0x30] sm:$0xff]  ;;  %v587_v21 = vld [vmem:[%s5293_s26 + $0x38] sm:$0xff] }
  0x2c   :  { %v264_v22 = vld [vmem:[%s5292_s30 + $0x38] sm:$0xff]  ;;  %v263_v24 = vld [vmem:[%s5292_s30 + $0x30] sm:$0xff]  ;;  %v137_v25 = vld [vmem:[%s5294_s8 + $0x40] sm:$0xff] }
  0x2d   :  { %v136_v23 = vld [vmem:[%s5294_s8 + $0x38] sm:$0xff]  ;;  %v588_v26 = vld [vmem:[%s5293_s26 + $0x40] sm:$0xff]  ;;  %v589_v27 = vld [vmem:[%s5293_s26 + $0x48] sm:$0xff] }
  0x2e   :  { %277 = vperm.xlu2 %3576, %v258_v4   ;;  %v3547_v28 = vld [vmem:[%s5295_s22 + $0x18] sm:$0xff]  ;;  %v266_v29 = vld [vmem:[%s5292_s30 + $0x48] sm:$0xff]  ;;  %v265_v31 = vld [vmem:[%s5292_s30 + $0x40] sm:$0xff] }
  0x2f   :  { %600 = vperm.xlu0 %3574, %v581_v5   ;;  %438 = vmatpush.bf16.msra.mxu0 %v3547_v28  ;;  %v138_v30 = vld [vmem:[%s5294_s8 + $0x48] sm:$0xff]  ;;  %v3546_v32 = vld [vmem:[%s5295_s22 + $0x10] sm:$0xff]  ;;  %v3543_v34 = vld [vmem:[%s5296_s2 + $0x18] sm:$0xff] }
  0x30   :  { %149 = vperm.xlu1 %3575, %v130_v6   ;;  %v3545_v33 = vld [vmem:[%s5295_s22 + $0x8] sm:$0xff]  ;;  %v3551_v35 = vld [vmem:[%s5297_s3 + $0x18] sm:$0xff]  ;;  %v139_v36 = vld [vmem:[%s5294_s8 + $0x50] sm:$0xff]  ;;  %535 = vmatpush.bf16.msra.mxu1 %v3543_v34 }
  0x31   :  { %v590_v37 = vld [vmem:[%s5293_s26 + $0x50] sm:$0xff]  ;;  %v591_v38 = vld [vmem:[%s5293_s26 + $0x58] sm:$0xff]  ;;  %v3544_v39 = vld [vmem:[%s5295_s22] sm:$0xff]  ;;  %760 = vmatpush.bf16.msra.mxu2 %v3551_v35  ;;  %s5300_s22 = sld [smem:[#allocation20_spill]] }
  0x32   :  { %v3542_v40 = vld [vmem:[%s5296_s2 + $0x10] sm:$0xff]  ;;  %v140_v42 = vld [vmem:[%s5294_s8 + $0x58] sm:$0xff]  ;;  %v3541_v45 = vld [vmem:[%s5296_s2 + $0x8] sm:$0xff] }
  0x33   :  { %439 = vmatpush.bf16.msra.mxu0 %v3546_v32  ;;  %v3550_v41 = vld [vmem:[%s5297_s3 + $0x10] sm:$0xff]  ;;  %v268_v43 = vld [vmem:[%s5292_s30 + $0x58] sm:$0xff]  ;;  %v3549_v46 = vld [vmem:[%s5297_s3 + $0x8] sm:$0xff] }
  0x34   :  { %536 = vmatpush.bf16.msra.mxu1 %v3542_v40  ;;  %v267_v44 = vld [vmem:[%s5292_s30 + $0x50] sm:$0xff]  ;;  %v3540_v50 = vld [vmem:[%s5296_s2] sm:$0xff]  ;;  %v593_v54 = vld [vmem:[%s5293_s26 + $0x68] sm:$0xff] }
  0x35   :  { %761 = vmatpush.bf16.msra.mxu2 %v3550_v41  ;;  %v3548_v51 = vld [vmem:[%s5297_s3] sm:$0xff]  ;;  %v270_v60 = vld [vmem:[%s5292_s30 + $0x68] sm:$0xff]  ;;  %v143_v0 = vld [vmem:[%s5294_s8 + $0x70] sm:$0xff] }
  0x36   :  { %152 = vperm.xlu2 %3576, %v131_v7   ;;  %v141_v52 = vld [vmem:[%s5294_s8 + $0x60] sm:$0xff]  ;;  %v142_v61 = vld [vmem:[%s5294_s8 + $0x68] sm:$0xff]  ;;  %v594_v1 = vld [vmem:[%s5293_s26 + $0x70] sm:$0xff] }
  0x37   :  { %603 = vperm.xlu0 %3574, %v582_v8   ;;  %440 = vmatpush.bf16.msra.mxu0 %v3545_v33  ;;  %v592_v53 = vld [vmem:[%s5293_s26 + $0x60] sm:$0xff]  ;;  %v595_v2 = vld [vmem:[%s5293_s26 + $0x78] sm:$0xff]  ;;  %v271_v8 = vld [vmem:[%s5292_s30 + $0x70] sm:$0xff]  ;;  %s5299_s26 = sld [smem:[#allocation25_spill]] }
  0x38   :  { %606 = vperm.xlu1 %3575, %v583_v9   ;;  %537 = vmatpush.bf16.msra.mxu1 %v3541_v45  ;;  %v269_v62 = vld [vmem:[%s5292_s30 + $0x60] sm:$0xff]  ;;  %v272_v6 = vld [vmem:[%s5292_s30 + $0x78] sm:$0xff]  ;;  %s5301_s30 = sld [smem:[#allocation26_spill]] }
  0x39   :  { %762 = vmatpush.bf16.msra.mxu2 %v3549_v46  ;;  %v144_v7 = vld [vmem:[%s5294_s8 + $0x78] sm:$0xff]  ;;  %s5298_s8 = sld [smem:[#allocation21_spill]] }
  0x3b   :  { %441 = vmatpush.bf16.msra.mxu0 %v3544_v39 }
  0x3c   :  { %538 = vmatpush.bf16.msra.mxu1 %v3540_v50 }
  0x3d   :  { %763 = vmatpush.bf16.msra.mxu2 %v3548_v51 }
  0x3e   :  { %283 = vperm.xlu2 %3576, %v260_v10  }
  0x3f   :  { %155 = vperm.xlu0 %3574, %v132_v11  }
  0x40   :  { %280 = vperm.xlu1 %3575, %v259_v12  }
  0x46   :  { %158 = vperm.xlu2 %3576, %v133_v13  }
  0x47   :  { %609 = vperm.xlu0 %3574, %v584_v14  }
  0x48   :  { %612 = vperm.xlu1 %3575, %v585_v15  }
  0x4e   :  { %289 = vperm.xlu2 %3576, %v262_v16  }
  0x4f   :  { %161 = vperm.xlu0 %3574, %v134_v17  }
  0x50   :  { %286 = vperm.xlu1 %3575, %v261_v18  }
  0x56   :  { %164 = vperm.xlu2 %3576, %v135_v19  }
  0x57   :  { %615 = vperm.xlu0 %3574, %v586_v20  }
  0x58   :  { %618 = vperm.xlu1 %3575, %v587_v21  }
  0x5e   :  { %295 = vperm.xlu2 %3576, %v264_v22  }
  0x5f   :  { %167 = vperm.xlu0 %3574, %v136_v23  }
  0x60   :  { %292 = vperm.xlu1 %3575, %v263_v24  }
  0x66   :  { %170 = vperm.xlu2 %3576, %v137_v25  }
  0x67   :  { %621 = vperm.xlu0 %3574, %v588_v26  }
  0x68   :  { %624 = vperm.xlu1 %3575, %v589_v27  }
  0x6e   :  { %301 = vperm.xlu2 %3576, %v266_v29  }
  0x6f   :  { %173 = vperm.xlu0 %3574, %v138_v30  }
  0x70   :  { %298 = vperm.xlu1 %3575, %v265_v31  }
  0x76   :  { %176 = vperm.xlu2 %3576, %v139_v36  }
  0x77   :  { %627 = vperm.xlu0 %3574, %v590_v37  }
  0x78   :  { %630 = vperm.xlu1 %3575, %v591_v38  }
  0x7e   :  { %307 = vperm.xlu2 %3576, %v268_v43  }
  0x7f   :  { %179 = vperm.xlu0 %3574, %v140_v42  }
  0x80   :  { %304 = vperm.xlu1 %3575, %v267_v44   ;;  %v275_v48 = vpop.permute.xlu2 %274 }
  0x81   :  { %vm321_vm0 = vcmp.eq.s32.totalorder %v4175_v49, %v275_v48 }
  0x82   :  { %v3311_v56 = vsel %vm321_vm0, 1.0, %v3891_v55 }
  0x86   :  { %182 = vperm.xlu2 %3576, %v141_v52  }
  0x87   :  { %633 = vperm.xlu0 %3574, %v592_v53  }
  0x88   :  { %636 = vperm.xlu1 %3575, %v593_v54   ;;  %v278_v57 = vpop.permute.xlu2 %277 }
  0x89   :  { %vm322_vm1 = vcmp.eq.s32.totalorder %v4175_v49, %v278_v57 }
  0x8a   :  { %v3312_v58 = vsel %vm322_vm1, 1.0, %v3891_v55 }
  0x8b   :  { %v369_v59 = vpack.c.bf16 %v3312_v58, %v3311_v56 }
  0x8d   :  { %3343 = vmatmul.msk.bf16.vlgmr.msra.gmra.mxu0 %vm409_vm2, %v369_v59 }
  0x8e   :  { %313 = vperm.xlu2 %3576, %v270_v60  }
  0x8f   :  { %185 = vperm.xlu0 %3574, %v142_v61  }
  0x90   :  { %310 = vperm.xlu1 %3575, %v269_v62   ;;  %v153_v63 = vpop.permute.xlu2 %152 }
  0x91   :  { %vm195_vm9 = vcmp.eq.s32.totalorder %v4175_v49, %v153_v63 }
  0x92   :  { %v3297_v26 = vsel %vm195_vm9, 1.0, %v3891_v55 }
  0x96   :  { %188 = vperm.xlu2 %3576, %v143_v0  }
  0x97   :  { %639 = vperm.xlu0 %3574, %v594_v1  }
  0x98   :  { %642 = vperm.xlu1 %3575, %v595_v2   ;;  %v284_v3 = vpop.permute.xlu2 %283 }
  0x99   :  { %v598_v4 = vpop.permute.xlu0 %597  ;;  %vm324_vm10 = vcmp.eq.s32.totalorder %v4175_v49, %v284_v3 }
  0x9a   :  { %v147_v5 = vpop.permute.xlu1 %146  ;;  %vm644_vm3 = vcmp.eq.s32.totalorder %v4175_v49, %v598_v4  ;;  %v3314_v27 = vsel %vm324_vm10, 1.0, %v3891_v55 }
  0x9b   :  { %vm193_vm4 = vcmp.eq.s32.totalorder %v4175_v49, %v147_v5  ;;  %v3375_v12 = vsel %vm644_vm3, 1.0, %v3891_v55 }
  0x9c   :  { %v3295_v13 = vsel %vm193_vm4, 1.0, %v3891_v55 }
  0x9e   :  { %319 = vperm.xlu2 %3576, %v272_v6  }
  0x9f   :  { %191 = vperm.xlu0 %3574, %v144_v7  }
  0xa0   :  { %316 = vperm.xlu1 %3575, %v271_v8   ;;  %v159_v9 = vpop.permute.xlu2 %158 }
  0xa1   :  { %v601_v10 = vpop.permute.xlu0 %600  ;;  %vm197_vm15 = vcmp.eq.s32.totalorder %v4175_v49, %v159_v9 }
  0xa2   :  { %v150_v11 = vpop.permute.xlu1 %149  ;;  %vm645_vm5 = vcmp.eq.s32.totalorder %v4175_v49, %v601_v10  ;;  %v3299_v40 = vsel %vm197_vm15, 1.0, %v3891_v55 }
  0xa3   :  { %vm194_vm6 = vcmp.eq.s32.totalorder %v4175_v49, %v150_v11  ;;  %v3376_v14 = vsel %vm645_vm5, 1.0, %v3891_v55 }
  0xa4   :  { %v3296_v15 = vsel %vm194_vm6, 1.0, %v3891_v55  ;;  %v692_v16 = vpack.c.bf16 %v3376_v14, %v3375_v12 }
  0xa5   :  { %v241_v17 = vpack.c.bf16 %v3296_v15, %v3295_v13 }
  0xa6   :  { %3407 = vmatmul.msk.bf16.vlgmr.msra.gmra.mxu2 %vm409_vm2, %v692_v16 }
  0xa7   :  { %3367 = vmatmul.msk.bf16.vlgmr.msra.gmra.mxu1 %vm409_vm2, %v241_v17 }
  0xa8   :  { %v290_v18 = vpop.permute.xlu2 %289 }
  0xa9   :  { %v604_v19 = vpop.permute.xlu0 %603  ;;  %vm326_vm0 = vcmp.eq.s32.totalorder %v4175_v49, %v290_v18 }
  0xaa   :  { %v607_v20 = vpop.permute.xlu1 %606  ;;  %vm646_vm7 = vcmp.eq.s32.totalorder %v4175_v49, %v604_v19  ;;  %v3316_v41 = vsel %vm326_vm0, 1.0, %v3891_v55 }
  0xab   :  { %vm647_vm8 = vcmp.eq.s32.totalorder %v4175_v49, %v607_v20  ;;  %v3377_v23 = vsel %vm646_vm7, 1.0, %v3891_v55 }
  0xac   :  { %v3378_v24 = vsel %vm647_vm8, 1.0, %v3891_v55 }
  0xad   :  { %v693_v32 = vpack.c.bf16 %v3378_v24, %v3377_v23 }
  0xb0   :  { %v165_v25 = vpop.permute.xlu2 %164 }
  0xb1   :  { %v156_v21 = vpop.permute.xlu0 %155  ;;  %vm199_vm6 = vcmp.eq.s32.totalorder %v4175_v49, %v165_v25 }
  0xb2   :  { %v281_v22 = vpop.permute.xlu1 %280  ;;  %vm196_vm11 = vcmp.eq.s32.totalorder %v4175_v49, %v156_v21  ;;  %v3301_v57 = vsel %vm199_vm6, 1.0, %v3891_v55 }
  0xb3   :  { %vm323_vm12 = vcmp.eq.s32.totalorder %v4175_v49, %v281_v22  ;;  %v3298_v28 = vsel %vm196_vm11, 1.0, %v3891_v55 }
  0xb4   :  { %v3313_v29 = vsel %vm323_vm12, 1.0, %v3891_v55  ;;  %v242_v30 = vpack.c.bf16 %v3298_v28, %v3297_v26 }
  0xb5   :  { %v370_v31 = vpack.c.bf16 %v3314_v27, %v3313_v29 }
  0xb6   :  { %3408 = vmatmul.msk.bf16.gmra.mxu2 %vm409_vm2, %v693_v32 }
  0xb7   :  { %3344 = vmatmul.msk.bf16.gmra.mxu0 %vm409_vm2, %v370_v31  ;;  %3368 = vmatmul.msk.bf16.gmra.mxu1 %vm409_vm2, %v242_v30 }
  0xb8   :  { %v296_v35 = vpop.permute.xlu2 %295 }
  0xb9   :  { %v610_v33 = vpop.permute.xlu0 %609  ;;  %vm328_vm7 = vcmp.eq.s32.totalorder %v4175_v49, %v296_v35 }
  0xba   :  { %v613_v34 = vpop.permute.xlu1 %612  ;;  %vm648_vm13 = vcmp.eq.s32.totalorder %v4175_v49, %v610_v33  ;;  %v3318_v58 = vsel %vm328_vm7, 1.0, %v3891_v55 }
  0xbb   :  { %vm649_vm14 = vcmp.eq.s32.totalorder %v4175_v49, %v613_v34  ;;  %v3379_v38 = vsel %vm648_vm13, 1.0, %v3891_v55 }
  0xbc   :  { %v3380_v39 = vsel %vm649_vm14, 1.0, %v3891_v55 }
  0xbd   :  { %v694_v46 = vpack.c.bf16 %v3380_v39, %v3379_v38 }
  0xc0   :  { %v171_v47 = vpop.permute.xlu2 %170 }
  0xc1   :  { %v162_v36 = vpop.permute.xlu0 %161  ;;  %vm201_vm12 = vcmp.eq.s32.totalorder %v4175_v49, %v171_v47 }
  0xc2   :  { %v287_v37 = vpop.permute.xlu1 %286  ;;  %vm198_vm1 = vcmp.eq.s32.totalorder %v4175_v49, %v162_v36  ;;  %v3303_v7 = vsel %vm201_vm12, 1.0, %v3891_v55 }
  0xc3   :  { %vm325_vm3 = vcmp.eq.s32.totalorder %v4175_v49, %v287_v37  ;;  %v3300_v42 = vsel %vm198_vm1, 1.0, %v3891_v55 }
  0xc4   :  { %v3315_v43 = vsel %vm325_vm3, 1.0, %v3891_v55  ;;  %v243_v44 = vpack.c.bf16 %v3300_v42, %v3299_v40 }
  0xc5   :  { %v371_v45 = vpack.c.bf16 %v3316_v41, %v3315_v43 }
  0xc6   :  { %3409 = vmatmul.msk.bf16.gmra.mxu2 %vm409_vm2, %v694_v46 }
  0xc7   :  { %3345 = vmatmul.msk.bf16.gmra.mxu0 %vm409_vm2, %v371_v45  ;;  %3369 = vmatmul.msk.bf16.gmra.mxu1 %vm409_vm2, %v243_v44 }
  0xc8   :  { %v302_v51 = vpop.permute.xlu2 %301 }
  0xc9   :  { %v616_v48 = vpop.permute.xlu0 %615  ;;  %vm330_vm13 = vcmp.eq.s32.totalorder %v4175_v49, %v302_v51 }
  0xca   :  { %v619_v50 = vpop.permute.xlu1 %618  ;;  %vm650_vm4 = vcmp.eq.s32.totalorder %v4175_v49, %v616_v48  ;;  %v3320_v8 = vsel %vm330_vm13, 1.0, %v3891_v55 }
  0xcb   :  { %vm651_vm5 = vcmp.eq.s32.totalorder %v4175_v49, %v619_v50  ;;  %v3381_v54 = vsel %vm650_vm4, 1.0, %v3891_v55 }
  0xcc   :  { %v3382_v56 = vsel %vm651_vm5, 1.0, %v3891_v55 }
  0xcd   :  { %v695_v63 = vpack.c.bf16 %v3382_v56, %v3381_v54 }
  0xd0   :  { %v177_v2 = vpop.permute.xlu2 %176 }
  0xd1   :  { %v168_v52 = vpop.permute.xlu0 %167  ;;  %vm203_vm3 = vcmp.eq.s32.totalorder %v4175_v49, %v177_v2 }
  0xd2   :  { %v293_v53 = vpop.permute.xlu1 %292  ;;  %vm200_vm8 = vcmp.eq.s32.totalorder %v4175_v49, %v168_v52  ;;  %v3305_v22 = vsel %vm203_vm3, 1.0, %v3891_v55 }
  0xd3   :  { %vm327_vm9 = vcmp.eq.s32.totalorder %v4175_v49, %v293_v53  ;;  %v3302_v59 = vsel %vm200_vm8, 1.0, %v3891_v55 }
  0xd4   :  { %v3317_v60 = vsel %vm327_vm9, 1.0, %v3891_v55  ;;  %v244_v61 = vpack.c.bf16 %v3302_v59, %v3301_v57 }
  0xd5   :  { %v372_v62 = vpack.c.bf16 %v3318_v58, %v3317_v60 }
  0xd6   :  { %3410 = vmatmul.msk.bf16.gmra.mxu2 %vm409_vm2, %v695_v63 }
  0xd7   :  { %3346 = vmatmul.msk.bf16.gmra.mxu0 %vm409_vm2, %v372_v62  ;;  %3370 = vmatmul.msk.bf16.gmra.mxu1 %vm409_vm2, %v244_v61 }
  0xd8   :  { %v308_v11 = vpop.permute.xlu2 %307 }
  0xd9   :  { %v622_v0 = vpop.permute.xlu0 %621  ;;  %vm332_vm4 = vcmp.eq.s32.totalorder %v4175_v49, %v308_v11 }
  0xda   :  { %v625_v1 = vpop.permute.xlu1 %624  ;;  %vm652_vm10 = vcmp.eq.s32.totalorder %v4175_v49, %v622_v0  ;;  %v3322_v23 = vsel %vm332_vm4, 1.0, %v3891_v55  ;;  %vm904_vm4 = vcmask 392192  }
  0xdb   :  { %vm653_vm11 = vcmp.eq.s32.totalorder %v4175_v49, %v625_v1  ;;  %v3383_v5 = vsel %vm652_vm10, 1.0, %v3891_v55 }
  0xdc   :  { %v3384_v6 = vsel %vm653_vm11, 1.0, %v3891_v55 }
  0xdd   :  { %v696_v14 = vpack.c.bf16 %v3384_v6, %v3383_v5 }
  0xe0   :  { %v183_v17 = vpop.permute.xlu2 %182 }
  0xe1   :  { %v174_v3 = vpop.permute.xlu0 %173  ;;  %vm205_vm9 = vcmp.eq.s32.totalorder %v4175_v49, %v183_v17  ;;  %v821_v17 = vld [vmem:[%s5298_s8] sm:$0xff] }
  0xe2   :  { %v299_v4 = vpop.permute.xlu1 %298  ;;  %vm202_vm14 = vcmp.eq.s32.totalorder %v4175_v49, %v174_v3  ;;  %v3307_v36 = vsel %vm205_vm9, 1.0, %v3891_v55 }
  0xe3   :  { %vm329_vm15 = vcmp.eq.s32.totalorder %v4175_v49, %v299_v4  ;;  %v3304_v9 = vsel %vm202_vm14, 1.0, %v3891_v55 }
  0xe4   :  { %v3319_v10 = vsel %vm329_vm15, 1.0, %v3891_v55  ;;  %v245_v12 = vpack.c.bf16 %v3304_v9, %v3303_v7 }
  0xe5   :  { %v373_v13 = vpack.c.bf16 %v3320_v8, %v3319_v10 }
  0xe6   :  { %3411 = vmatmul.msk.bf16.gmra.mxu2 %vm409_vm2, %v696_v14 }
  0xe7   :  { %3347 = vmatmul.msk.bf16.gmra.mxu0 %vm409_vm2, %v373_v13  ;;  %3371 = vmatmul.msk.bf16.gmra.mxu1 %vm409_vm2, %v245_v12 }
  0xe8   :  { %v314_v29 = vpop.permute.xlu2 %313 }
  0xe9   :  { %v628_v15 = vpop.permute.xlu0 %627  ;;  %vm334_vm10 = vcmp.eq.s32.totalorder %v4175_v49, %v314_v29  ;;  %v824_v29 = vld [vmem:[%s5298_s8 + $0x18] sm:$0xff] }
  0xea   :  { %v631_v16 = vpop.permute.xlu1 %630  ;;  %vm654_vm0 = vcmp.eq.s32.totalorder %v4175_v49, %v628_v15  ;;  %v3324_v37 = vsel %vm334_vm10, 1.0, %v3891_v55  ;;  %v823_v15 = vld [vmem:[%s5298_s8 + $0x10] sm:$0xff] }
  0xeb   :  { %vm655_vm1 = vcmp.eq.s32.totalorder %v4175_v49, %v631_v16  ;;  %v3385_v20 = vsel %vm654_vm0, 1.0, %v3891_v55 }
  0xec   :  { %v3386_v21 = vsel %vm655_vm1, 1.0, %v3891_v55 }
  0xed   :  { %v697_v28 = vpack.c.bf16 %v3386_v21, %v3385_v20  ;;  %v825_v20 = vld [vmem:[%s5298_s8 + $0x20] sm:$0xff] }
  0xf0   :  { %v189_v38 = vpop.permute.xlu2 %188 }
  0xf1   :  { %v180_v18 = vpop.permute.xlu0 %179  ;;  %vm207_vm15 = vcmp.eq.s32.totalorder %v4175_v49, %v189_v38 }
  0xf2   :  { %v305_v19 = vpop.permute.xlu1 %304  ;;  %vm204_vm5 = vcmp.eq.s32.totalorder %v4175_v49, %v180_v18  ;;  %v3309_v52 = vsel %vm207_vm15, 1.0, %v3891_v55 }
  0xf3   :  { %vm331_vm6 = vcmp.eq.s32.totalorder %v4175_v49, %v305_v19  ;;  %v3306_v24 = vsel %vm204_vm5, 1.0, %v3891_v55 }
  0xf4   :  { %v3321_v25 = vsel %vm331_vm6, 1.0, %v3891_v55  ;;  %v246_v26 = vpack.c.bf16 %v3306_v24, %v3305_v22 }
  0xf5   :  { %v374_v27 = vpack.c.bf16 %v3322_v23, %v3321_v25 }
  0xf6   :  { %3412 = vmatmul.msk.bf16.gmra.mxu2 %vm409_vm2, %v697_v28 }
  0xf7   :  { %3348 = vmatmul.msk.bf16.gmra.mxu0 %vm409_vm2, %v374_v27  ;;  %3372 = vmatmul.msk.bf16.gmra.mxu1 %vm409_vm2, %v246_v26 }
  0xf8   :  { %v320_v46 = vpop.permute.xlu2 %319 }
  0xf9   :  { %v634_v30 = vpop.permute.xlu0 %633  ;;  %vm336_vm0 = vcmp.eq.s32.totalorder %v4175_v49, %v320_v46 }
  0xfa   :  { %v637_v31 = vpop.permute.xlu1 %636  ;;  %vm656_vm7 = vcmp.eq.s32.totalorder %v4175_v49, %v634_v30  ;;  %v3326_v53 = vsel %vm336_vm0, 1.0, %v3891_v55 }
  0xfb   :  { %vm657_vm8 = vcmp.eq.s32.totalorder %v4175_v49, %v637_v31  ;;  %v3387_v34 = vsel %vm656_vm7, 1.0, %v3891_v55 }
  0xfc   :  { %v3388_v35 = vsel %vm657_vm8, 1.0, %v3891_v55 }
  0xfd   :  { %v698_v43 = vpack.c.bf16 %v3388_v35, %v3387_v34  ;;  %v826_v35 = vld [vmem:[%s5298_s8 + $0x28] sm:$0xff] }
 0x101   :  { %v186_v32 = vpop.permute.xlu0 %185 }
 0x102   :  { %v311_v33 = vpop.permute.xlu1 %310  ;;  %vm206_vm11 = vcmp.eq.s32.totalorder %v4175_v49, %v186_v32  ;;  %v822_v32 = vld [vmem:[%s5298_s8 + $0x8] sm:$0xff] }
 0x103   :  { %vm333_vm12 = vcmp.eq.s32.totalorder %v4175_v49, %v311_v33  ;;  %v3308_v39 = vsel %vm206_vm11, 1.0, %v3891_v55 }
 0x104   :  { %v3323_v40 = vsel %vm333_vm12, 1.0, %v3891_v55  ;;  %v247_v41 = vpack.c.bf16 %v3308_v39, %v3307_v36 }
 0x105   :  { %v375_v42 = vpack.c.bf16 %v3324_v37, %v3323_v40 }
 0x106   :  { %3413 = vmatmul.msk.bf16.gmra.mxu2 %vm409_vm2, %v698_v43 }
 0x107   :  { %3349 = vmatmul.msk.bf16.gmra.mxu0 %vm409_vm2, %v375_v42  ;;  %3373 = vmatmul.msk.bf16.gmra.mxu1 %vm409_vm2, %v247_v41 }
 0x109   :  { %v640_v44 = vpop.permute.xlu0 %639 }
 0x10a   :  { %v643_v45 = vpop.permute.xlu1 %642  ;;  %vm658_vm13 = vcmp.eq.s32.totalorder %v4175_v49, %v640_v44  ;;  %v443_v60 = vpop.f32.mrf.mxu0 }
 0x10b   :  { %vm659_vm14 = vcmp.eq.s32.totalorder %v4175_v49, %v643_v45  ;;  %v3389_v50 = vsel %vm658_vm13, 1.0, %v3891_v55 }
 0x10c   :  { %v3390_v51 = vsel %vm659_vm14, 1.0, %v3891_v55 }
 0x10d   :  { %v699_v59 = vpack.c.bf16 %v3390_v51, %v3389_v50 }
 0x111   :  { %v192_v47 = vpop.permute.xlu0 %191 }
 0x112   :  { %v317_v48 = vpop.permute.xlu1 %316  ;;  %vm208_vm1 = vcmp.eq.s32.totalorder %v4175_v49, %v192_v47  ;;  %v445_v62 = vpop.f32.mrf.mxu0 }
 0x113   :  { %vm335_vm3 = vcmp.eq.s32.totalorder %v4175_v49, %v317_v48  ;;  %v3310_v54 = vsel %vm208_vm1, 1.0, %v3891_v55 }
 0x114   :  { %v3325_v56 = vsel %vm335_vm3, 1.0, %v3891_v55  ;;  %v248_v57 = vpack.c.bf16 %v3310_v54, %v3309_v52 }
 0x115   :  { %v376_v58 = vpack.c.bf16 %v3326_v53, %v3325_v56 }
 0x116   :  { %3414 = vmatmul.msk.bf16.gmra.mxu2 %vm409_vm2, %v699_v59 }
 0x117   :  { %3350 = vmatmul.msk.bf16.gmra.mxu0 %vm409_vm2, %v376_v58  ;;  %3374 = vmatmul.msk.bf16.gmra.mxu1 %vm409_vm2, %v248_v57 }
 0x124   :  { %v540_v61 = vpop.f32.mrf.mxu1 }
 0x125   :  { %v541_v14 = vadd.f32 %v540_v61, %v443_v60  ;;  %v3554_v61 = vld [vmem:[%s5256_s10 + $0x10] sm:$0xff] }
 0x126   :  { %913 = vmatpush.bf16.msra.mxu3 %v3554_v61 }
 0x129   :  { %v765_v49 = vpop.f32.mrf.mxu2 }
 0x12a   :  { %v805_v16 = vadd.f32 %v765_v49, %v541_v14 }
 0x12c   :  { %v542_v63 = vpop.f32.mrf.mxu1  ;;  %v837_v21 = vadd.f32 %v821_v17, %v805_v16  ;;  %v831_v17 = vld [vmem:[%s5298_s8 + $0x50] sm:$0xff] }
 0x12d   :  { %v543_v26 = vadd.f32 %v542_v63, %v445_v62  ;;  %v3553_v63 = vld [vmem:[%s5256_s10 + $0x8] sm:$0xff] }
 0x12e   :  { %914 = vmatpush.bf16.msra.mxu3 %v3553_v63 }
 0x131   :  { %v767_v0 = vpop.f32.mrf.mxu2 }
 0x132   :  { %v806_v30 = vadd.f32 %v767_v0, %v543_v26  ;;  %v3552_v0 = vld [vmem:[%s5256_s10] sm:$0xff] }
 0x133   :  { %915 = vmatpush.bf16.msra.mxu3 %v3552_v0 }
 0x134   :  { %v448_v1 = vpop.f32.mrf.mxu0  ;;  %v545_v2 = vpop.f32.mrf.mxu1  ;;  %v838_v36 = vadd.f32 %v822_v32, %v806_v30 }
 0x135   :  { %v546_v3 = vadd.f32 %v545_v2, %v448_v1 }
 0x139   :  { %v770_v4 = vpop.f32.mrf.mxu2 }
 0x13a   :  { %v807_v5 = vadd.f32 %v770_v4, %v546_v3 }
 0x13c   :  { %v450_v6 = vpop.f32.mrf.mxu0  ;;  %v547_v7 = vpop.f32.mrf.mxu1  ;;  %v839_v18 = vadd.f32 %v823_v15, %v807_v5 }
 0x13d   :  { %v548_v8 = vadd.f32 %v547_v7, %v450_v6  ;;  %v827_v7 = vld [vmem:[%s5298_s8 + $0x30] sm:$0xff] }
 0x13e   :  { %v853_v27 = vmax.f32 %v837_v21, %v839_v18 }
 0x141   :  { %v772_v9 = vpop.f32.mrf.mxu2 }
 0x142   :  { %v808_v10 = vadd.f32 %v772_v9, %v548_v8  ;;  %v829_v9 = vld [vmem:[%s5298_s8 + $0x40] sm:$0xff] }
 0x144   :  { %v453_v11 = vpop.f32.mrf.mxu0  ;;  %v550_v12 = vpop.f32.mrf.mxu1  ;;  %v840_v33 = vadd.f32 %v824_v29, %v808_v10 }
 0x145   :  { %v551_v13 = vadd.f32 %v550_v12, %v453_v11 }
 0x146   :  { %v854_v40 = vmax.f32 %v838_v36, %v840_v33 }
 0x149   :  { %v775_v19 = vpop.f32.mrf.mxu2 }
 0x14a   :  { %v809_v22 = vadd.f32 %v775_v19, %v551_v13 }
 0x14c   :  { %v455_v23 = vpop.f32.mrf.mxu0  ;;  %v552_v24 = vpop.f32.mrf.mxu1  ;;  %v841_v28 = vadd.f32 %v825_v20, %v809_v22 }
 0x14d   :  { %v553_v25 = vadd.f32 %v552_v24, %v455_v23  ;;  %v833_v23 = vld [vmem:[%s5298_s8 + $0x60] sm:$0xff]  ;;  %v828_v24 = vld [vmem:[%s5298_s8 + $0x38] sm:$0xff] }
 0x14e   :  { %v4351_v31 = vmax.f32 %v853_v27, %v841_v28 }
 0x151   :  { %v777_v34 = vpop.f32.mrf.mxu2 }
 0x152   :  { %v810_v37 = vadd.f32 %v777_v34, %v553_v25 }
 0x154   :  { %v458_v38 = vpop.f32.mrf.mxu0  ;;  %v555_v39 = vpop.f32.mrf.mxu1  ;;  %v842_v41 = vadd.f32 %v826_v35, %v810_v37  ;;  %v835_v35 = vld [vmem:[%s5298_s8 + $0x70] sm:$0xff] }
 0x155   :  { %v556_v4 = vadd.f32 %v555_v39, %v458_v38 }
 0x156   :  { %v4359_v42 = vmax.f32 %v854_v40, %v842_v41  ;;  %v832_v40 = vld [vmem:[%s5298_s8 + $0x58] sm:$0xff] }
 0x159   :  { %v780_v43 = vpop.f32.mrf.mxu2 }
 0x15a   :  { %v811_v5 = vadd.f32 %v780_v43, %v556_v4  ;;  %v3578_v4 = vld [vmem:[%s5257_s11] ss:$0 sm:$0xff] }
 0x15c   :  { %v460_v44 = vpop.f32.mrf.mxu0  ;;  %v557_v45 = vpop.f32.mrf.mxu1  ;;  %v843_v11 = vadd.f32 %v827_v7, %v811_v5 }
 0x15d   :  { %v558_v15 = vadd.f32 %v557_v45, %v460_v44 }
 0x15e   :  { %v857_v21 = vmax.f32 %v4351_v31, %v843_v11  ;;  %v830_v31 = vld [vmem:[%s5298_s8 + $0x48] sm:$0xff] }
 0x161   :  { %v782_v46 = vpop.f32.mrf.mxu2 }
 0x162   :  { %v812_v22 = vadd.f32 %v782_v46, %v558_v15  ;;  %v3577_v46 = vld [vmem:[%s5299_s26] ss:$0 sm:$0xff]  ;;  %s3280_s26 = sshll.u32 %s5301_s30, 4  ;;  %s3281_s26 = int_to_ptr.hbm [resolvable:$true] %s3280_s26 }
 0x164   :  { %v463_v47 = vpop.f32.mrf.mxu0  ;;  %v560_v48 = vpop.f32.mrf.mxu1  ;;  %v844_v33 = vadd.f32 %v828_v24, %v812_v22  ;;  %v3556_v22 = vld [vmem:[%s5258_s12 + $0x8] sm:$0xff] }
 0x165   :  { %v561_v6 = vadd.f32 %v560_v48, %v463_v47  ;;  %v834_v47 = vld [vmem:[%s5298_s8 + $0x68] sm:$0xff] }
 0x169   :  { %v785_v50 = vpop.f32.mrf.mxu2 }
 0x16a   :  { %v813_v8 = vadd.f32 %v785_v50, %v561_v6 }
 0x16c   :  { %v465_v51 = vpop.f32.mrf.mxu0  ;;  %v562_v52 = vpop.f32.mrf.mxu1  ;;  %v845_v16 = vadd.f32 %v829_v9, %v813_v8 }
 0x16d   :  { %v563_v25 = vadd.f32 %v562_v52, %v465_v51  ;;  %v858_v51 = vmax.f32 %v4359_v42, %v844_v33 }
 0x16e   :  { %v859_v27 = vmax.f32 %v857_v21, %v845_v16 }
 0x171   :  { %v787_v53 = vpop.f32.mrf.mxu2 }
 0x172   :  { %v814_v28 = vadd.f32 %v787_v53, %v563_v25  ;;  %v3555_v25 = vld [vmem:[%s5258_s12] sm:$0xff] }
 0x174   :  { %v468_v54 = vpop.f32.mrf.mxu0  ;;  %v565_v56 = vpop.f32.mrf.mxu1  ;;  %v846_v41 = vadd.f32 %v830_v31, %v814_v28 }
 0x175   :  { %v566_v10 = vadd.f32 %v565_v56, %v468_v54 }
 0x176   :  { %v860_v54 = vmax.f32 %v858_v51, %v846_v41 }
 0x179   :  { %v790_v57 = vpop.f32.mrf.mxu2 }
 0x17a   :  { %v815_v13 = vadd.f32 %v790_v57, %v566_v10 }
 0x17c   :  { %v470_v58 = vpop.f32.mrf.mxu0  ;;  %v567_v59 = vpop.f32.mrf.mxu1  ;;  %v847_v26 = vadd.f32 %v831_v17, %v815_v13 }
 0x17d   :  { %v568_v29 = vadd.f32 %v567_v59, %v470_v58 }
 0x17e   :  { %v861_v36 = vmax.f32 %v859_v27, %v847_v26 }
 0x181   :  { %v792_v60 = vpop.f32.mrf.mxu2 }
 0x182   :  { %v816_v37 = vadd.f32 %v792_v60, %v568_v29  ;;  %v836_v60 = vld [vmem:[%s5298_s8 + $0x78] sm:$0xff] }
 0x184   :  { %v473_v49 = vpop.f32.mrf.mxu0  ;;  %v570_v62 = vpop.f32.mrf.mxu1  ;;  %v848_v52 = vadd.f32 %v832_v40, %v816_v37 }
 0x185   :  { %v571_v14 = vadd.f32 %v570_v62, %v473_v49 }
 0x186   :  { %v862_v61 = vmax.f32 %v860_v54, %v848_v52 }
 0x189   :  { %v795_v1 = vpop.f32.mrf.mxu2 }
 0x18a   :  { %v817_v20 = vadd.f32 %v795_v1, %v571_v14 }
 0x18c   :  { %v475_v2 = vpop.f32.mrf.mxu0  ;;  %v572_v3 = vpop.f32.mrf.mxu1  ;;  %v849_v30 = vadd.f32 %v833_v23, %v817_v20  ;;  %v3557_v20 = vld [vmem:[%s5258_s12 + $0x10] sm:$0xff]  ;;  %s3893_s12 = smov 80  }
 0x18d   :  { %v573_v38 = vadd.f32 %v572_v3, %v475_v2  ;;  %1026 = vmatpush.bf16.msrb.mxu3 %v3557_v20 }
 0x18e   :  { %v863_v43 = vmax.f32 %v861_v36, %v849_v30 }
 0x191   :  { %v797_v12 = vpop.f32.mrf.mxu2  ;;  %1027 = vmatpush.bf16.msrb.mxu3 %v3556_v22 }
 0x192   :  { %v818_v44 = vadd.f32 %v797_v12, %v573_v38 }
 0x194   :  { %v478_v18 = vpop.f32.mrf.mxu0  ;;  %v575_v19 = vpop.f32.mrf.mxu1  ;;  %v850_v56 = vadd.f32 %v834_v47, %v818_v44 }
 0x195   :  { %v576_v32 = vadd.f32 %v575_v19, %v478_v18  ;;  %1028 = vmatpush.bf16.msrb.mxu3 %v3555_v25 }
 0x196   :  { %v864_v63 = vmax.f32 %v862_v61, %v850_v56 }
 0x199   :  { %v800_v34 = vpop.f32.mrf.mxu2 }
 0x19a   :  { %v819_v39 = vadd.f32 %v800_v34, %v576_v32 }
 0x19c   :  { %v851_v45 = vadd.f32 %v835_v35, %v819_v39  ;;  %v480_v48 = vpop.f32.mrf.mxu0  ;;  %v577_v50 = vpop.f32.mrf.mxu1 }
 0x19d   :  { %v578_v57 = vadd.f32 %v577_v50, %v480_v48 }
 0x19e   :  { %v865_v53 = vmax.f32 %v863_v43, %v851_v45 }
 0x1a0   :  { %v871_v58 = vadd.f32 %v3577_v46, %v865_v53 }
 0x1a1   :  { %v802_v59 = vpop.f32.mrf.mxu2 }
 0x1a2   :  { %v820_v49 = vadd.f32 %v802_v59, %v578_v57  ;;  %v873_v62 = vmax.f32 %v871_v58, 0.0  ;;  %v3579_v57 = vld [vmem:[%s5259_s13] ss:$0 sm:$0xff]  ;;  %s3539_s13 = sld [smem:[#allocation4 + $0x2]] }
 0x1a4   :  { %v852_v0 = vadd.f32 %v836_v60, %v820_v49  ;;  %964 = vrot.lane.b32.xlu0 %v873_v62, %s3892_s6 }
 0x1a6   :  { %v866_v42 = vmax.f32 %v864_v63, %v852_v0 }
 0x1a8   :  { %v872_v1 = vadd.f32 %v3577_v46, %v866_v42 }
 0x1aa   :  { %v874_v2 = vmax.f32 %v872_v1, 0.0 }
 0x1ac   :  { %966 = vrot.lane.b32.xlu1 %v874_v2, %s3892_s6  ;;  %v875_v3 = vpack.c.bf16 %v874_v2, %v873_v62 }
 0x1ae   :  { %3427 = vmatmul.msk.bf16.vlgmr.msra.gmra.mxu3 %vm904_vm4, %v875_v3 }
 0x216   :  { %v965_v35 = vpop.permute.xlu0 %964 }
 0x21e   :  { %v967_v46 = vpop.permute.xlu1 %966 }
 0x231   :  { %v917_v5 = vpop.f32.mrf.mxu3 }
 0x232   :  { %v918_v6 = vadd.f32 %v3578_v4, %v917_v5 }
 0x234   :  { %v922_v7 = vmax.f32 %v918_v6, 0.0  ;;  %v3428_v11 = vmul.f32 -1.442695, %v918_v6 }
 0x236   :  { %976 = vrot.lane.b32.xlu2 %v922_v7, %s3892_s6  ;;  %3581 = vpow2.f32 %v3428_v11  ;;  %v3560_v7 = vld [vmem:[%s5260_s14 + $0x10] sm:$0xff] }
 0x237   :  { %1131 = vmatpush.bf16.msra.mxu3 %v3560_v7  ;;  %v1180_v7 = vld [vmem:[%s5263_s17 + $0x40] sm:$0xff] }
 0x239   :  { %v919_v8 = vpop.f32.mrf.mxu3 }
 0x23a   :  { %v920_v9 = vadd.f32 %v3578_v4, %v919_v8 }
 0x23c   :  { %v923_v10 = vmax.f32 %v920_v9, 0.0  ;;  %v3429_v12 = vmul.f32 -1.442695, %v920_v9  ;;  %v3582_v13 = vpop.eup %3581  ;;  %v3559_v9 = vld [vmem:[%s5260_s14 + $0x8] sm:$0xff] }
 0x23d   :  { %v930_v15 = vadd.f32 1.0, %v3582_v13  ;;  %1132 = vmatpush.bf16.msra.mxu3 %v3559_v9 }
 0x23e   :  { %978 = vrot.lane.b32.xlu0 %v923_v10, %s3892_s6  ;;  %3583 = vpow2.f32 %v3429_v12  ;;  %v3558_v12 = vld [vmem:[%s5260_s14] sm:$0xff]  ;;  %s3896_s14 = smov 128  }
 0x23f   :  { %3585 = vrcp.f32 %v930_v15  ;;  %v943_v29 = vand.u32 2147483648, %v930_v15  ;;  %vm937_vm6 = vweird.f32 %v930_v15  ;;  %v941_v30 = vand.u32 2147483647, %v930_v15 }
 0x241   :  { %v944_v36 = vor.u32 1.1754944e-38, %v943_v29  ;;  %vm942_vm11 = vcmp.eq.f32.partialorder %v941_v30, 8.507059e+37  ;;  %1133 = vmatpush.bf16.msra.mxu3 %v3558_v12  ;;  %v1174_v12 = vld [vmem:[%s5263_s17 + $0x10] sm:$0xff] }
 0x244   :  { %v3584_v14 = vpop.eup %3583 }
 0x245   :  { %v931_v16 = vadd.f32 1.0, %v3584_v14  ;;  %v3586_v17 = vpop.eup %3585 }
 0x246   :  { %v933_v19 = vmul.f32 %v3586_v17, %v930_v15  ;;  %vm938_vm5 = vweird.f32 %v3586_v17 }
 0x247   :  { %3587 = vrcp.f32 %v931_v16  ;;  %vm939_vm8 = vmor %vm937_vm6, %vm938_vm5  ;;  %v958_v33 = vand.u32 2147483648, %v931_v16  ;;  %vm952_vm9 = vweird.f32 %v931_v16  ;;  %v956_v34 = vand.u32 2147483647, %v931_v16 }
 0x248   :  { %v934_v23 = vsub.f32 1.0, %v933_v19 }
 0x249   :  { %v959_v39 = vor.u32 1.1754944e-38, %v958_v33  ;;  %vm957_vm12 = vcmp.eq.f32.partialorder %v956_v34, 8.507059e+37 }
 0x24a   :  { %v935_v26 = vmul.f32 %v3586_v17, %v934_v23 }
 0x24c   :  { %v936_v28 = vadd.f32 %v3586_v17, %v935_v26 }
 0x24d   :  { %v3588_v18 = vpop.eup %3587 }
 0x24e   :  { %v948_v21 = vmul.f32 %v3588_v18, %v931_v16  ;;  %vm953_vm7 = vweird.f32 %v3588_v18  ;;  %v940_v31 = vsel %vm939_vm8, %v3586_v17, %v936_v28 }
 0x24f   :  { %vm954_vm10 = vmor %vm952_vm9, %vm953_vm7  ;;  %v945_v38 = vsel %vm942_vm11, %v944_v36, %v940_v31 }
 0x250   :  { %v949_v24 = vsub.f32 1.0, %v948_v21  ;;  %v972_v43 = vsub.f32 1.0, %v945_v38  ;;  %v970_v48 = vmul.f32 %v965_v35, %v945_v38 }
 0x252   :  { %v950_v27 = vmul.f32 %v3588_v18, %v949_v24 }
 0x254   :  { %v951_v32 = vadd.f32 %v3588_v18, %v950_v27 }
 0x256   :  { %v955_v37 = vsel %vm954_vm10, %v3588_v18, %v951_v32 }
 0x257   :  { %v960_v41 = vsel %vm957_vm12, %v959_v39, %v955_v37  ;;  %v4451_v39 = vld [vmem:[%s5266_s20 + $0x78] sm:$0xff] }
 0x258   :  { %v973_v45 = vsub.f32 1.0, %v960_v41  ;;  %v971_v50 = vmul.f32 %v967_v46, %v960_v41  ;;  %1365 = vmatpush.msrb.mxu0 %v4451_v39  ;;  %1465 = vmatpush.msrb.mxu2 %v4451_v39 }
 0x290   :  { %v977_v40 = vpop.permute.xlu2 %976 }
 0x291   :  { %v982_v44 = vmul.f32 %v977_v40, %v972_v43  ;;  %v4457_v40 = vld [vmem:[%s5266_s20 + $0x68] sm:$0xff]  ;;  %v3580_v43 = vld [vmem:[%s5261_s15] ss:$0 sm:$0xff] }
 0x292   :  { %1366 = vmatpush.msrb.mxu0 %v4457_v40  ;;  %1466 = vmatpush.msrb.mxu2 %v4457_v40 }
 0x293   :  { %v4422_v52 = vadd.f32 %v982_v44, %v970_v48  ;;  %v1202_v48 = vld [vmem:[%s5264_s18 + $0x70] sm:$0xff] }
 0x2b0   :  { %v979_v47 = vpop.permute.xlu0 %978 }
 0x2b1   :  { %v983_v51 = vmul.f32 %v979_v47, %v973_v45  ;;  %v1140_v47 = vld [vmem:[%s5262_s16] sm:$0xff] }
 0x2b3   :  { %v4424_v53 = vadd.f32 %v983_v51, %v971_v50  ;;  %v1200_v50 = vld [vmem:[%s5264_s18 + $0x60] sm:$0xff]  ;;  %v1198_v51 = vld [vmem:[%s5264_s18 + $0x50] sm:$0xff] }
 0x2b5   :  { %v986_v54 = vpack.c.bf16 %v4424_v53, %v4422_v52 }
 0x2b7   :  { %998 = vrot.lane.b32.xlu1 %v986_v54, %s3893_s12  ;;  %v1194_v54 = vld [vmem:[%s5264_s18 + $0x30] sm:$0xff] }
 0x329   :  { %v999_v56 = vpop.permute.xlu1 %998 }
 0x32a   :  { %3442 = vmatmul.msk.bf16.vlgmr.msrb.gmra.mxu3 %vm904_vm4, %v999_v56  ;;  %v1192_v56 = vld [vmem:[%s5264_s18 + $0x20] sm:$0xff] }
 0x3ad   :  { %v1030_v58 = vpop.f32.mrf.mxu3 }
 0x3ae   :  { %v1031_v59 = vadd.f32 %v3579_v57, %v1030_v58  ;;  %v1188_v58 = vld [vmem:[%s5264_s18] sm:$0xff] }
 0x3b0   :  { %v1035_v60 = vmax.f32 %v1031_v59, 0.0  ;;  %v3443_v63 = vmul.f32 -1.442695, %v1031_v59  ;;  %v1203_v59 = vld [vmem:[%s5264_s18 + $0x78] sm:$0xff] }
 0x3b2   :  { %1081 = vrot.lane.b32.xlu2 %v1035_v60, %s3892_s6  ;;  %3589 = vpow2.f32 %v3443_v63  ;;  %v1201_v60 = vld [vmem:[%s5264_s18 + $0x68] sm:$0xff]  ;;  %v1195_v63 = vld [vmem:[%s5264_s18 + $0x38] sm:$0xff] }
 0x3b5   :  { %v1032_v61 = vpop.f32.mrf.mxu3 }
 0x3b6   :  { %v1033_v49 = vadd.f32 %v3579_v57, %v1032_v61  ;;  %v1190_v57 = vld [vmem:[%s5264_s18 + $0x10] sm:$0xff]  ;;  %v1199_v61 = vld [vmem:[%s5264_s18 + $0x58] sm:$0xff] }
 0x3b8   :  { %v1036_v62 = vmax.f32 %v1033_v49, 0.0  ;;  %v3444_v0 = vmul.f32 -1.442695, %v1033_v49  ;;  %v3590_v42 = vpop.eup %3589  ;;  %v1197_v49 = vld [vmem:[%s5264_s18 + $0x48] sm:$0xff] }
 0x3b9   :  { %v1043_v2 = vadd.f32 1.0, %v3590_v42  ;;  %v1191_v42 = vld [vmem:[%s5264_s18 + $0x18] sm:$0xff] }
 0x3ba   :  { %1083 = vrot.lane.b32.xlu0 %v1036_v62, %s3892_s6  ;;  %3591 = vpow2.f32 %v3444_v0  ;;  %v4518_v62 = vld [vmem:[%s5266_s20 + $0x58] sm:$0xff]  ;;  %v1193_v0 = vld [vmem:[%s5264_s18 + $0x28] sm:$0xff] }
 0x3bb   :  { %3593 = vrcp.f32 %v1043_v2  ;;  %v1056_v16 = vand.u32 2147483648, %v1043_v2  ;;  %vm1050_vm14 = vweird.f32 %v1043_v2  ;;  %v1054_v17 = vand.u32 2147483647, %v1043_v2  ;;  %1367 = vmatpush.msrb.mxu0 %v4518_v62  ;;  %1467 = vmatpush.msrb.mxu2 %v4518_v62 }
 0x3bd   :  { %v1057_v22 = vor.u32 1.1754944e-38, %v1056_v16  ;;  %vm1055_vm5 = vcmp.eq.f32.partialorder %v1054_v17, 8.507059e+37  ;;  %v4584_v16 = vld [vmem:[%s5266_s20 + $0x70] sm:$0xff]  ;;  %v4589_v17 = vld [vmem:[%s5266_s20 + $0x28] sm:$0xff] }
 0x3be   :  { %1445 = vmatpush.msrb.mxu1 %v4584_v16 }
 0x3c0   :  { %v3592_v1 = vpop.eup %3591 }
 0x3c1   :  { %v1044_v3 = vadd.f32 1.0, %v3592_v1  ;;  %v3594_v4 = vpop.eup %3593  ;;  %v1189_v1 = vld [vmem:[%s5264_s18 + $0x8] sm:$0xff] }
 0x3c2   :  { %v1046_v6 = vmul.f32 %v3594_v4, %v1043_v2  ;;  %vm1051_vm13 = vweird.f32 %v3594_v4  ;;  %v4537_v2 = vld [vmem:[%s5266_s20 + $0x48] sm:$0xff] }
 0x3c3   :  { %3595 = vrcp.f32 %v1044_v3  ;;  %vm1052_vm0 = vmor %vm1050_vm14, %vm1051_vm13  ;;  %v1071_v19 = vand.u32 2147483648, %v1044_v3  ;;  %vm1065_vm1 = vweird.f32 %v1044_v3  ;;  %v1069_v21 = vand.u32 2147483647, %v1044_v3  ;;  %1368 = vmatpush.msrb.mxu0 %v4537_v2  ;;  %1468 = vmatpush.msrb.mxu2 %v4537_v2 }
 0x3c4   :  { %v1047_v10 = vsub.f32 1.0, %v1046_v6  ;;  %v1182_v6 = vld [vmem:[%s5263_s17 + $0x50] sm:$0xff] }
 0x3c5   :  { %v1072_v25 = vor.u32 1.1754944e-38, %v1071_v19  ;;  %vm1070_vm6 = vcmp.eq.f32.partialorder %v1069_v21, 8.507059e+37  ;;  %v1183_v19 = vld [vmem:[%s5263_s17 + $0x58] sm:$0xff]  ;;  %v1181_v21 = vld [vmem:[%s5263_s17 + $0x48] sm:$0xff] }
 0x3c6   :  { %v1048_v13 = vmul.f32 %v3594_v4, %v1047_v10  ;;  %v1176_v10 = vld [vmem:[%s5263_s17 + $0x20] sm:$0xff] }
 0x3c8   :  { %v1049_v15 = vadd.f32 %v3594_v4, %v1048_v13  ;;  %v1172_v13 = vld [vmem:[%s5263_s17] sm:$0xff] }
 0x3c9   :  { %v3596_v5 = vpop.eup %3595 }
 0x3ca   :  { %v1061_v8 = vmul.f32 %v3596_v5, %v1044_v3  ;;  %vm1066_vm15 = vweird.f32 %v3596_v5  ;;  %v1053_v20 = vsel %vm1052_vm0, %v3594_v4, %v1049_v15  ;;  %v1186_v3 = vld [vmem:[%s5263_s17 + $0x70] sm:$0xff]  ;;  %v1185_v15 = vld [vmem:[%s5263_s17 + $0x68] sm:$0xff]  ;;  %vm1433_vm0 = vcmask 517376  }
 0x3cb   :  { %vm1067_vm3 = vmor %vm1065_vm1, %vm1066_vm15  ;;  %v1058_v24 = vsel %vm1055_vm5, %v1057_v22, %v1053_v20  ;;  %v4603_v20 = vld [vmem:[%s5266_s20 + $0x60] sm:$0xff]  ;;  %v4614_v22 = vld [vmem:[%s5266_s20 + $0x50] sm:$0xff]  ;;  %vm1431_vm15 = vcmask 254976  }
 0x3cc   :  { %v1062_v11 = vsub.f32 1.0, %v1061_v8  ;;  %v1077_v28 = vsub.f32 1.0, %v1058_v24  ;;  %v1075_v33 = vmul.f32 %v1058_v24, %v4422_v52  ;;  %v1196_v52 = vld [vmem:[%s5264_s18 + $0x40] sm:$0xff]  ;;  %v1178_v8 = vld [vmem:[%s5263_s17 + $0x30] sm:$0xff]  ;;  %1446 = vmatpush.msrb.mxu1 %v4603_v20  ;;  %s3897_s18 = smov 8  }
 0x3cd   :  { %v4625_v24 = vld [vmem:[%s5266_s20 + $0x40] sm:$0xff] }
 0x3ce   :  { %v1063_v14 = vmul.f32 %v3596_v5, %v1062_v11  ;;  %v4564_v11 = vld [vmem:[%s5266_s20 + $0x38] sm:$0xff]  ;;  %1447 = vmatpush.msrb.mxu1 %v4614_v22 }
 0x3cf   :  { %1369 = vmatpush.msrb.mxu0 %v4564_v11  ;;  %1469 = vmatpush.msrb.mxu2 %v4564_v11 }
 0x3d0   :  { %v1064_v18 = vadd.f32 %v3596_v5, %v1063_v14  ;;  %v1187_v14 = vld [vmem:[%s5263_s17 + $0x78] sm:$0xff]  ;;  %1448 = vmatpush.msrb.mxu1 %v4625_v24 }
 0x3d1   :  { %1370 = vmatpush.msrb.mxu0 %v4589_v17  ;;  %1470 = vmatpush.msrb.mxu2 %v4589_v17 }
 0x3d2   :  { %v1068_v23 = vsel %vm1067_vm3, %v3596_v5, %v1064_v18  ;;  %v1184_v5 = vld [vmem:[%s5263_s17 + $0x60] sm:$0xff]  ;;  %v4594_v18 = vld [vmem:[%s5266_s20 + $0x18] sm:$0xff] }
 0x3d3   :  { %v1073_v27 = vsel %vm1070_vm6, %v1072_v25, %v1068_v23  ;;  %1371 = vmatpush.msrb.mxu0 %v4594_v18  ;;  %1471 = vmatpush.msrb.mxu2 %v4594_v18  ;;  %v1179_v23 = vld [vmem:[%s5263_s17 + $0x38] sm:$0xff]  ;;  %v1177_v25 = vld [vmem:[%s5263_s17 + $0x28] sm:$0xff] }
 0x3d4   :  { %v1078_v30 = vsub.f32 1.0, %v1073_v27  ;;  %v1076_v31 = vmul.f32 %v1073_v27, %v4424_v53  ;;  %v1141_v53 = vld [vmem:[%s5262_s16 + $0x8] sm:$0xff]  ;;  %v4640_v27 = vld [vmem:[%s5266_s20 + $0x30] sm:$0xff] }
 0x3d5   :  { %1449 = vmatpush.msrb.mxu1 %v4640_v27 }
 0x40c   :  { %v1082_v26 = vpop.permute.xlu2 %1081 }
 0x40d   :  { %v1087_v29 = vmul.f32 %v1082_v26, %v1077_v28  ;;  %v4635_v26 = vld [vmem:[%s5266_s20 + $0x8] sm:$0xff]  ;;  %v1175_v28 = vld [vmem:[%s5263_s17 + $0x18] sm:$0xff] }
 0x40e   :  { %1372 = vmatpush.msrb.mxu0 %v4635_v26  ;;  %1472 = vmatpush.msrb.mxu2 %v4635_v26 }
 0x40f   :  { %v1089_v35 = vadd.f32 %v1087_v29, %v1075_v33  ;;  %1373 = vmatmul.f32.vlgmr.msrb.gmra.mxu0 %v3891_v55  ;;  %v4651_v29 = vld [vmem:[%s5266_s20 + $0x20] sm:$0xff] }
 0x410   :  { %1450 = vmatpush.msrb.mxu1 %v4651_v29  ;;  %1577 = vmatpush.msra.mxu0 %v4451_v39  ;;  %v4670_v33 = vld [vmem:[%s5266_s20] sm:$0xff] }
 0x411   :  { %1689 = vmatpush.msra.mxu2 %v4451_v39 }
 0x412   :  { %1578 = vmatpush.msra.mxu0 %v4457_v40 }
 0x413   :  { %1690 = vmatpush.msra.mxu2 %v4457_v40 }
 0x414   :  { %1579 = vmatpush.msra.mxu0 %v4518_v62 }
 0x415   :  { %1691 = vmatpush.msra.mxu2 %v4518_v62 }
 0x416   :  { %1580 = vmatpush.msra.mxu0 %v4537_v2 }
 0x417   :  { %1692 = vmatpush.msra.mxu2 %v4537_v2 }
 0x418   :  { %1581 = vmatpush.msra.mxu0 %v4564_v11 }
 0x419   :  { %1693 = vmatpush.msra.mxu2 %v4564_v11 }
 0x41a   :  { %1582 = vmatpush.msra.mxu0 %v4589_v17 }
 0x41b   :  { %1694 = vmatpush.msra.mxu2 %v4589_v17 }
 0x41c   :  { %1583 = vmatpush.msra.mxu0 %v4594_v18 }
 0x41d   :  { %1695 = vmatpush.msra.mxu2 %v4594_v18 }
 0x41e   :  { %1584 = vmatpush.msra.mxu0 %v4635_v26 }
 0x41f   :  { %1696 = vmatpush.msra.mxu2 %v4635_v26 }
 0x420   :  { %1801 = vmatpush.msrb.mxu0 %v4451_v39 }
 0x422   :  { %1802 = vmatpush.msrb.mxu0 %v4457_v40 }
 0x424   :  { %1803 = vmatpush.msrb.mxu0 %v4518_v62 }
 0x426   :  { %1804 = vmatpush.msrb.mxu0 %v4537_v2 }
 0x428   :  { %1805 = vmatpush.msrb.mxu0 %v4564_v11 }
 0x42a   :  { %1806 = vmatpush.msrb.mxu0 %v4589_v17 }
 0x42c   :  { %v1084_v32 = vpop.permute.xlu0 %1083  ;;  %1807 = vmatpush.msrb.mxu0 %v4594_v18 }
 0x42d   :  { %v1088_v34 = vmul.f32 %v1084_v32, %v1078_v30  ;;  %v1173_v30 = vld [vmem:[%s5263_s17 + $0x8] sm:$0xff]  ;;  %v4662_v32 = vld [vmem:[%s5266_s20 + $0x10] sm:$0xff] }
 0x42e   :  { %1451 = vmatpush.msrb.mxu1 %v4662_v32  ;;  %1808 = vmatpush.msrb.mxu0 %v4635_v26 }
 0x42f   :  { %v1090_v36 = vadd.f32 %v1088_v34, %v1076_v31 }
 0x430   :  { %1452 = vmatpush.msrb.mxu1 %v4670_v33 }
 0x431   :  { %v1091_v37 = vpack.c.bf16 %v1090_v36, %v1089_v35 }
 0x432   :  { %1669 = vmatpush.msra.mxu1 %v4584_v16 }
 0x433   :  { %1103 = vrot.lane.b32.xlu1 %v1091_v37, %s3893_s12 }
 0x434   :  { %1670 = vmatpush.msra.mxu1 %v4603_v20 }
 0x436   :  { %1671 = vmatpush.msra.mxu1 %v4614_v22 }
 0x438   :  { %1672 = vmatpush.msra.mxu1 %v4625_v24 }
 0x43a   :  { %1673 = vmatpush.msra.mxu1 %v4640_v27 }
 0x43c   :  { %1674 = vmatpush.msra.mxu1 %v4651_v29 }
 0x43e   :  { %1675 = vmatpush.msra.mxu1 %v4662_v32 }
 0x440   :  { %1676 = vmatpush.msra.mxu1 %v4670_v33 }
 0x4a5   :  { %v1104_v38 = vpop.permute.xlu1 %1103 }
 0x4a6   :  { %3457 = vmatmul.msk.bf16.vlgmr.msra.gmra.mxu3 %vm904_vm4, %v1104_v38  ;;  %vm1142_vm4 = vcmask 130048   ;;  %v1308_v38 = vld [vmem:[%s5265_s19] sm:$0x3]  ;;  %s3894_s19 = smov 64  }
 0x529   :  { %v1135_v41 = vpop.f32.mrf.mxu3 }
 0x52a   :  { %v4467_v46 = vadd.f32 %v3580_v43, %v1135_v41 }
 0x531   :  { %v1137_v44 = vpop.f32.mrf.mxu3 }
 0x532   :  { %v4465_v45 = vadd.f32 %v3580_v43, %v1137_v44  ;;  %v1310_v43 = vperm.slane %v1308_v38, 0 }
 0x534   :  { %1163 = vmatpush.msrb.mxu3 %v4465_v45 }
 0x536   :  { %1164 = vmatpush.msrb.mxu3 %v4467_v46 }
 0x537   :  { %3458 = vmatmul.msk.f32.vlgmr.msrb.gmra.mxu3 %vm1142_vm4, %v1140_v47 }
 0x538   :  { %1218 = vmatpush.msra.mxu3 %v1202_v48 }
 0x53a   :  { %1219 = vmatpush.msra.mxu3 %v1200_v50 }
 0x53c   :  { %1220 = vmatpush.msra.mxu3 %v1198_v51  ;;  %v1311_v51 = vperm.slane %v1308_v38, 1 }
 0x53e   :  { %1221 = vmatpush.msra.mxu3 %v1196_v52 }
 0x53f   :  { %3459 = vmatmul.msk.f32.gmra.mxu3 %vm1142_vm4, %v1141_v53 }
 0x540   :  { %1222 = vmatpush.msra.mxu3 %v1194_v54 }
 0x542   :  { %1223 = vmatpush.msra.mxu3 %v1192_v56 }
 0x544   :  { %1224 = vmatpush.msra.mxu3 %v1190_v57 }
 0x546   :  { %1225 = vmatpush.msra.mxu3 %v1188_v58 }
 0x548   :  { %1241 = vmatpush.msrb.mxu3 %v1203_v59 }
 0x54a   :  { %1242 = vmatpush.msrb.mxu3 %v1201_v60 }
 0x54c   :  { %1243 = vmatpush.msrb.mxu3 %v1199_v61 }
 0x54e   :  { %1244 = vmatpush.msrb.mxu3 %v1197_v49 }
 0x550   :  { %1245 = vmatpush.msrb.mxu3 %v1195_v63 }
 0x552   :  { %1246 = vmatpush.msrb.mxu3 %v1193_v0  ;;  %v1374_v0 = vpop.f32.mrf.mxu0 }
 0x554   :  { %1247 = vmatpush.msrb.mxu3 %v1191_v42 }
 0x556   :  { %1248 = vmatpush.msrb.mxu3 %v1189_v1 }
 0x5ba   :  { %v1166_v4 = vpop.f32.mrf.mxu3 }
 0x5bb   :  { %3460 = vmatmul.msk.f32.vlgmr.msra.gmra.mxu3 %vm409_vm2, %v1166_v4 }
 0x5bc   :  { %1270 = vmatpush.msra.mxu3 %v1186_v3 }
 0x5be   :  { %1271 = vmatpush.msra.mxu3 %v1184_v5 }
 0x5c0   :  { %1272 = vmatpush.msra.mxu3 %v1182_v6 }
 0x5c2   :  { %v1169_v9 = vpop.f32.mrf.mxu3  ;;  %1273 = vmatpush.msra.mxu3 %v1180_v7 }
 0x5c3   :  { %3461 = vmatmul.msk.f32.gmra.mxu3 %vm409_vm2, %v1169_v9 }
 0x5c4   :  { %1274 = vmatpush.msra.mxu3 %v1178_v8 }
 0x5c6   :  { %1275 = vmatpush.msra.mxu3 %v1176_v10 }
 0x5c8   :  { %1276 = vmatpush.msra.mxu3 %v1174_v12 }
 0x5ca   :  { %1277 = vmatpush.msra.mxu3 %v1172_v13 }
 0x5cb   :  { %3462 = vmatmul.msk.f32.vlgmr.msrb.gmra.mxu3 %vm409_vm2, %v1166_v4 }
 0x5cc   :  { %1293 = vmatpush.msrb.mxu3 %v1187_v14 }
 0x5ce   :  { %1294 = vmatpush.msrb.mxu3 %v1185_v15 }
 0x5d0   :  { %1295 = vmatpush.msrb.mxu3 %v1183_v19 }
 0x5d2   :  { %1296 = vmatpush.msrb.mxu3 %v1181_v21 }
 0x5d3   :  { %3463 = vmatmul.msk.f32.gmra.mxu3 %vm409_vm2, %v1169_v9 }
 0x5d4   :  { %1297 = vmatpush.msrb.mxu3 %v1179_v23 }
 0x5d6   :  { %1298 = vmatpush.msrb.mxu3 %v1177_v25 }
 0x5d8   :  { %1299 = vmatpush.msrb.mxu3 %v1175_v28 }
 0x5da   :  { %1300 = vmatpush.msrb.mxu3 %v1173_v30 }
 0x5db   :  { %3464 = vmatmul.msk.f32.vlgmr.msra.gmra.mxu3 %vm409_vm2, %v4467_v46 }
 0x5dc   :  { %1345 = vmatpush.msra.mxu3 %v4584_v16 }
 0x5de   :  { %1346 = vmatpush.msra.mxu3 %v4603_v20 }
 0x5e0   :  { %1347 = vmatpush.msra.mxu3 %v4614_v22 }
 0x5e2   :  { %1348 = vmatpush.msra.mxu3 %v4625_v24 }
 0x5e3   :  { %3465 = vmatmul.msk.f32.gmra.mxu3 %vm409_vm2, %v4465_v45 }
 0x5e4   :  { %1349 = vmatpush.msra.mxu3 %v4640_v27 }
 0x5e6   :  { %1350 = vmatpush.msra.mxu3 %v4651_v29 }
 0x5e8   :  { %1351 = vmatpush.msra.mxu3 %v4662_v32 }
 0x5ea   :  { %1352 = vmatpush.msra.mxu3 %v4670_v33 }
 0x5eb   :  { %3466 = vmatmul.msk.f32.vlgmr.msrb.gmra.mxu3 %vm409_vm2, %v4467_v46 }
 0x5ec   :  { %1557 = vmatpush.msrb.mxu3 %v4584_v16 }
 0x5ee   :  { %1558 = vmatpush.msrb.mxu3 %v4603_v20 }
 0x5f0   :  { %1559 = vmatpush.msrb.mxu3 %v4614_v22 }
 0x5f2   :  { %1560 = vmatpush.msrb.mxu3 %v4625_v24 }
 0x5f3   :  { %3467 = vmatmul.msk.f32.gmra.mxu3 %vm409_vm2, %v4465_v45 }
 0x5f4   :  { %1561 = vmatpush.msrb.mxu3 %v4640_v27 }
 0x5f6   :  { %1562 = vmatpush.msrb.mxu3 %v4651_v29 }
 0x5f8   :  { %1563 = vmatpush.msrb.mxu3 %v4662_v32 }
 0x5fa   :  { %1564 = vmatpush.msrb.mxu3 %v4670_v33 }
 0x5fb   :  { %1353 = vmatmul.f32.vlgmr.msra.gmra.mxu3 %v3891_v55 }
 0x5fc   :  { %1781 = vmatpush.msra.mxu3 %v4584_v16 }
 0x5fe   :  { %1782 = vmatpush.msra.mxu3 %v4603_v20 }
 0x600   :  { %1783 = vmatpush.msra.mxu3 %v4614_v22 }
 0x602   :  { %1784 = vmatpush.msra.mxu3 %v4625_v24 }
 0x604   :  { %1785 = vmatpush.msra.mxu3 %v4640_v27 }
 0x606   :  { %1786 = vmatpush.msra.mxu3 %v4651_v29 }
 0x608   :  { %1787 = vmatpush.msra.mxu3 %v4662_v32 }
 0x60a   :  { %1788 = vmatpush.msra.mxu3 %v4670_v33 }
 0x63e   :  { %v1227_v31 = vpop.f32.mrf.mxu3 }
 0x646   :  { %v1230_v34 = vpop.f32.mrf.mxu3 }
 0x64e   :  { %v1250_v35 = vpop.f32.mrf.mxu3 }
 0x656   :  { %v1253_v36 = vpop.f32.mrf.mxu3 }
 0x65e   :  { %v1279_v37 = vpop.f32.mrf.mxu3 }
 0x65f   :  { %v1280_v53 = vadd.f32 %v1279_v37, %v1227_v31 }
 0x661   :  { %v4742_v56 = vadd.f32 %v1310_v43, %v1280_v53 }
 0x666   :  { %v1282_v41 = vpop.f32.mrf.mxu3 }
 0x667   :  { %v1283_v44 = vadd.f32 %v1282_v41, %v1230_v34 }
 0x669   :  { %v4738_v47 = vadd.f32 %v1310_v43, %v1283_v44 }
 0x66e   :  { %v1302_v48 = vpop.f32.mrf.mxu3 }
 0x66f   :  { %v1303_v61 = vadd.f32 %v1302_v48, %v1250_v35 }
 0x671   :  { %v4745_v63 = vadd.f32 %v1311_v51, %v1303_v61 }
 0x673   :  { %v1378_v1 = vadd.f32 %v1374_v0, %v4745_v63 }
 0x675   :  { %v3469_v15 = vmul.f32 -1.442695, %v1378_v1 }
 0x676   :  { %v1305_v50 = vpop.f32.mrf.mxu3 }
 0x677   :  { %v1306_v52 = vadd.f32 %v1305_v50, %v1253_v36 }
 0x679   :  { %v4740_v54 = vadd.f32 %v1311_v51, %v1306_v52 }
 0x67e   :  { %v1354_v57 = vpop.f32.mrf.mxu3 }
 0x67f   :  { %v1377_v58 = vadd.f32 %v1354_v57, %v4742_v56 }
 0x681   :  { %v3468_v59 = vmul.f32 -1.442695, %v1377_v58 }
 0x683   :  { %3597 = vpow2.f32 %v3468_v59 }
 0x689   :  { %v3598_v60 = vpop.eup %3597 }
 0x68a   :  { %v1385_v49 = vadd.f32 1.0, %v3598_v60 }
 0x68c   :  { %3599 = vrcp.f32 %v1385_v49  ;;  %v1398_v5 = vand.u32 2147483648, %v1385_v49  ;;  %v1396_v7 = vand.u32 2147483647, %v1385_v49  ;;  %vm1392_vm8 = vweird.f32 %v1385_v49 }
 0x68d   :  { %3601 = vtanh.f32 %v1378_v1 }
 0x68e   :  { %v1399_v9 = vor.u32 1.1754944e-38, %v1398_v5  ;;  %vm1397_vm10 = vcmp.eq.f32.partialorder %v1396_v7, 8.507059e+37  ;;  %3603 = vpow2.f32 %v3469_v15 }
 0x692   :  { %v3600_v42 = vpop.eup %3599 }
 0x693   :  { %v1388_v3 = vmul.f32 %v3600_v42, %v1385_v49  ;;  %vm1393_vm7 = vweird.f32 %v3600_v42  ;;  %v3602_v12 = vpop.eup %3601 }
 0x694   :  { %vm1394_vm9 = vmor %vm1392_vm8, %vm1393_vm7  ;;  %v3604_v19 = vpop.eup %3603 }
 0x695   :  { %v1389_v4 = vsub.f32 1.0, %v1388_v3  ;;  %v1386_v21 = vadd.f32 1.0, %v3604_v19 }
 0x697   :  { %v1390_v6 = vmul.f32 %v3600_v42, %v1389_v4  ;;  %3605 = vrcp.f32 %v1386_v21  ;;  %v1413_v37 = vand.u32 2147483648, %v1386_v21  ;;  %vm1407_vm12 = vweird.f32 %v1386_v21 }
 0x698   :  { %v1411_v38 = vand.u32 2147483647, %v1386_v21 }
 0x699   :  { %v1391_v8 = vadd.f32 %v3600_v42, %v1390_v6  ;;  %v1414_v43 = vor.u32 1.1754944e-38, %v1413_v37 }
 0x69a   :  { %vm1412_vm14 = vcmp.eq.f32.partialorder %v1411_v38, 8.507059e+37 }
 0x69b   :  { %v1395_v10 = vsel %vm1394_vm9, %v3600_v42, %v1391_v8 }
 0x69c   :  { %v1400_v13 = vsel %vm1397_vm10, %v1399_v9, %v1395_v10 }
 0x69d   :  { %v1419_v14 = vmul.f32 %v3602_v12, %v1400_v13  ;;  %v3606_v23 = vpop.eup %3605  ;;  %v1418_v31 = vmul.f32 0.0, %v1400_v13 }
 0x69e   :  { %v1403_v25 = vmul.f32 %v3606_v23, %v1386_v21  ;;  %vm1408_vm11 = vweird.f32 %v3606_v23 }
 0x69f   :  { %1421 = vrot.lane.b32.xlu2 %v1419_v14, %s3894_s19  ;;  %vm1409_vm13 = vmor %vm1407_vm12, %vm1408_vm11 }
 0x6a0   :  { %v1404_v28 = vsub.f32 1.0, %v1403_v25 }
 0x6a2   :  { %v1405_v30 = vmul.f32 %v3606_v23, %v1404_v28 }
 0x6a4   :  { %v1406_v36 = vadd.f32 %v3606_v23, %v1405_v30 }
 0x6a6   :  { %v1410_v41 = vsel %vm1409_vm13, %v3606_v23, %v1406_v36 }
 0x6a7   :  { %v1415_v48 = vsel %vm1412_vm14, %v1414_v43, %v1410_v41 }
 0x6f9   :  { %v1422_v34 = vpop.permute.xlu2 %1421 }
 0x6fa   :  { %v4749_v35 = vadd.f32 %v1422_v34, %v1418_v31 }
 0x6fc   :  { %3607 = vtanh.f32 %v4749_v35  ;;  %v1525_v9 = vrot.slane %v4749_v35, 6 }
 0x702   :  { %v3608_v44 = vpop.eup %3607 }
 0x703   :  { %v1426_v50 = vmul.f32 %v3608_v44, %v1415_v48 }
 0x705   :  { %1428 = vrot.lane.b32.xlu0 %v1426_v50, %s3894_s19 }
 0x777   :  { %v1429_v51 = vpop.permute.xlu0 %1428 }
 0x778   :  { %3470 = vmatmul.msk.f32.vlgmr.msrb.gmra.mxu1 %vm409_vm2, %v1429_v51  ;;  %3471 = vmatmul.msk.f32.vlgmr.msrb.gmra.mxu2 %vm409_vm2, %v1429_v51  ;;  %1432 = vst.msk [vmem:[#allocation2] sm:$0x3] %vm1431_vm15, %v1429_v51 }
 0x779   :  { %1882 = vmatpush.msrb.mxu1 %v4584_v16  ;;  %1902 = vmatpush.msrb.mxu2 %v4451_v39  ;;  %1434 = vst.msk [vmem:[#allocation2 + $0xe] sm:$0x3] %vm1433_vm0, %v1429_v51 }
 0x77b   :  { %1883 = vmatpush.msrb.mxu1 %v4603_v20  ;;  %1903 = vmatpush.msrb.mxu2 %v4457_v40 }
 0x77d   :  { %1884 = vmatpush.msrb.mxu1 %v4614_v22  ;;  %1904 = vmatpush.msrb.mxu2 %v4518_v62 }
 0x77f   :  { %1885 = vmatpush.msrb.mxu1 %v4625_v24  ;;  %1905 = vmatpush.msrb.mxu2 %v4537_v2 }
 0x781   :  { %1886 = vmatpush.msrb.mxu1 %v4640_v27  ;;  %1906 = vmatpush.msrb.mxu2 %v4564_v11 }
 0x783   :  { %1887 = vmatpush.msrb.mxu1 %v4651_v29  ;;  %1907 = vmatpush.msrb.mxu2 %v4589_v17 }
 0x785   :  { %1888 = vmatpush.msrb.mxu1 %v4662_v32  ;;  %1908 = vmatpush.msrb.mxu2 %v4594_v18 }
 0x787   :  { %1889 = vmatpush.msrb.mxu1 %v4670_v33  ;;  %1909 = vmatpush.msrb.mxu2 %v4635_v26 }
 0x7f5   :  { %v1454_v52 = vpop.f32.mrf.mxu1 }
 0x7f6   :  { %v1479_v53 = vrot.slane %v1454_v52, 6 }
 0x7f8   :  { %v1483_v57 = vadd.f32 %v1479_v53, %v4742_v56 }
 0x7fa   :  { %v3472_v58 = vmul.f32 -1.442695, %v1483_v57 }
 0x7fb   :  { %v1474_v61 = vpop.f32.mrf.mxu2 }
 0x7fc   :  { %3609 = vpow2.f32 %v3472_v58  ;;  %v1480_v49 = vrot.slane %v1474_v61, 6 }
 0x7fe   :  { %v1484_v42 = vadd.f32 %v1480_v49, %v4745_v63 }
 0x800   :  { %v3473_v19 = vmul.f32 -1.442695, %v1484_v42 }
 0x802   :  { %v3610_v59 = vpop.eup %3609 }
 0x803   :  { %v1491_v60 = vadd.f32 1.0, %v3610_v59 }
 0x805   :  { %3611 = vrcp.f32 %v1491_v60  ;;  %v1504_v4 = vand.u32 2147483648, %v1491_v60  ;;  %v1502_v6 = vand.u32 2147483647, %v1491_v60  ;;  %vm1498_vm3 = vweird.f32 %v1491_v60 }
 0x806   :  { %3613 = vtanh.f32 %v1484_v42 }
 0x807   :  { %v1505_v8 = vor.u32 1.1754944e-38, %v1504_v4  ;;  %vm1503_vm6 = vcmp.eq.f32.partialorder %v1502_v6, 8.507059e+37  ;;  %3615 = vpow2.f32 %v3473_v19 }
 0x80b   :  { %v3612_v0 = vpop.eup %3611 }
 0x80c   :  { %v1494_v1 = vmul.f32 %v3612_v0, %v1491_v60  ;;  %vm1499_vm1 = vweird.f32 %v3612_v0  ;;  %v3614_v12 = vpop.eup %3613 }
 0x80d   :  { %vm1500_vm5 = vmor %vm1498_vm3, %vm1499_vm1  ;;  %v3616_v21 = vpop.eup %3615 }
 0x80e   :  { %v1495_v3 = vsub.f32 1.0, %v1494_v1  ;;  %v1492_v23 = vadd.f32 1.0, %v3616_v21 }
 0x810   :  { %v1496_v5 = vmul.f32 %v3612_v0, %v1495_v3  ;;  %3617 = vrcp.f32 %v1492_v23  ;;  %v1519_v37 = vand.u32 2147483648, %v1492_v23  ;;  %vm1513_vm8 = vweird.f32 %v1492_v23 }
 0x811   :  { %v1517_v38 = vand.u32 2147483647, %v1492_v23 }
 0x812   :  { %v1497_v7 = vadd.f32 %v3612_v0, %v1496_v5  ;;  %v1520_v43 = vor.u32 1.1754944e-38, %v1519_v37 }
 0x813   :  { %vm1518_vm10 = vcmp.eq.f32.partialorder %v1517_v38, 8.507059e+37 }
 0x814   :  { %v1501_v10 = vsel %vm1500_vm5, %v3612_v0, %v1497_v7 }
 0x815   :  { %v1506_v13 = vsel %vm1503_vm6, %v1505_v8, %v1501_v10 }
 0x816   :  { %v1528_v14 = vmul.f32 %v3614_v12, %v1506_v13  ;;  %v1527_v15 = vmul.f32 %v1525_v9, %v1506_v13  ;;  %v3618_v25 = vpop.eup %3617 }
 0x817   :  { %v1509_v28 = vmul.f32 %v3618_v25, %v1492_v23  ;;  %vm1514_vm7 = vweird.f32 %v3618_v25 }
 0x818   :  { %1530 = vrot.lane.b32.xlu1 %v1528_v14, %s3894_s19  ;;  %vm1515_vm9 = vmor %vm1513_vm8, %vm1514_vm7 }
 0x819   :  { %v1510_v30 = vsub.f32 1.0, %v1509_v28 }
 0x81b   :  { %v1511_v31 = vmul.f32 %v3618_v25, %v1510_v30 }
 0x81d   :  { %v1512_v35 = vadd.f32 %v3618_v25, %v1511_v31 }
 0x81f   :  { %v1516_v41 = vsel %vm1515_vm9, %v3618_v25, %v1512_v35 }
 0x820   :  { %v1521_v48 = vsel %vm1518_vm10, %v1520_v43, %v1516_v41 }
 0x88a   :  { %v1531_v34 = vpop.permute.xlu1 %1530 }
 0x88b   :  { %v4777_v36 = vadd.f32 %v1531_v34, %v1527_v15 }
 0x88d   :  { %3619 = vtanh.f32 %v4777_v36  ;;  %v1637_v10 = vrot.slane %v4777_v36, 6 }
 0x893   :  { %v3620_v44 = vpop.eup %3619 }
 0x894   :  { %v4780_v50 = vmul.f32 %v3620_v44, %v1521_v48 }
 0x896   :  { %v1544_v51 = vrot.slane %v4780_v50, 2 }
 0x898   :  { %1545 = vrot.lane.b32.xlu2 %v1544_v51, %s3894_s19 }
 0x8f2   :  { %v1546_v52 = vpop.permute.xlu2 %1545 }
 0x8f3   :  { %3474 = vmatmul.msk.f32.vlgmr.msrb.gmra.mxu3 %vm409_vm2, %v1546_v52  ;;  %3475 = vmatmul.msk.f32.vlgmr.msra.gmra.mxu0 %vm409_vm2, %v1546_v52 }
 0x8f4   :  { %1992 = vmatpush.msrb.mxu3 %v4584_v16  ;;  %2012 = vmatpush.msra.mxu0 %v4451_v39 }
 0x8f6   :  { %1993 = vmatpush.msrb.mxu3 %v4603_v20  ;;  %2013 = vmatpush.msra.mxu0 %v4457_v40 }
 0x8f8   :  { %1994 = vmatpush.msrb.mxu3 %v4614_v22  ;;  %2014 = vmatpush.msra.mxu0 %v4518_v62 }
 0x8fa   :  { %1995 = vmatpush.msrb.mxu3 %v4625_v24  ;;  %2015 = vmatpush.msra.mxu0 %v4537_v2 }
 0x8fc   :  { %1996 = vmatpush.msrb.mxu3 %v4640_v27  ;;  %2016 = vmatpush.msra.mxu0 %v4564_v11 }
 0x8fe   :  { %1997 = vmatpush.msrb.mxu3 %v4651_v29  ;;  %2017 = vmatpush.msra.mxu0 %v4589_v17 }
 0x900   :  { %1998 = vmatpush.msrb.mxu3 %v4662_v32  ;;  %2018 = vmatpush.msra.mxu0 %v4594_v18 }
 0x902   :  { %1999 = vmatpush.msrb.mxu3 %v4670_v33  ;;  %2019 = vmatpush.msra.mxu0 %v4635_v26 }
 0x970   :  { %v1586_v49 = vpop.f32.mrf.mxu0 }
 0x971   :  { %v1592_v0 = vrot.slane %v1586_v49, 4 }
 0x973   :  { %v1596_v1 = vadd.f32 %v1592_v0, %v4745_v63 }
 0x975   :  { %v3477_v21 = vmul.f32 -1.442695, %v1596_v1 }
 0x976   :  { %v1566_v53 = vpop.f32.mrf.mxu3 }
 0x977   :  { %v1591_v57 = vrot.slane %v1566_v53, 4 }
 0x979   :  { %v1595_v58 = vadd.f32 %v1591_v57, %v4742_v56 }
 0x97b   :  { %v3476_v59 = vmul.f32 -1.442695, %v1595_v58 }
 0x97d   :  { %3621 = vpow2.f32 %v3476_v59 }
 0x983   :  { %v3622_v60 = vpop.eup %3621 }
 0x984   :  { %v1603_v61 = vadd.f32 1.0, %v3622_v60 }
 0x986   :  { %3623 = vrcp.f32 %v1603_v61  ;;  %v1616_v5 = vand.u32 2147483648, %v1603_v61  ;;  %v1614_v7 = vand.u32 2147483647, %v1603_v61  ;;  %vm1610_vm12 = vweird.f32 %v1603_v61 }
 0x987   :  { %3625 = vtanh.f32 %v1596_v1 }
 0x988   :  { %v1617_v9 = vor.u32 1.1754944e-38, %v1616_v5  ;;  %vm1615_vm14 = vcmp.eq.f32.partialorder %v1614_v7, 8.507059e+37  ;;  %3627 = vpow2.f32 %v3477_v21 }
 0x98c   :  { %v3624_v42 = vpop.eup %3623 }
 0x98d   :  { %v1606_v3 = vmul.f32 %v3624_v42, %v1603_v61  ;;  %vm1611_vm11 = vweird.f32 %v3624_v42  ;;  %v3626_v13 = vpop.eup %3625 }
 0x98e   :  { %vm1612_vm13 = vmor %vm1610_vm12, %vm1611_vm11  ;;  %v3628_v23 = vpop.eup %3627 }
 0x98f   :  { %v1607_v4 = vsub.f32 1.0, %v1606_v3  ;;  %v1604_v25 = vadd.f32 1.0, %v3628_v23 }
 0x991   :  { %v1608_v6 = vmul.f32 %v3624_v42, %v1607_v4  ;;  %3629 = vrcp.f32 %v1604_v25  ;;  %v1631_v38 = vand.u32 2147483648, %v1604_v25  ;;  %vm1625_vm3 = vweird.f32 %v1604_v25 }
 0x992   :  { %v1629_v41 = vand.u32 2147483647, %v1604_v25 }
 0x993   :  { %v1609_v8 = vadd.f32 %v3624_v42, %v1608_v6  ;;  %v1632_v44 = vor.u32 1.1754944e-38, %v1631_v38 }
 0x994   :  { %vm1630_vm6 = vcmp.eq.f32.partialorder %v1629_v41, 8.507059e+37 }
 0x995   :  { %v1613_v12 = vsel %vm1612_vm13, %v3624_v42, %v1609_v8 }
 0x996   :  { %v1618_v14 = vsel %vm1615_vm14, %v1617_v9, %v1613_v12 }
 0x997   :  { %v1640_v15 = vmul.f32 %v3626_v13, %v1618_v14  ;;  %v1639_v19 = vmul.f32 %v1637_v10, %v1618_v14  ;;  %v3630_v28 = vpop.eup %3629 }
 0x998   :  { %v1621_v30 = vmul.f32 %v3630_v28, %v1604_v25  ;;  %vm1626_vm1 = vweird.f32 %v3630_v28 }
 0x999   :  { %1642 = vrot.lane.b32.xlu0 %v1640_v15, %s3894_s19  ;;  %vm1627_vm5 = vmor %vm1625_vm3, %vm1626_vm1 }
 0x99a   :  { %v1622_v31 = vsub.f32 1.0, %v1621_v30 }
 0x99c   :  { %v1623_v34 = vmul.f32 %v3630_v28, %v1622_v31 }
 0x99e   :  { %v1624_v36 = vadd.f32 %v3630_v28, %v1623_v34 }
 0x9a0   :  { %v1628_v43 = vsel %vm1627_vm5, %v3630_v28, %v1624_v36 }
 0x9a1   :  { %v1633_v51 = vsel %vm1630_vm6, %v1632_v44, %v1628_v43 }
 0xa0b   :  { %v1643_v35 = vpop.permute.xlu0 %1642 }
 0xa0c   :  { %v4806_v37 = vadd.f32 %v1643_v35, %v1639_v19 }
 0xa0e   :  { %3631 = vtanh.f32 %v4806_v37  ;;  %v1749_v58 = vrot.slane %v4806_v37, 6 }
 0xa14   :  { %v3632_v48 = vpop.eup %3631 }
 0xa15   :  { %v4809_v52 = vmul.f32 %v3632_v48, %v1633_v51 }
 0xa17   :  { %v1656_v53 = vrot.slane %v4809_v52, 4 }
 0xa19   :  { %1657 = vrot.lane.b32.xlu1 %v1656_v53, %s3894_s19 }
 0xa8b   :  { %v1658_v57 = vpop.permute.xlu1 %1657 }
 0xa8c   :  { %3478 = vmatmul.msk.f32.vlgmr.msra.gmra.mxu1 %vm409_vm2, %v1658_v57  ;;  %3479 = vmatmul.msk.f32.vlgmr.msra.gmra.mxu2 %vm409_vm2, %v1658_v57 }
 0xa8d   :  { %2102 = vmatpush.msra.mxu1 %v4584_v16  ;;  %2122 = vmatpush.msra.mxu2 %v4451_v39 }
 0xa8f   :  { %2103 = vmatpush.msra.mxu1 %v4603_v20  ;;  %2123 = vmatpush.msra.mxu2 %v4457_v40 }
 0xa91   :  { %2104 = vmatpush.msra.mxu1 %v4614_v22  ;;  %2124 = vmatpush.msra.mxu2 %v4518_v62 }
 0xa93   :  { %2105 = vmatpush.msra.mxu1 %v4625_v24  ;;  %2125 = vmatpush.msra.mxu2 %v4537_v2 }
 0xa95   :  { %2106 = vmatpush.msra.mxu1 %v4640_v27  ;;  %2126 = vmatpush.msra.mxu2 %v4564_v11 }
 0xa97   :  { %2107 = vmatpush.msra.mxu1 %v4651_v29  ;;  %2127 = vmatpush.msra.mxu2 %v4589_v17 }
 0xa99   :  { %2108 = vmatpush.msra.mxu1 %v4662_v32  ;;  %2128 = vmatpush.msra.mxu2 %v4594_v18 }
 0xa9b   :  { %2109 = vmatpush.msra.mxu1 %v4670_v33  ;;  %2129 = vmatpush.msra.mxu2 %v4635_v26 }
 0xb09   :  { %v1678_v39 = vpop.f32.mrf.mxu1 }
 0xb0a   :  { %v1703_v40 = vrot.slane %v1678_v39, 2 }
 0xb0c   :  { %v1707_v62 = vadd.f32 %v1703_v40, %v4742_v56 }
 0xb0e   :  { %v3480_v2 = vmul.f32 -1.442695, %v1707_v62 }
 0xb0f   :  { %v1698_v20 = vpop.f32.mrf.mxu2 }
 0xb10   :  { %3633 = vpow2.f32 %v3480_v2  ;;  %v1704_v22 = vrot.slane %v1698_v20, 2 }
 0xb12   :  { %v1708_v24 = vadd.f32 %v1704_v22, %v4745_v63 }
 0xb14   :  { %v3481_v63 = vmul.f32 -1.442695, %v1708_v24 }
 0xb16   :  { %v3634_v16 = vpop.eup %3633 }
 0xb17   :  { %v1715_v11 = vadd.f32 1.0, %v3634_v16 }
 0xb19   :  { %3635 = vrcp.f32 %v1715_v11  ;;  %v1728_v29 = vand.u32 2147483648, %v1715_v11  ;;  %v1726_v26 = vand.u32 2147483647, %v1715_v11  ;;  %vm1722_vm8 = vweird.f32 %v1715_v11 }
 0xb1a   :  { %3637 = vtanh.f32 %v1708_v24 }
 0xb1b   :  { %v1729_v56 = vor.u32 1.1754944e-38, %v1728_v29  ;;  %vm1727_vm10 = vcmp.eq.f32.partialorder %v1726_v26, 8.507059e+37  ;;  %3639 = vpow2.f32 %v3481_v63 }
 0xb1f   :  { %v3636_v17 = vpop.eup %3635 }
 0xb20   :  { %v1718_v27 = vmul.f32 %v3636_v17, %v1715_v11  ;;  %vm1723_vm7 = vweird.f32 %v3636_v17  ;;  %v3638_v60 = vpop.eup %3637 }
 0xb21   :  { %vm1724_vm9 = vmor %vm1722_vm8, %vm1723_vm7  ;;  %v3640_v42 = vpop.eup %3639 }
 0xb22   :  { %v1719_v18 = vsub.f32 1.0, %v1718_v27  ;;  %v1716_v1 = vadd.f32 1.0, %v3640_v42 }
 0xb24   :  { %v1720_v32 = vmul.f32 %v3636_v17, %v1719_v18  ;;  %3641 = vrcp.f32 %v1716_v1  ;;  %v1743_v10 = vand.u32 2147483648, %v1716_v1  ;;  %vm1737_vm12 = vweird.f32 %v1716_v1 }
 0xb25   :  { %v1741_v12 = vand.u32 2147483647, %v1716_v1 }
 0xb26   :  { %v1721_v33 = vadd.f32 %v3636_v17, %v1720_v32  ;;  %v1744_v14 = vor.u32 1.1754944e-38, %v1743_v10 }
 0xb27   :  { %vm1742_vm14 = vcmp.eq.f32.partialorder %v1741_v12, 8.507059e+37 }
 0xb28   :  { %v1725_v59 = vsel %vm1724_vm9, %v3636_v17, %v1721_v33 }
 0xb29   :  { %v1730_v61 = vsel %vm1727_vm10, %v1729_v56, %v1725_v59 }
 0xb2a   :  { %v1752_v49 = vmul.f32 %v3638_v60, %v1730_v61  ;;  %v1751_v0 = vmul.f32 %v1749_v58, %v1730_v61  ;;  %v3642_v3 = vpop.eup %3641 }
 0xb2b   :  { %v1733_v4 = vmul.f32 %v3642_v3, %v1716_v1  ;;  %vm1738_vm11 = vweird.f32 %v3642_v3 }
 0xb2c   :  { %1754 = vrot.lane.b32.xlu2 %v1752_v49, %s3894_s19  ;;  %vm1739_vm13 = vmor %vm1737_vm12, %vm1738_vm11 }
 0xb2d   :  { %v1734_v5 = vsub.f32 1.0, %v1733_v4 }
 0xb2f   :  { %v1735_v6 = vmul.f32 %v3642_v3, %v1734_v5 }
 0xb31   :  { %v1736_v9 = vadd.f32 %v3642_v3, %v1735_v6 }
 0xb33   :  { %v1740_v13 = vsel %vm1739_vm13, %v3642_v3, %v1736_v9 }
 0xb34   :  { %v1745_v19 = vsel %vm1742_vm14, %v1744_v14, %v1740_v13 }
 0xb86   :  { %v1755_v7 = vpop.permute.xlu2 %1754 }
 0xb87   :  { %v1757_v8 = vadd.f32 %v1755_v7, %v1751_v0 }
 0xb89   :  { %3643 = vtanh.f32 %v1757_v8  ;;  %v1855_v39 = vrot.slane %v1757_v8, 6 }
 0xb8f   :  { %v3644_v15 = vpop.eup %3643 }
 0xb90   :  { %v4835_v21 = vmul.f32 %v3644_v15, %v1745_v19 }
 0xb92   :  { %v1768_v23 = vrot.slane %v4835_v21, 6 }
 0xb94   :  { %1769 = vrot.lane.b32.xlu0 %v1768_v23, %s3894_s19 }
 0xc06   :  { %v1770_v25 = vpop.permute.xlu0 %1769 }
 0xc07   :  { %3482 = vmatmul.msk.f32.vlgmr.msra.gmra.mxu3 %vm409_vm2, %v1770_v25  ;;  %3483 = vmatmul.msk.f32.vlgmr.msrb.gmra.mxu0 %vm409_vm2, %v1770_v25 }
 0xc84   :  { %v1810_v37 = vpop.f32.mrf.mxu0 }
 0xc85   :  { %v1814_v38 = vadd.f32 %v1810_v37, %v4740_v54 }
 0xc87   :  { %v3485_v20 = vmul.f32 -1.442695, %v1814_v38 }
 0xc8a   :  { %v1790_v28 = vpop.f32.mrf.mxu3 }
 0xc8b   :  { %v1813_v30 = vadd.f32 %v1790_v28, %v4738_v47 }
 0xc8d   :  { %v3484_v31 = vmul.f32 -1.442695, %v1813_v30 }
 0xc8f   :  { %3645 = vpow2.f32 %v3484_v31 }
 0xc95   :  { %v3646_v34 = vpop.eup %3645 }
 0xc96   :  { %v1821_v35 = vadd.f32 1.0, %v3646_v34 }
 0xc98   :  { %3647 = vrcp.f32 %v1821_v35  ;;  %v1834_v44 = vand.u32 2147483648, %v1821_v35  ;;  %v1832_v51 = vand.u32 2147483647, %v1821_v35  ;;  %vm1828_vm3 = vweird.f32 %v1821_v35 }
 0xc99   :  { %3649 = vtanh.f32 %v1814_v38 }
 0xc9a   :  { %v1835_v57 = vor.u32 1.1754944e-38, %v1834_v44  ;;  %vm1833_vm6 = vcmp.eq.f32.partialorder %v1832_v51, 8.507059e+37  ;;  %3651 = vpow2.f32 %v3485_v20 }
 0xc9e   :  { %v3648_v36 = vpop.eup %3647 }
 0xc9f   :  { %v1824_v41 = vmul.f32 %v3648_v36, %v1821_v35  ;;  %vm1829_vm1 = vweird.f32 %v3648_v36  ;;  %v3650_v62 = vpop.eup %3649 }
 0xca0   :  { %vm1830_vm5 = vmor %vm1828_vm3, %vm1829_vm1  ;;  %v3652_v22 = vpop.eup %3651 }
 0xca1   :  { %v1825_v43 = vsub.f32 1.0, %v1824_v41  ;;  %v1822_v17 = vadd.f32 1.0, %v3652_v22 }
 0xca3   :  { %v1826_v48 = vmul.f32 %v3648_v36, %v1825_v43  ;;  %3653 = vrcp.f32 %v1822_v17  ;;  %v1849_v56 = vand.u32 2147483648, %v1822_v17  ;;  %vm1843_vm8 = vweird.f32 %v1822_v17 }
 0xca4   :  { %v1847_v58 = vand.u32 2147483647, %v1822_v17 }
 0xca5   :  { %v1827_v53 = vadd.f32 %v3648_v36, %v1826_v48  ;;  %v1850_v60 = vor.u32 1.1754944e-38, %v1849_v56 }
 0xca6   :  { %vm1848_vm10 = vcmp.eq.f32.partialorder %v1847_v58, 8.507059e+37 }
 0xca7   :  { %v1831_v40 = vsel %vm1830_vm5, %v3648_v36, %v1827_v53 }
 0xca8   :  { %v1836_v2 = vsel %vm1833_vm6, %v1835_v57, %v1831_v40 }
 0xca9   :  { %v1858_v16 = vmul.f32 %v3650_v62, %v1836_v2  ;;  %v1857_v11 = vmul.f32 %v1855_v39, %v1836_v2  ;;  %v3654_v24 = vpop.eup %3653 }
 0xcaa   :  { %v1839_v27 = vmul.f32 %v3654_v24, %v1822_v17  ;;  %vm1844_vm7 = vweird.f32 %v3654_v24 }
 0xcab   :  { %1860 = vrot.lane.b32.xlu1 %v1858_v16, %s3894_s19  ;;  %vm1845_vm9 = vmor %vm1843_vm8, %vm1844_vm7 }
 0xcac   :  { %v1840_v18 = vsub.f32 1.0, %v1839_v27 }
 0xcae   :  { %v1841_v29 = vmul.f32 %v3654_v24, %v1840_v18 }
 0xcb0   :  { %v1842_v33 = vadd.f32 %v3654_v24, %v1841_v29 }
 0xcb2   :  { %v1846_v59 = vsel %vm1845_vm9, %v3654_v24, %v1842_v33 }
 0xcb3   :  { %v1851_v49 = vsel %vm1848_vm10, %v1850_v60, %v1846_v59 }
 0xd1d   :  { %v1861_v32 = vpop.permute.xlu1 %1860 }
 0xd1e   :  { %v1863_v26 = vadd.f32 %v1861_v32, %v1857_v11 }
 0xd20   :  { %3655 = vtanh.f32 %v1863_v26  ;;  %v1962_v28 = vrot.slane %v1863_v26, 6 }
 0xd26   :  { %v3656_v61 = vpop.eup %3655 }
 0xd27   :  { %v1865_v0 = vmul.f32 %v3656_v61, %v1851_v49 }
 0xd29   :  { %1867 = vrot.lane.b32.xlu2 %v1865_v0, %s3894_s19 }
 0xd83   :  { %v4845_v63 = vpop.permute.xlu2 %1867 }
 0xd84   :  { %3486 = vmatmul.msk.f32.vlgmr.msrb.gmra.mxu1 %vm409_vm2, %v4845_v63  ;;  %3487 = vmatmul.msk.f32.vlgmr.msrb.gmra.mxu2 %vm409_vm2, %v4845_v63 }
 0xe01   :  { %v1891_v42 = vpop.f32.mrf.mxu1 }
 0xe02   :  { %v1916_v1 = vrot.slane %v1891_v42, 6 }
 0xe04   :  { %v1920_v3 = vadd.f32 %v1916_v1, %v4738_v47 }
 0xe06   :  { %v3488_v4 = vmul.f32 -1.442695, %v1920_v3 }
 0xe07   :  { %v1911_v7 = vpop.f32.mrf.mxu2 }
 0xe08   :  { %3657 = vpow2.f32 %v3488_v4  ;;  %v1917_v8 = vrot.slane %v1911_v7, 6 }
 0xe0a   :  { %v1921_v10 = vadd.f32 %v1917_v8, %v4740_v54 }
 0xe0c   :  { %v3489_v36 = vmul.f32 -1.442695, %v1921_v10 }
 0xe0e   :  { %v3658_v5 = vpop.eup %3657 }
 0xe0f   :  { %v1928_v6 = vadd.f32 1.0, %v3658_v5 }
 0xe11   :  { %3659 = vrcp.f32 %v1928_v6  ;;  %v1941_v14 = vand.u32 2147483648, %v1928_v6  ;;  %v1939_v19 = vand.u32 2147483647, %v1928_v6  ;;  %vm1935_vm12 = vweird.f32 %v1928_v6 }
 0xe12   :  { %3661 = vtanh.f32 %v1921_v10 }
 0xe13   :  { %v1942_v25 = vor.u32 1.1754944e-38, %v1941_v14  ;;  %vm1940_vm14 = vcmp.eq.f32.partialorder %v1939_v19, 8.507059e+37  ;;  %3663 = vpow2.f32 %v3489_v36 }
 0xe17   :  { %v3660_v9 = vpop.eup %3659 }
 0xe18   :  { %v1931_v12 = vmul.f32 %v3660_v9, %v1928_v6  ;;  %vm1936_vm11 = vweird.f32 %v3660_v9  ;;  %v3662_v31 = vpop.eup %3661 }
 0xe19   :  { %vm1937_vm13 = vmor %vm1935_vm12, %vm1936_vm11  ;;  %v3664_v38 = vpop.eup %3663 }
 0xe1a   :  { %v1932_v13 = vsub.f32 1.0, %v1931_v12  ;;  %v1929_v41 = vadd.f32 1.0, %v3664_v38 }
 0xe1c   :  { %v1933_v15 = vmul.f32 %v3660_v9, %v1932_v13  ;;  %3665 = vrcp.f32 %v1929_v41  ;;  %v1956_v40 = vand.u32 2147483648, %v1929_v41  ;;  %vm1950_vm3 = vweird.f32 %v1929_v41 }
 0xe1d   :  { %v1954_v62 = vand.u32 2147483647, %v1929_v41 }
 0xe1e   :  { %v1934_v23 = vadd.f32 %v3660_v9, %v1933_v15  ;;  %v1957_v16 = vor.u32 1.1754944e-38, %v1956_v40 }
 0xe1f   :  { %vm1955_vm6 = vcmp.eq.f32.partialorder %v1954_v62, 8.507059e+37 }
 0xe20   :  { %v1938_v30 = vsel %vm1937_vm13, %v3660_v9, %v1934_v23 }
 0xe21   :  { %v1943_v34 = vsel %vm1940_vm14, %v1942_v25, %v1938_v30  ;;  %vm1540_vm14 = vcmask 257026  }
 0xe22   :  { %v1965_v35 = vmul.f32 %v3662_v31, %v1943_v34  ;;  %v1964_v37 = vmul.f32 %v1962_v28, %v1943_v34  ;;  %v3666_v43 = vpop.eup %3665 }
 0xe23   :  { %v1946_v44 = vmul.f32 %v3666_v43, %v1929_v41  ;;  %vm1951_vm1 = vweird.f32 %v3666_v43 }
 0xe24   :  { %1967 = vrot.lane.b32.xlu0 %v1965_v35, %s3894_s19  ;;  %vm1952_vm5 = vmor %vm1950_vm3, %vm1951_vm1  ;;  %vm1542_vm1 = vcmask 519426  }
 0xe25   :  { %v1947_v48 = vsub.f32 1.0, %v1946_v44 }
 0xe27   :  { %v1948_v51 = vmul.f32 %v3666_v43, %v1947_v48 }
 0xe29   :  { %v1949_v39 = vadd.f32 %v3666_v43, %v1948_v51 }
 0xe2b   :  { %v1953_v2 = vsel %vm1952_vm5, %v3666_v43, %v1949_v39  ;;  %vm1652_vm5 = vcmask 259076  }
 0xe2c   :  { %v1958_v20 = vsel %vm1955_vm6, %v1957_v16, %v1953_v2  ;;  %vm1654_vm6 = vcmask 521476  }
 0xe96   :  { %v1968_v53 = vpop.permute.xlu0 %1967 }
 0xe97   :  { %v1970_v57 = vadd.f32 %v1968_v53, %v1964_v37 }
 0xe99   :  { %3667 = vtanh.f32 %v1970_v57  ;;  %v2072_v5 = vrot.slane %v1970_v57, 6 }
 0xe9f   :  { %v3668_v11 = vpop.eup %3667 }
 0xea0   :  { %v1972_v22 = vmul.f32 %v3668_v11, %v1958_v20 }
 0xea2   :  { %v1979_v17 = vrot.slane %v1972_v22, 2 }
 0xea4   :  { %1980 = vrot.lane.b32.xlu1 %v1979_v17, %s3894_s19 }
 0xf16   :  { %v1981_v24 = vpop.permute.xlu1 %1980 }
 0xf17   :  { %3490 = vmatmul.msk.f32.vlgmr.msrb.gmra.mxu3 %vm409_vm2, %v1981_v24  ;;  %3491 = vmatmul.msk.f32.vlgmr.msra.gmra.mxu0 %vm409_vm2, %v1981_v24 }
 0xf94   :  { %v2021_v56 = vpop.f32.mrf.mxu0 }
 0xf95   :  { %v2027_v58 = vrot.slane %v2021_v56, 4 }
 0xf97   :  { %v2031_v60 = vadd.f32 %v2027_v58, %v4740_v54 }
 0xf99   :  { %v3493_v12 = vmul.f32 -1.442695, %v2031_v60 }
 0xf9a   :  { %v2001_v27 = vpop.f32.mrf.mxu3 }
 0xf9b   :  { %v2026_v18 = vrot.slane %v2001_v27, 4 }
 0xf9d   :  { %v2030_v29 = vadd.f32 %v2026_v18, %v4738_v47 }
 0xf9f   :  { %v3492_v32 = vmul.f32 -1.442695, %v2030_v29 }
 0xfa1   :  { %3669 = vpow2.f32 %v3492_v32 }
 0xfa7   :  { %v3670_v26 = vpop.eup %3669 }
 0xfa8   :  { %v2038_v33 = vadd.f32 1.0, %v3670_v26 }
 0xfaa   :  { %3671 = vrcp.f32 %v2038_v33  ;;  %v2051_v0 = vand.u32 2147483648, %v2038_v33  ;;  %v2049_v1 = vand.u32 2147483647, %v2038_v33  ;;  %vm2045_vm8 = vweird.f32 %v2038_v33 }
 0xfab   :  { %3673 = vtanh.f32 %v2031_v60 }
 0xfac   :  { %v2052_v4 = vor.u32 1.1754944e-38, %v2051_v0  ;;  %vm2050_vm10 = vcmp.eq.f32.partialorder %v2049_v1, 8.507059e+37  ;;  %3675 = vpow2.f32 %v3493_v12  ;;  %v2236_v1 = vld [vmem:[%s5267_s21 + $0x60] sm:$0xff] }
 0xfb0   :  { %v3672_v59 = vpop.eup %3671 }
 0xfb1   :  { %v2041_v61 = vmul.f32 %v3672_v59, %v2038_v33  ;;  %vm2046_vm7 = vweird.f32 %v3672_v59  ;;  %v3674_v7 = vpop.eup %3673 }
 0xfb2   :  { %vm2047_vm9 = vmor %vm2045_vm8, %vm2046_vm7  ;;  %v3676_v13 = vpop.eup %3675 }
 0xfb3   :  { %v2042_v49 = vsub.f32 1.0, %v2041_v61  ;;  %v2039_v14 = vadd.f32 1.0, %v3676_v13 }
 0xfb5   :  { %v2043_v42 = vmul.f32 %v3672_v59, %v2042_v49  ;;  %3677 = vrcp.f32 %v2039_v14  ;;  %v2066_v34 = vand.u32 2147483648, %v2039_v14  ;;  %vm2060_vm12 = vweird.f32 %v2039_v14 }
 0xfb7   :  { %v2044_v3 = vadd.f32 %v3672_v59, %v2043_v42  ;;  %v2067_v37 = vor.u32 1.1754944e-38, %v2066_v34  ;;  %v2238_v42 = vld [vmem:[%s5267_s21 + $0x70] sm:$0xff] }
 0xfb8   :  { %2322 = vmatpush.msrb.mxu2 %v2238_v42  ;;  %v2226_v34 = vld [vmem:[%s5267_s21 + $0x10] sm:$0xff]  ;;  %v4987_v42 = vld [vmem:[#allocation9 + $0x38] sm:$0xff] }
 0xfb9   :  { %v2048_v6 = vsel %vm2047_vm9, %v3672_v59, %v2044_v3  ;;  %v2234_v3 = vld [vmem:[%s5267_s21 + $0x50] sm:$0xff] }
 0xfba   :  { %v2053_v8 = vsel %vm2050_vm10, %v2052_v4, %v2048_v6  ;;  %2323 = vmatpush.msrb.mxu2 %v2236_v1  ;;  %v4989_v1 = vld [vmem:[#allocation9 + $0x20] sm:$0xff] }
 0xfbb   :  { %v2075_v9 = vmul.f32 %v3674_v7, %v2053_v8  ;;  %v2074_v10 = vmul.f32 %v2072_v5, %v2053_v8  ;;  %v3678_v15 = vpop.eup %3677 }
 0xfbc   :  { %v2056_v19 = vmul.f32 %v3678_v15, %v2039_v14  ;;  %vm2061_vm11 = vweird.f32 %v3678_v15  ;;  %2324 = vmatpush.msrb.mxu2 %v2234_v3  ;;  %v4991_v3 = vld [vmem:[#allocation9 + $0x28] sm:$0xff] }
 0xfbd   :  { %2077 = vrot.lane.b32.xlu2 %v2075_v9, %s3894_s19  ;;  %vm2062_vm13 = vmor %vm2060_vm12, %vm2061_vm11 }
 0xfbe   :  { %v2057_v23 = vsub.f32 1.0, %v2056_v19 }
 0xfc0   :  { %v2058_v25 = vmul.f32 %v3678_v15, %v2057_v23 }
 0xfc2   :  { %v2059_v31 = vadd.f32 %v3678_v15, %v2058_v25 }
 0xfc4   :  { %v2063_v35 = vsel %vm2062_vm13, %v3678_v15, %v2059_v31  ;;  %v2228_v31 = vld [vmem:[%s5267_s21 + $0x20] sm:$0xff] }
 0xfc5   :  { %1537 = vrot.lane.b32.xlu2 %v4780_v50, %s3894_s19  ;;  %v2064_v50 = vand.u32 2147483647, %v2039_v14 }
 0xfc7   :  { %vm2065_vm3 = vcmp.eq.f32.partialorder %v2064_v50, 8.507059e+37 }
 0xfc8   :  { %v2068_v41 = vsel %vm2065_vm3, %v2067_v37, %v2063_v35  ;;  %vm1764_vm3 = vcmask 261126   ;;  %v2254_v35 = vld [vmem:[#allocation8 + $0x70] sm:$0xff]  ;;  %v2255_v37 = vld [vmem:[#allocation8 + $0x78] sm:$0xff] }
 0xfc9   :  { %2270 = vmatpush.msrb.mxu0 %v2254_v35  ;;  %2293 = vmatpush.msrb.mxu1 %v2255_v37 }
 0xfcd   :  { %1974 = vrot.lane.b32.xlu2 %v1972_v22, %s3894_s19 }
0x1017   :  { %v2078_v28 = vpop.permute.xlu2 %2077 }
0x1018   :  { %v4863_v30 = vadd.f32 %v2078_v28, %v2074_v10 }
0x101a   :  { %3679 = vtanh.f32 %v4863_v30  ;;  %v2182_v33 = vrot.slane %v4863_v30, 6  ;;  %v2230_v30 = vld [vmem:[%s5267_s21 + $0x30] sm:$0xff] }
0x101f   :  { %v1538_v36 = vpop.permute.xlu2 %1537 }
0x1020   :  { %v3680_v38 = vpop.eup %3679  ;;  %1541 = vst.msk [vmem:[#allocation2] sm:$0xc] %vm1540_vm14, %v1538_v36 }
0x1021   :  { %1543 = vst.msk [vmem:[#allocation2 + $0xa] sm:$0xc] %vm1542_vm1, %v1538_v36  ;;  %v2082_v43 = vmul.f32 %v3680_v38, %v2068_v41  ;;  %v2252_v36 = vld [vmem:[#allocation8 + $0x60] sm:$0xff]  ;;  %v2253_v38 = vld [vmem:[#allocation8 + $0x68] sm:$0xff]  ;;  %v2250_v41 = vld [vmem:[#allocation8 + $0x50] sm:$0xff] }
0x1022   :  { %2271 = vmatpush.msrb.mxu0 %v2252_v36  ;;  %2294 = vmatpush.msrb.mxu1 %v2253_v38 }
0x1023   :  { %v2089_v44 = vrot.slane %v2082_v43, 4 }
0x1024   :  { %2272 = vmatpush.msrb.mxu0 %v2250_v41 }
0x1025   :  { %2090 = vrot.lane.b32.xlu0 %v2089_v44, %s3894_s19 }
0x1027   :  { %v1975_v53 = vpop.permute.xlu2 %1974 }
0x102d   :  { %1649 = vrot.lane.b32.xlu0 %v4809_v52, %s3894_s19 }
0x1035   :  { %2084 = vrot.lane.b32.xlu0 %v2082_v43, %s3894_s19  ;;  %v2251_v43 = vld [vmem:[#allocation8 + $0x58] sm:$0xff] }
0x1036   :  { %2295 = vmatpush.msrb.mxu1 %v2251_v43 }
0x1097   :  { %v2091_v48 = vpop.permute.xlu0 %2090 }
0x1098   :  { %3494 = vmatmul.msk.f32.vlgmr.msra.gmra.mxu1 %vm409_vm2, %v2091_v48  ;;  %3495 = vmatmul.msk.f32.vlgmr.msra.gmra.mxu2 %vm409_vm2, %v2091_v48  ;;  %v2248_v48 = vld [vmem:[#allocation8 + $0x40] sm:$0xff] }
0x1099   :  { %2273 = vmatpush.msrb.mxu0 %v2248_v48 }
0x109f   :  { %v1650_v51 = vpop.permute.xlu0 %1649 }
0x10a0   :  { %1653 = vst.msk [vmem:[#allocation2] sm:$0x30] %vm1652_vm5, %v1650_v51 }
0x10a1   :  { %1655 = vst.msk [vmem:[#allocation2 + $0x6] sm:$0x30] %vm1654_vm6, %v1650_v51 }
0x10a2   :  { %1977 = vst.msk [vmem:[#allocation2 + $0x8] sm:$0xc] %vm1540_vm14, %v1975_v53 }
0x10a3   :  { %1978 = vst.msk [vmem:[#allocation2 + $0x2] sm:$0xc] %vm1542_vm1, %v1975_v53  ;;  %v2249_v53 = vld [vmem:[#allocation8 + $0x48] sm:$0xff] }
0x10a4   :  { %2296 = vmatpush.msrb.mxu1 %v2249_v53 }
0x10a7   :  { %v2085_v52 = vpop.permute.xlu0 %2084 }
0x10a8   :  { %2087 = vst.msk [vmem:[#allocation2 + $0x8] sm:$0x30] %vm1652_vm5, %v2085_v52 }
0x10a9   :  { %2088 = vst.msk [vmem:[#allocation2 - $0x2] sm:$0x30] %vm1654_vm6, %v2085_v52  ;;  %v2239_v52 = vld [vmem:[%s5267_s21 + $0x78] sm:$0xff] }
0x1115   :  { %v2111_v57 = vpop.f32.mrf.mxu1 }
0x1116   :  { %v2136_v39 = vrot.slane %v2111_v57, 2  ;;  %v2246_v57 = vld [vmem:[#allocation8 + $0x30] sm:$0xff] }
0x1117   :  { %2274 = vmatpush.msrb.mxu0 %v2246_v57 }
0x1118   :  { %v2140_v40 = vadd.f32 %v2136_v39, %v4738_v47  ;;  %v2247_v39 = vld [vmem:[#allocation8 + $0x38] sm:$0xff] }
0x1119   :  { %2297 = vmatpush.msrb.mxu1 %v2247_v39 }
0x111a   :  { %v3496_v62 = vmul.f32 -1.442695, %v2140_v40  ;;  %v3789_v40 = vld [vmem:[%s5262_s16] sm:$0xff] }
0x111b   :  { %v2131_v11 = vpop.f32.mrf.mxu2 }
0x111c   :  { %3681 = vpow2.f32 %v3496_v62  ;;  %v2137_v20 = vrot.slane %v2131_v11, 2  ;;  %v2237_v62 = vld [vmem:[%s5267_s21 + $0x68] sm:$0xff]  ;;  %v2235_v11 = vld [vmem:[%s5267_s21 + $0x58] sm:$0xff] }
0x111e   :  { %v2141_v17 = vadd.f32 %v2137_v20, %v4740_v54  ;;  %v2233_v20 = vld [vmem:[%s5267_s21 + $0x48] sm:$0xff] }
0x1120   :  { %v3497_v54 = vmul.f32 -1.442695, %v2141_v17 }
0x1122   :  { %v3682_v2 = vpop.eup %3681 }
0x1123   :  { %v2148_v16 = vadd.f32 1.0, %v3682_v2  ;;  %v2244_v2 = vld [vmem:[#allocation8 + $0x20] sm:$0xff] }
0x1124   :  { %2275 = vmatpush.msrb.mxu0 %v2244_v2 }
0x1125   :  { %3683 = vrcp.f32 %v2148_v16  ;;  %v2161_v18 = vand.u32 2147483648, %v2148_v16  ;;  %v2159_v32 = vand.u32 2147483647, %v2148_v16  ;;  %vm2155_vm8 = vweird.f32 %v2148_v16 }
0x1126   :  { %3685 = vtanh.f32 %v2141_v17  ;;  %v3790_v17 = vld [vmem:[%s5262_s16 + $0x8] sm:$0xff] }
0x1127   :  { %v2162_v47 = vor.u32 1.1754944e-38, %v2161_v18  ;;  %vm2160_vm10 = vcmp.eq.f32.partialorder %v2159_v32, 8.507059e+37  ;;  %3687 = vpow2.f32 %v3497_v54  ;;  %v2225_v18 = vld [vmem:[%s5267_s21 + $0x8] sm:$0xff]  ;;  %v2243_v32 = vld [vmem:[#allocation8 + $0x18] sm:$0xff]  ;;  %v4977_v54 = vld [vmem:[#allocation9 + $0x40] sm:$0xff] }
0x112b   :  { %v3684_v22 = vpop.eup %3683 }
0x112c   :  { %v2151_v24 = vmul.f32 %v3684_v22, %v2148_v16  ;;  %vm2156_vm7 = vweird.f32 %v3684_v22  ;;  %v3686_v58 = vpop.eup %3685  ;;  %v2245_v16 = vld [vmem:[#allocation8 + $0x28] sm:$0xff] }
0x112d   :  { %vm2157_vm9 = vmor %vm2155_vm8, %vm2156_vm7  ;;  %v3688_v49 = vpop.eup %3687  ;;  %vm1766_vm7 = vcmask 523526   ;;  %2298 = vmatpush.msrb.mxu1 %v2245_v16 }
0x112e   :  { %v2152_v27 = vsub.f32 1.0, %v2151_v24  ;;  %v2149_v0 = vadd.f32 1.0, %v3688_v49  ;;  %v2229_v24 = vld [vmem:[%s5267_s21 + $0x28] sm:$0xff] }
0x112f   :  { %2299 = vmatpush.msrb.mxu1 %v2243_v32  ;;  %v4979_v49 = vld [vmem:[#allocation9 + $0x48] sm:$0xff] }
0x1130   :  { %v2153_v29 = vmul.f32 %v3684_v22, %v2152_v27  ;;  %3689 = vrcp.f32 %v2149_v0  ;;  %v2176_v12 = vand.u32 2147483648, %v2149_v0  ;;  %vm2170_vm12 = vweird.f32 %v2149_v0  ;;  %v2227_v27 = vld [vmem:[%s5267_s21 + $0x18] sm:$0xff] }
0x1131   :  { %v2174_v13 = vand.u32 2147483647, %v2149_v0 }
0x1132   :  { %v2154_v26 = vadd.f32 %v3684_v22, %v2153_v29  ;;  %v2177_v15 = vor.u32 1.1754944e-38, %v2176_v12  ;;  %v2242_v29 = vld [vmem:[#allocation8 + $0x10] sm:$0xff] }
0x1133   :  { %vm2175_vm8 = vcmp.eq.f32.partialorder %v2174_v13, 8.507059e+37  ;;  %2276 = vmatpush.msrb.mxu0 %v2242_v29  ;;  %v2360_v13 = vld [vmem:[%s5269_s23] sm:$0x3] }
0x1134   :  { %v2158_v56 = vsel %vm2157_vm9, %v3684_v22, %v2154_v26  ;;  %v2231_v22 = vld [vmem:[%s5267_s21 + $0x38] sm:$0xff]  ;;  %v2240_v26 = vld [vmem:[#allocation8] sm:$0xff] }
0x1135   :  { %v2163_v59 = vsel %vm2160_vm10, %v2162_v47, %v2158_v56  ;;  %v2241_v47 = vld [vmem:[#allocation8 + $0x8] sm:$0xff]  ;;  %2277 = vmatpush.msrb.mxu0 %v2240_v26  ;;  %v4957_v56 = vld [vmem:[#allocation9 + $0x78] sm:$0xff] }
0x1136   :  { %v2185_v60 = vmul.f32 %v3686_v58, %v2163_v59  ;;  %v2184_v61 = vmul.f32 %v2182_v33, %v2163_v59  ;;  %v3690_v4 = vpop.eup %3689  ;;  %2300 = vmatpush.msrb.mxu1 %v2241_v47  ;;  %v4955_v33 = vld [vmem:[#allocation9 + $0x70] sm:$0xff]  ;;  %v4959_v58 = vld [vmem:[#allocation9 + $0x60] sm:$0xff]  ;;  %v4963_v59 = vld [vmem:[#allocation9 + $0x68] sm:$0xff] }
0x1137   :  { %v2166_v5 = vmul.f32 %v3690_v4, %v2149_v0  ;;  %vm2171_vm11 = vweird.f32 %v3690_v4  ;;  %2394 = vmatpush.msra.mxu0 %v4955_v33  ;;  %v4985_v0 = vld [vmem:[#allocation9 + $0x30] sm:$0xff] }
0x1138   :  { %2187 = vrot.lane.b32.xlu1 %v2185_v60, %s3894_s19  ;;  %vm2172_vm13 = vmor %vm2170_vm12, %vm2171_vm11  ;;  %2414 = vmatpush.msra.mxu1 %v4957_v56  ;;  %v4971_v60 = vld [vmem:[#allocation9 + $0x50] sm:$0xff] }
0x1139   :  { %v2167_v6 = vsub.f32 1.0, %v2166_v5  ;;  %2395 = vmatpush.msra.mxu0 %v4959_v58  ;;  %v5009_v5 = vld [vmem:[#allocation9] sm:$0xff] }
0x113a   :  { %2415 = vmatpush.msra.mxu1 %v4963_v59 }
0x113b   :  { %v2168_v7 = vmul.f32 %v3690_v4, %v2167_v6  ;;  %2396 = vmatpush.msra.mxu0 %v4971_v60  ;;  %v5011_v6 = vld [vmem:[#allocation9 + $0x8] sm:$0xff] }
0x113d   :  { %v2169_v10 = vadd.f32 %v3690_v4, %v2168_v7  ;;  %2397 = vmatpush.msra.mxu0 %v4977_v54 }
0x113f   :  { %v2173_v14 = vsel %vm2172_vm13, %v3690_v4, %v2169_v10  ;;  %2398 = vmatpush.msra.mxu0 %v4985_v0  ;;  %v4999_v4 = vld [vmem:[#allocation9 + $0x18] sm:$0xff] }
0x1140   :  { %1761 = vrot.lane.b32.xlu1 %v4835_v21, %s3894_s19  ;;  %v2232_v21 = vld [vmem:[%s5267_s21 + $0x40] sm:$0xff]  ;;  %v2178_v25 = vsel %vm2175_vm8, %v2177_v15, %v2173_v14 }
0x1141   :  { %2325 = vmatpush.msrb.mxu2 %v2232_v21  ;;  %v4997_v21 = vld [vmem:[#allocation9 + $0x10] sm:$0xff]  ;;  %2399 = vmatpush.msra.mxu0 %v4989_v1 }
0x1143   :  { %2326 = vmatpush.msrb.mxu2 %v2230_v30  ;;  %2400 = vmatpush.msra.mxu0 %v4997_v21 }
0x1145   :  { %2327 = vmatpush.msrb.mxu2 %v2228_v31  ;;  %2401 = vmatpush.msra.mxu0 %v5009_v5 }
0x1147   :  { %2328 = vmatpush.msrb.mxu2 %v2226_v34 }
0x11aa   :  { %v2188_v8 = vpop.permute.xlu1 %2187 }
0x11ab   :  { %v2190_v9 = vadd.f32 %v2188_v8, %v2184_v61  ;;  %v4973_v61 = vld [vmem:[#allocation9 + $0x58] sm:$0xff] }
0x11ac   :  { %2416 = vmatpush.msra.mxu1 %v4973_v61 }
0x11ad   :  { %3691 = vtanh.f32 %v2190_v9 }
0x11ae   :  { %2417 = vmatpush.msra.mxu1 %v4979_v49 }
0x11b0   :  { %2418 = vmatpush.msra.mxu1 %v4987_v42 }
0x11b2   :  { %v1762_v19 = vpop.permute.xlu1 %1761  ;;  %2419 = vmatpush.msra.mxu1 %v4991_v3 }
0x11b3   :  { %v3692_v23 = vpop.eup %3691  ;;  %1765 = vst.msk [vmem:[#allocation2] sm:$0xc0] %vm1764_vm3, %v1762_v19 }
0x11b4   :  { %1767 = vst.msk [vmem:[#allocation2 + $0x2] sm:$0xc0] %vm1766_vm7, %v1762_v19  ;;  %v2192_v28 = vmul.f32 %v3692_v23, %v2178_v25  ;;  %2420 = vmatpush.msra.mxu1 %v4999_v4  ;;  %v2362_v25 = vperm.slane %v2360_v13, 0 }
0x11b5   :  { %1870 = vst.msk [vmem:[#allocation2 + $0x8] sm:$0x3] %vm1431_vm15, %v4845_v63 }
0x11b6   :  { %1871 = vst.msk [vmem:[#allocation2 + $0x6] sm:$0x3] %vm1433_vm0, %v4845_v63  ;;  %2194 = vrot.lane.b32.xlu1 %v2192_v28, %s3894_s19  ;;  %v2224_v63 = vld [vmem:[%s5267_s21] sm:$0xff]  ;;  %2421 = vmatpush.msra.mxu1 %v5011_v6  ;;  %v2363_v28 = vperm.slane %v2360_v13, 1 }
0x11b7   :  { %2329 = vmatpush.msrb.mxu2 %v2224_v63 }
0x11b9   :  { %2492 = vmatpush.msra.mxu2 %v4955_v33 }
0x11bb   :  { %2493 = vmatpush.msra.mxu2 %v4959_v58 }
0x11bd   :  { %2494 = vmatpush.msra.mxu2 %v4971_v60 }
0x11bf   :  { %2495 = vmatpush.msra.mxu2 %v4977_v54 }
0x11c1   :  { %2496 = vmatpush.msra.mxu2 %v4985_v0 }
0x11c3   :  { %2497 = vmatpush.msra.mxu2 %v4989_v1 }
0x11c5   :  { %2498 = vmatpush.msra.mxu2 %v4997_v21 }
0x11c7   :  { %2499 = vmatpush.msra.mxu2 %v5009_v5 }
0x1228   :  { %v2195_v50 = vpop.permute.xlu1 %2194 }
0x1229   :  { %2197 = vst.msk [vmem:[#allocation2 + $0x8] sm:$0xc0] %vm1764_vm3, %v2195_v50 }
0x122a   :  { %2198 = vst.msk [vmem:[#allocation2 - $0x6] sm:$0xc0] %vm1766_vm7, %v2195_v50 }
0x1230   :  { %v2200_v44 = vld [vmem:[#allocation2 + $0x8] sm:$0xff] }
0x1231   :  { %2215 = vmatpush.msra.mxu3 %v2200_v44  ;;  %v2199_v51 = vld [vmem:[#allocation2] sm:$0xff] }
0x1232   :  { %3504 = vmatmul.msk.f32.vlgmr.msrb.gmra.mxu2 %vm409_vm2, %v2199_v51 }
0x1233   :  { %2216 = vmatpush.msra.mxu3 %v2199_v51  ;;  %2712 = vmatpush.msrb.mxu2 %v4955_v33 }
0x1234   :  { %3498 = vmatmul.msk.f32.vlgmr.msra.gmra.mxu3 %vm1142_vm4, %v3789_v40 }
0x1235   :  { %2345 = vmatpush.msrb.mxu3 %v2239_v52  ;;  %2713 = vmatpush.msrb.mxu2 %v4959_v58 }
0x1237   :  { %2346 = vmatpush.msrb.mxu3 %v2237_v62  ;;  %2714 = vmatpush.msrb.mxu2 %v4971_v60 }
0x1239   :  { %2347 = vmatpush.msrb.mxu3 %v2235_v11  ;;  %2715 = vmatpush.msrb.mxu2 %v4977_v54 }
0x123a   :  { %3505 = vmatmul.msk.f32.gmra.mxu2 %vm409_vm2, %v2200_v44 }
0x123b   :  { %2348 = vmatpush.msrb.mxu3 %v2233_v20  ;;  %2716 = vmatpush.msrb.mxu2 %v4985_v0 }
0x123c   :  { %3499 = vmatmul.msk.f32.gmra.mxu3 %vm1142_vm4, %v3790_v17 }
0x123d   :  { %2349 = vmatpush.msrb.mxu3 %v2231_v22  ;;  %2717 = vmatpush.msrb.mxu2 %v4989_v1 }
0x123f   :  { %2350 = vmatpush.msrb.mxu3 %v2229_v24  ;;  %2718 = vmatpush.msrb.mxu2 %v4997_v21 }
0x1241   :  { %2351 = vmatpush.msrb.mxu3 %v2227_v27  ;;  %2719 = vmatpush.msrb.mxu2 %v5009_v5 }
0x1243   :  { %2352 = vmatpush.msrb.mxu3 %v2225_v18 }
0x1244   :  { %3506 = vmatmul.msk.f32.vlgmr.msrb.gmra.mxu3 %vm409_vm2, %v2199_v51 }
0x1245   :  { %2512 = vmatpush.msra.mxu3 %v4957_v56 }
0x1247   :  { %2513 = vmatpush.msra.mxu3 %v4963_v59 }
0x1249   :  { %2514 = vmatpush.msra.mxu3 %v4973_v61 }
0x124b   :  { %2515 = vmatpush.msra.mxu3 %v4979_v49 }
0x124c   :  { %3507 = vmatmul.msk.f32.gmra.mxu3 %vm409_vm2, %v2200_v44 }
0x124d   :  { %2516 = vmatpush.msra.mxu3 %v4987_v42 }
0x124f   :  { %2517 = vmatpush.msra.mxu3 %v4991_v3 }
0x1251   :  { %2518 = vmatpush.msra.mxu3 %v4999_v4 }
0x1253   :  { %2519 = vmatpush.msra.mxu3 %v5011_v6 }
0x1255   :  { %2732 = vmatpush.msrb.mxu3 %v4957_v56 }
0x1257   :  { %2733 = vmatpush.msrb.mxu3 %v4963_v59 }
0x1259   :  { %2734 = vmatpush.msrb.mxu3 %v4973_v61 }
0x125b   :  { %2735 = vmatpush.msrb.mxu3 %v4979_v49 }
0x125d   :  { %2736 = vmatpush.msrb.mxu3 %v4987_v42 }
0x125f   :  { %2737 = vmatpush.msrb.mxu3 %v4991_v3 }
0x1261   :  { %2738 = vmatpush.msrb.mxu3 %v4999_v4 }
0x1263   :  { %2739 = vmatpush.msrb.mxu3 %v5011_v6 }
0x12b7   :  { %v2218_v7 = vpop.f32.mrf.mxu3 }
0x12b8   :  { %3500 = vmatmul.msk.f32.vlgmr.msrb.gmra.mxu0 %vm409_vm2, %v2218_v7  ;;  %3502 = vmatmul.msk.f32.vlgmr.msrb.gmra.mxu1 %vm409_vm2, %v2218_v7 }
0x12b9   :  { %2602 = vmatpush.msrb.mxu0 %v4955_v33  ;;  %2622 = vmatpush.msrb.mxu1 %v4957_v56 }
0x12bb   :  { %2603 = vmatpush.msrb.mxu0 %v4959_v58  ;;  %2623 = vmatpush.msrb.mxu1 %v4963_v59 }
0x12bd   :  { %2604 = vmatpush.msrb.mxu0 %v4971_v60  ;;  %2624 = vmatpush.msrb.mxu1 %v4973_v61 }
0x12bf   :  { %v2221_v8 = vpop.f32.mrf.mxu3  ;;  %2605 = vmatpush.msrb.mxu0 %v4977_v54  ;;  %2625 = vmatpush.msrb.mxu1 %v4979_v49 }
0x12c0   :  { %3501 = vmatmul.msk.f32.gmra.mxu0 %vm409_vm2, %v2221_v8  ;;  %3503 = vmatmul.msk.f32.gmra.mxu1 %vm409_vm2, %v2221_v8 }
0x12c1   :  { %2606 = vmatpush.msrb.mxu0 %v4985_v0  ;;  %2626 = vmatpush.msrb.mxu1 %v4987_v42 }
0x12c3   :  { %2607 = vmatpush.msrb.mxu0 %v4989_v1  ;;  %2627 = vmatpush.msrb.mxu1 %v4991_v3 }
0x12c5   :  { %2608 = vmatpush.msrb.mxu0 %v4997_v21  ;;  %2628 = vmatpush.msrb.mxu1 %v4999_v4 }
0x12c7   :  { %2609 = vmatpush.msrb.mxu0 %v5009_v5  ;;  %2629 = vmatpush.msrb.mxu1 %v5011_v6  ;;  %v2354_v9 = vpop.f32.mrf.mxu3 }
0x12c8   :  { %2402 = vmatmul.f32.vlgmr.msra.gmra.mxu0 %v3891_v55  ;;  %2422 = vmatmul.f32.vlgmr.msra.gmra.mxu1 %v3891_v55  ;;  %v2331_v55 = vpop.f32.mrf.mxu2 }
0x12c9   :  { %2822 = vmatpush.msra.mxu0 %v4955_v33  ;;  %2842 = vmatpush.msra.mxu1 %v4957_v56 }
0x12cb   :  { %2823 = vmatpush.msra.mxu0 %v4959_v58  ;;  %2843 = vmatpush.msra.mxu1 %v4963_v59 }
0x12cd   :  { %2824 = vmatpush.msra.mxu0 %v4971_v60  ;;  %2844 = vmatpush.msra.mxu1 %v4973_v61 }
0x12cf   :  { %2825 = vmatpush.msra.mxu0 %v4977_v54  ;;  %2845 = vmatpush.msra.mxu1 %v4979_v49  ;;  %v2357_v15 = vpop.f32.mrf.mxu3 }
0x12d0   :  { %v2334_v14 = vpop.f32.mrf.mxu2 }
0x12d1   :  { %2826 = vmatpush.msra.mxu0 %v4985_v0  ;;  %2846 = vmatpush.msra.mxu1 %v4987_v42 }
0x12d3   :  { %2827 = vmatpush.msra.mxu0 %v4989_v1  ;;  %2847 = vmatpush.msra.mxu1 %v4991_v3 }
0x12d5   :  { %2828 = vmatpush.msra.mxu0 %v4997_v21  ;;  %2848 = vmatpush.msra.mxu1 %v4999_v4 }
0x12d7   :  { %2829 = vmatpush.msra.mxu0 %v5009_v5  ;;  %2849 = vmatpush.msra.mxu1 %v5011_v6 }
0x1335   :  { %v2279_v10 = vpop.f32.mrf.mxu0  ;;  %v2302_v12 = vpop.f32.mrf.mxu1 }
0x1336   :  { %v2332_v34 = vadd.f32 %v2331_v55, %v2279_v10  ;;  %v2355_v44 = vadd.f32 %v2354_v9, %v2302_v12 }
0x1338   :  { %v5080_v35 = vadd.f32 %v2362_v25, %v2332_v34  ;;  %v5083_v51 = vadd.f32 %v2363_v28, %v2355_v44 }
0x133d   :  { %v2282_v19 = vpop.f32.mrf.mxu0  ;;  %v2305_v23 = vpop.f32.mrf.mxu1 }
0x133e   :  { %v2335_v30 = vadd.f32 %v2334_v14, %v2282_v19  ;;  %v2358_v31 = vadd.f32 %v2357_v15, %v2305_v23 }
0x1340   :  { %v5076_v63 = vadd.f32 %v2362_v25, %v2335_v30  ;;  %v5078_v50 = vadd.f32 %v2363_v28, %v2358_v31 }
0x1345   :  { %v2403_v37 = vpop.f32.mrf.mxu0  ;;  %v2423_v48 = vpop.f32.mrf.mxu1 }
0x1346   :  { %v2426_v36 = vadd.f32 %v2403_v37, %v5080_v35  ;;  %v2427_v52 = vadd.f32 %v2423_v48, %v5083_v51 }
0x1348   :  { %v3508_v38 = vmul.f32 -1.442695, %v2426_v36  ;;  %v3509_v27 = vmul.f32 -1.442695, %v2427_v52 }
0x134a   :  { %3693 = vpow2.f32 %v3508_v38 }
0x1350   :  { %v3694_v41 = vpop.eup %3693 }
0x1351   :  { %v2434_v43 = vadd.f32 1.0, %v3694_v41 }
0x1353   :  { %3695 = vrcp.f32 %v2434_v43  ;;  %v2447_v40 = vand.u32 2147483648, %v2434_v43  ;;  %v2445_v2 = vand.u32 2147483647, %v2434_v43  ;;  %vm2441_vm9 = vweird.f32 %v2434_v43 }
0x1354   :  { %3697 = vtanh.f32 %v2427_v52 }
0x1355   :  { %v2448_v11 = vor.u32 1.1754944e-38, %v2447_v40  ;;  %vm2446_vm11 = vcmp.eq.f32.partialorder %v2445_v2, 8.507059e+37  ;;  %3699 = vpow2.f32 %v3509_v27 }
0x1359   :  { %v3696_v53 = vpop.eup %3695 }
0x135a   :  { %v2437_v57 = vmul.f32 %v3696_v53, %v2434_v43  ;;  %vm2442_vm4 = vweird.f32 %v3696_v53  ;;  %v3698_v22 = vpop.eup %3697 }
0x135b   :  { %vm2443_vm10 = vmor %vm2441_vm9, %vm2442_vm4  ;;  %v3700_v18 = vpop.eup %3699 }
0x135c   :  { %v2438_v39 = vsub.f32 1.0, %v2437_v57  ;;  %v2435_v29 = vadd.f32 1.0, %v3700_v18 }
0x135e   :  { %v2439_v62 = vmul.f32 %v3696_v53, %v2438_v39  ;;  %3701 = vrcp.f32 %v2435_v29  ;;  %v2462_v12 = vand.u32 2147483648, %v2435_v29  ;;  %vm2456_vm13 = vweird.f32 %v2435_v29 }
0x135f   :  { %v2460_v13 = vand.u32 2147483647, %v2435_v29 }
0x1360   :  { %v2440_v16 = vadd.f32 %v3696_v53, %v2439_v62  ;;  %v2463_v15 = vor.u32 1.1754944e-38, %v2462_v12 }
0x1361   :  { %vm2461_vm4 = vcmp.eq.f32.partialorder %v2460_v13, 8.507059e+37 }
0x1362   :  { %v2444_v20 = vsel %vm2443_vm10, %v3696_v53, %v2440_v16 }
0x1363   :  { %v2449_v17 = vsel %vm2446_vm11, %v2448_v11, %v2444_v20 }
0x1364   :  { %v2468_v24 = vmul.f32 %v3698_v22, %v2449_v17  ;;  %v3702_v32 = vpop.eup %3701  ;;  %v2467_v8 = vmul.f32 0.0, %v2449_v17 }
0x1365   :  { %v2452_v26 = vmul.f32 %v3702_v32, %v2435_v29  ;;  %vm2457_vm12 = vweird.f32 %v3702_v32 }
0x1366   :  { %2470 = vrot.lane.b32.xlu2 %v2468_v24, %s3894_s19  ;;  %vm2458_vm8 = vmor %vm2456_vm13, %vm2457_vm12 }
0x1367   :  { %v2453_v47 = vsub.f32 1.0, %v2452_v26 }
0x1369   :  { %v2454_v7 = vmul.f32 %v3702_v32, %v2453_v47 }
0x136b   :  { %v2455_v10 = vadd.f32 %v3702_v32, %v2454_v7 }
0x136d   :  { %v2459_v14 = vsel %vm2458_vm8, %v3702_v32, %v2455_v10 }
0x136e   :  { %v2464_v23 = vsel %vm2461_vm4, %v2463_v15, %v2459_v14 }
0x13c0   :  { %v2471_v55 = vpop.permute.xlu2 %2470 }
0x13c1   :  { %v5087_v9 = vadd.f32 %v2471_v55, %v2467_v8 }
0x13c3   :  { %3703 = vtanh.f32 %v5087_v9  ;;  %v2572_v16 = vrot.slane %v5087_v9, 6 }
0x13c9   :  { %v3704_v19 = vpop.eup %3703 }
0x13ca   :  { %v2475_v25 = vmul.f32 %v3704_v19, %v2464_v23 }
0x13cc   :  { %2477 = vrot.lane.b32.xlu0 %v2475_v25, %s3894_s19 }
0x143e   :  { %v2478_v28 = vpop.permute.xlu0 %2477 }
0x143f   :  { %2480 = vst.msk [vmem:[#allocation3] sm:$0x3] %vm1431_vm15, %v2478_v28  ;;  %3510 = vmatmul.msk.f32.vlgmr.msra.gmra.mxu2 %vm409_vm2, %v2478_v28  ;;  %3511 = vmatmul.msk.f32.vlgmr.msra.gmra.mxu3 %vm409_vm2, %v2478_v28 }
0x1440   :  { %2481 = vst.msk [vmem:[#allocation3 + $0xe] sm:$0x3] %vm1433_vm0, %v2478_v28  ;;  %2923 = vmatpush.msra.mxu2 %v4955_v33  ;;  %2943 = vmatpush.msra.mxu3 %v4957_v56 }
0x1442   :  { %2924 = vmatpush.msra.mxu2 %v4959_v58  ;;  %2944 = vmatpush.msra.mxu3 %v4963_v59 }
0x1444   :  { %2925 = vmatpush.msra.mxu2 %v4971_v60  ;;  %2945 = vmatpush.msra.mxu3 %v4973_v61 }
0x1446   :  { %2926 = vmatpush.msra.mxu2 %v4977_v54  ;;  %2946 = vmatpush.msra.mxu3 %v4979_v49 }
0x1448   :  { %2927 = vmatpush.msra.mxu2 %v4985_v0  ;;  %2947 = vmatpush.msra.mxu3 %v4987_v42 }
0x144a   :  { %2928 = vmatpush.msra.mxu2 %v4989_v1  ;;  %2948 = vmatpush.msra.mxu3 %v4991_v3 }
0x144c   :  { %2929 = vmatpush.msra.mxu2 %v4997_v21  ;;  %2949 = vmatpush.msra.mxu3 %v4999_v4 }
0x144e   :  { %2930 = vmatpush.msra.mxu2 %v5009_v5  ;;  %2950 = vmatpush.msra.mxu3 %v5011_v6 }
0x14c2   :  { %v2501_v30 = vpop.f32.mrf.mxu2  ;;  %v2521_v41 = vpop.f32.mrf.mxu3 }
0x14c3   :  { %v2526_v31 = vrot.slane %v2501_v30, 6  ;;  %v2527_v43 = vrot.slane %v2521_v41, 6 }
0x14c5   :  { %v2530_v34 = vadd.f32 %v2526_v31, %v5080_v35  ;;  %v2531_v48 = vadd.f32 %v2527_v43, %v5083_v51 }
0x14c7   :  { %v3512_v37 = vmul.f32 -1.442695, %v2530_v34  ;;  %v3513_v27 = vmul.f32 -1.442695, %v2531_v48 }
0x14c9   :  { %3705 = vpow2.f32 %v3512_v37 }
0x14cf   :  { %v3706_v36 = vpop.eup %3705 }
0x14d0   :  { %v2538_v38 = vadd.f32 1.0, %v3706_v36 }
0x14d2   :  { %3707 = vrcp.f32 %v2538_v38  ;;  %v2551_v57 = vand.u32 2147483648, %v2538_v38  ;;  %v2549_v40 = vand.u32 2147483647, %v2538_v38  ;;  %vm2545_vm10 = vweird.f32 %v2538_v38 }
0x14d3   :  { %3709 = vtanh.f32 %v2531_v48 }
0x14d4   :  { %v2552_v2 = vor.u32 1.1754944e-38, %v2551_v57  ;;  %vm2550_vm12 = vcmp.eq.f32.partialorder %v2549_v40, 8.507059e+37  ;;  %3711 = vpow2.f32 %v3513_v27 }
0x14d8   :  { %v3708_v44 = vpop.eup %3707 }
0x14d9   :  { %v2541_v53 = vmul.f32 %v3708_v44, %v2538_v38  ;;  %vm2546_vm9 = vweird.f32 %v3708_v44  ;;  %v3710_v20 = vpop.eup %3709 }
0x14da   :  { %vm2547_vm11 = vmor %vm2545_vm10, %vm2546_vm9  ;;  %v3712_v18 = vpop.eup %3711 }
0x14db   :  { %v2542_v52 = vsub.f32 1.0, %v2541_v53  ;;  %v2539_v29 = vadd.f32 1.0, %v3712_v18 }
0x14dd   :  { %v2543_v39 = vmul.f32 %v3708_v44, %v2542_v52  ;;  %3713 = vrcp.f32 %v2539_v29  ;;  %v2566_v10 = vand.u32 2147483648, %v2539_v29  ;;  %vm2560_vm8 = vweird.f32 %v2539_v29 }
0x14de   :  { %v2564_v12 = vand.u32 2147483647, %v2539_v29 }
0x14df   :  { %v2544_v62 = vadd.f32 %v3708_v44, %v2543_v39  ;;  %v2567_v14 = vor.u32 1.1754944e-38, %v2566_v10 }
0x14e0   :  { %vm2565_vm9 = vcmp.eq.f32.partialorder %v2564_v12, 8.507059e+37 }
0x14e1   :  { %v2548_v11 = vsel %vm2547_vm11, %v3708_v44, %v2544_v62 }
0x14e2   :  { %v2553_v22 = vsel %vm2550_vm12, %v2552_v2, %v2548_v11 }
0x14e3   :  { %v2575_v17 = vmul.f32 %v3710_v20, %v2553_v22  ;;  %v2574_v24 = vmul.f32 %v2572_v16, %v2553_v22  ;;  %v3714_v32 = vpop.eup %3713 }
0x14e4   :  { %v2556_v26 = vmul.f32 %v3714_v32, %v2539_v29  ;;  %vm2561_vm13 = vweird.f32 %v3714_v32 }
0x14e5   :  { %2577 = vrot.lane.b32.xlu1 %v2575_v17, %s3894_s19  ;;  %vm2562_vm4 = vmor %vm2560_vm8, %vm2561_vm13 }
0x14e6   :  { %v2557_v47 = vsub.f32 1.0, %v2556_v26 }
0x14e8   :  { %v2558_v7 = vmul.f32 %v3714_v32, %v2557_v47 }
0x14ea   :  { %v2559_v9 = vadd.f32 %v3714_v32, %v2558_v7 }
0x14ec   :  { %v2563_v13 = vsel %vm2562_vm4, %v3714_v32, %v2559_v9 }
0x14ed   :  { %v2568_v19 = vsel %vm2565_vm9, %v2567_v14, %v2563_v13 }
0x1557   :  { %v2578_v8 = vpop.permute.xlu1 %2577 }
0x1558   :  { %v5115_v55 = vadd.f32 %v2578_v8, %v2574_v24 }
0x155a   :  { %3715 = vtanh.f32 %v5115_v55  ;;  %v2682_v16 = vrot.slane %v5115_v55, 6 }
0x1560   :  { %v3716_v15 = vpop.eup %3715 }
0x1561   :  { %v5118_v23 = vmul.f32 %v3716_v15, %v2568_v19 }
0x1563   :  { %v2589_v25 = vrot.slane %v5118_v23, 2 }
0x1565   :  { %2590 = vrot.lane.b32.xlu2 %v2589_v25, %s3894_s19 }
0x15bf   :  { %v2591_v28 = vpop.permute.xlu2 %2590 }
0x15c0   :  { %3514 = vmatmul.msk.f32.vlgmr.msrb.gmra.mxu0 %vm409_vm2, %v2591_v28  ;;  %3515 = vmatmul.msk.f32.vlgmr.msrb.gmra.mxu1 %vm409_vm2, %v2591_v28 }
0x15c1   :  { %3033 = vmatpush.msrb.mxu0 %v4955_v33  ;;  %3053 = vmatpush.msrb.mxu1 %v4957_v56 }
0x15c3   :  { %3034 = vmatpush.msrb.mxu0 %v4959_v58  ;;  %3054 = vmatpush.msrb.mxu1 %v4963_v59 }
0x15c5   :  { %3035 = vmatpush.msrb.mxu0 %v4971_v60  ;;  %3055 = vmatpush.msrb.mxu1 %v4973_v61 }
0x15c7   :  { %3036 = vmatpush.msrb.mxu0 %v4977_v54  ;;  %3056 = vmatpush.msrb.mxu1 %v4979_v49 }
0x15c9   :  { %3037 = vmatpush.msrb.mxu0 %v4985_v0  ;;  %3057 = vmatpush.msrb.mxu1 %v4987_v42 }
0x15cb   :  { %3038 = vmatpush.msrb.mxu0 %v4989_v1  ;;  %3058 = vmatpush.msrb.mxu1 %v4991_v3 }
0x15cd   :  { %3039 = vmatpush.msrb.mxu0 %v4997_v21  ;;  %3059 = vmatpush.msrb.mxu1 %v4999_v4 }
0x15cf   :  { %3040 = vmatpush.msrb.mxu0 %v5009_v5  ;;  %3060 = vmatpush.msrb.mxu1 %v5011_v6 }
0x163d   :  { %v2611_v30 = vpop.f32.mrf.mxu0  ;;  %v2631_v41 = vpop.f32.mrf.mxu1 }
0x163e   :  { %v2636_v31 = vrot.slane %v2611_v30, 4  ;;  %v2637_v43 = vrot.slane %v2631_v41, 4 }
0x1640   :  { %v2640_v34 = vadd.f32 %v2636_v31, %v5080_v35  ;;  %v2641_v48 = vadd.f32 %v2637_v43, %v5083_v51 }
0x1642   :  { %v3516_v37 = vmul.f32 -1.442695, %v2640_v34  ;;  %v3517_v27 = vmul.f32 -1.442695, %v2641_v48 }
0x1644   :  { %3717 = vpow2.f32 %v3516_v37 }
0x164a   :  { %v3718_v36 = vpop.eup %3717 }
0x164b   :  { %v2648_v38 = vadd.f32 1.0, %v3718_v36 }
0x164d   :  { %3719 = vrcp.f32 %v2648_v38  ;;  %v2661_v57 = vand.u32 2147483648, %v2648_v38  ;;  %v2659_v40 = vand.u32 2147483647, %v2648_v38  ;;  %vm2655_vm11 = vweird.f32 %v2648_v38 }
0x164e   :  { %3721 = vtanh.f32 %v2641_v48 }
0x164f   :  { %v2662_v2 = vor.u32 1.1754944e-38, %v2661_v57  ;;  %vm2660_vm13 = vcmp.eq.f32.partialorder %v2659_v40, 8.507059e+37  ;;  %3723 = vpow2.f32 %v3517_v27 }
0x1653   :  { %v3720_v44 = vpop.eup %3719 }
0x1654   :  { %v2651_v53 = vmul.f32 %v3720_v44, %v2648_v38  ;;  %vm2656_vm10 = vweird.f32 %v3720_v44  ;;  %v3722_v20 = vpop.eup %3721 }
0x1655   :  { %vm2657_vm12 = vmor %vm2655_vm11, %vm2656_vm10  ;;  %v3724_v18 = vpop.eup %3723 }
0x1656   :  { %v2652_v52 = vsub.f32 1.0, %v2651_v53  ;;  %v2649_v29 = vadd.f32 1.0, %v3724_v18 }
0x1658   :  { %v2653_v39 = vmul.f32 %v3720_v44, %v2652_v52  ;;  %3725 = vrcp.f32 %v2649_v29  ;;  %v2676_v10 = vand.u32 2147483648, %v2649_v29  ;;  %vm2670_vm4 = vweird.f32 %v2649_v29 }
0x1659   :  { %v2674_v12 = vand.u32 2147483647, %v2649_v29 }
0x165a   :  { %v2654_v62 = vadd.f32 %v3720_v44, %v2653_v39  ;;  %v2677_v14 = vor.u32 1.1754944e-38, %v2676_v10 }
0x165b   :  { %vm2675_vm10 = vcmp.eq.f32.partialorder %v2674_v12, 8.507059e+37 }
0x165c   :  { %v2658_v11 = vsel %vm2657_vm12, %v3720_v44, %v2654_v62 }
0x165d   :  { %v2663_v22 = vsel %vm2660_vm13, %v2662_v2, %v2658_v11 }
0x165e   :  { %v2685_v17 = vmul.f32 %v3722_v20, %v2663_v22  ;;  %v2684_v24 = vmul.f32 %v2682_v16, %v2663_v22  ;;  %v3726_v32 = vpop.eup %3725 }
0x165f   :  { %v2666_v26 = vmul.f32 %v3726_v32, %v2649_v29  ;;  %vm2671_vm8 = vweird.f32 %v3726_v32 }
0x1660   :  { %2687 = vrot.lane.b32.xlu0 %v2685_v17, %s3894_s19  ;;  %vm2672_vm9 = vmor %vm2670_vm4, %vm2671_vm8 }
0x1661   :  { %v2667_v47 = vsub.f32 1.0, %v2666_v26 }
0x1663   :  { %v2668_v7 = vmul.f32 %v3726_v32, %v2667_v47 }
0x1665   :  { %v2669_v55 = vadd.f32 %v3726_v32, %v2668_v7 }
0x1667   :  { %v2673_v13 = vsel %vm2672_vm9, %v3726_v32, %v2669_v55 }
0x1668   :  { %v2678_v19 = vsel %vm2675_vm10, %v2677_v14, %v2673_v13 }
0x16d2   :  { %v2688_v8 = vpop.permute.xlu0 %2687 }
0x16d3   :  { %v5144_v9 = vadd.f32 %v2688_v8, %v2684_v24 }
0x16d5   :  { %3727 = vtanh.f32 %v5144_v9  ;;  %v2792_v31 = vrot.slane %v5144_v9, 6 }
0x16db   :  { %v3728_v15 = vpop.eup %3727 }
0x16dc   :  { %v5147_v25 = vmul.f32 %v3728_v15, %v2678_v19 }
0x16de   :  { %v2699_v28 = vrot.slane %v5147_v25, 4 }
0x16e0   :  { %2700 = vrot.lane.b32.xlu1 %v2699_v28, %s3894_s19 }
0x1752   :  { %v2701_v30 = vpop.permute.xlu1 %2700 }
0x1753   :  { %3518 = vmatmul.msk.f32.vlgmr.msrb.gmra.mxu2 %vm409_vm2, %v2701_v30  ;;  %3519 = vmatmul.msk.f32.vlgmr.msrb.gmra.mxu3 %vm409_vm2, %v2701_v30 }
0x1754   :  { %3143 = vmatpush.msrb.mxu2 %v4955_v33  ;;  %3163 = vmatpush.msrb.mxu3 %v4957_v56 }
0x1756   :  { %3144 = vmatpush.msrb.mxu2 %v4959_v58  ;;  %3164 = vmatpush.msrb.mxu3 %v4963_v59 }
0x1758   :  { %3145 = vmatpush.msrb.mxu2 %v4971_v60  ;;  %3165 = vmatpush.msrb.mxu3 %v4973_v61 }
0x175a   :  { %3146 = vmatpush.msrb.mxu2 %v4977_v54  ;;  %3166 = vmatpush.msrb.mxu3 %v4979_v49 }
0x175c   :  { %3147 = vmatpush.msrb.mxu2 %v4985_v0  ;;  %3167 = vmatpush.msrb.mxu3 %v4987_v42 }
0x175e   :  { %3148 = vmatpush.msrb.mxu2 %v4989_v1  ;;  %3168 = vmatpush.msrb.mxu3 %v4991_v3 }
0x1760   :  { %3149 = vmatpush.msrb.mxu2 %v4997_v21  ;;  %3169 = vmatpush.msrb.mxu3 %v4999_v4 }
0x1762   :  { %3150 = vmatpush.msrb.mxu2 %v5009_v5  ;;  %3170 = vmatpush.msrb.mxu3 %v5011_v6 }
0x17d6   :  { %v2721_v33 = vpop.f32.mrf.mxu2  ;;  %v2741_v54 = vpop.f32.mrf.mxu3 }
0x17d7   :  { %v2746_v56 = vrot.slane %v2721_v33, 2  ;;  %v2747_v49 = vrot.slane %v2741_v54, 2 }
0x17d9   :  { %v2750_v58 = vadd.f32 %v2746_v56, %v5080_v35  ;;  %v2751_v42 = vadd.f32 %v2747_v49, %v5083_v51 }
0x17db   :  { %v3520_v59 = vmul.f32 -1.442695, %v2750_v58  ;;  %v3521_v51 = vmul.f32 -1.442695, %v2751_v42 }
0x17dd   :  { %3729 = vpow2.f32 %v3520_v59 }
0x17e3   :  { %v3730_v60 = vpop.eup %3729 }
0x17e4   :  { %v2758_v61 = vadd.f32 1.0, %v3730_v60 }
0x17e6   :  { %3731 = vrcp.f32 %v2758_v61  ;;  %v2771_v21 = vand.u32 2147483648, %v2758_v61  ;;  %v2769_v5 = vand.u32 2147483647, %v2758_v61  ;;  %vm2765_vm12 = vweird.f32 %v2758_v61 }
0x17e7   :  { %3733 = vtanh.f32 %v2751_v42 }
0x17e8   :  { %v2772_v35 = vor.u32 1.1754944e-38, %v2771_v21  ;;  %vm2770_vm8 = vcmp.eq.f32.partialorder %v2769_v5, 8.507059e+37  ;;  %3735 = vpow2.f32 %v3521_v51 }
0x17ec   :  { %v3732_v0 = vpop.eup %3731 }
0x17ed   :  { %v2761_v1 = vmul.f32 %v3732_v0, %v2758_v61  ;;  %vm2766_vm11 = vweird.f32 %v3732_v0  ;;  %v3734_v37 = vpop.eup %3733 }
0x17ee   :  { %vm2767_vm13 = vmor %vm2765_vm12, %vm2766_vm11  ;;  %v3736_v43 = vpop.eup %3735 }
0x17ef   :  { %v2762_v3 = vsub.f32 1.0, %v2761_v1  ;;  %v2759_v44 = vadd.f32 1.0, %v3736_v43 }
0x17f1   :  { %v2763_v4 = vmul.f32 %v3732_v0, %v2762_v3  ;;  %3737 = vrcp.f32 %v2759_v44  ;;  %v2786_v2 = vand.u32 2147483648, %v2759_v44  ;;  %vm2780_vm9 = vweird.f32 %v2759_v44 }
0x17f2   :  { %v2784_v16 = vand.u32 2147483647, %v2759_v44 }
0x17f3   :  { %v2764_v6 = vadd.f32 %v3732_v0, %v2763_v4  ;;  %v2787_v20 = vor.u32 1.1754944e-38, %v2786_v2 }
0x17f4   :  { %vm2785_vm11 = vcmp.eq.f32.partialorder %v2784_v16, 8.507059e+37 }
0x17f5   :  { %v2768_v34 = vsel %vm2767_vm13, %v3732_v0, %v2764_v6 }
0x17f6   :  { %v2773_v36 = vsel %vm2770_vm8, %v2772_v35, %v2768_v34 }
0x17f7   :  { %v2795_v38 = vmul.f32 %v3734_v37, %v2773_v36  ;;  %v2794_v41 = vmul.f32 %v2792_v31, %v2773_v36  ;;  %v3738_v48 = vpop.eup %3737 }
0x17f8   :  { %v2776_v53 = vmul.f32 %v3738_v48, %v2759_v44  ;;  %vm2781_vm4 = vweird.f32 %v3738_v48 }
0x17f9   :  { %2797 = vrot.lane.b32.xlu2 %v2795_v38, %s3894_s19  ;;  %vm2782_vm10 = vmor %vm2780_vm9, %vm2781_vm4 }
0x17fa   :  { %v2777_v52 = vsub.f32 1.0, %v2776_v53 }
0x17fc   :  { %v2778_v57 = vmul.f32 %v3738_v48, %v2777_v52 }
0x17fe   :  { %v2779_v62 = vadd.f32 %v3738_v48, %v2778_v57 }
0x1800   :  { %v2783_v11 = vsel %vm2782_vm10, %v3738_v48, %v2779_v62 }
0x1801   :  { %v2788_v17 = vsel %vm2785_vm11, %v2787_v20, %v2783_v11 }
0x1853   :  { %v2798_v39 = vpop.permute.xlu2 %2797 }
0x1854   :  { %v2800_v40 = vadd.f32 %v2798_v39, %v2794_v41 }
0x1856   :  { %3739 = vtanh.f32 %v2800_v40  ;;  %v2896_v30 = vrot.slane %v2800_v40, 6 }
0x185c   :  { %v3740_v22 = vpop.eup %3739 }
0x185d   :  { %v5173_v24 = vmul.f32 %v3740_v22, %v2788_v17 }
0x185f   :  { %v2809_v27 = vrot.slane %v5173_v24, 6 }
0x1861   :  { %2810 = vrot.lane.b32.xlu0 %v2809_v27, %s3894_s19 }
0x18d3   :  { %v2811_v18 = vpop.permute.xlu0 %2810 }
0x18d4   :  { %3522 = vmatmul.msk.f32.vlgmr.msra.gmra.mxu0 %vm409_vm2, %v2811_v18  ;;  %3523 = vmatmul.msk.f32.vlgmr.msra.gmra.mxu1 %vm409_vm2, %v2811_v18 }
0x1951   :  { %v2831_v29 = vpop.f32.mrf.mxu0  ;;  %v2851_v8 = vpop.f32.mrf.mxu1 }
0x1952   :  { %v2854_v32 = vadd.f32 %v2831_v29, %v5076_v63  ;;  %v2855_v55 = vadd.f32 %v2851_v8, %v5078_v50 }
0x1954   :  { %v3524_v26 = vmul.f32 -1.442695, %v2854_v32  ;;  %v3525_v61 = vmul.f32 -1.442695, %v2855_v55 }
0x1956   :  { %3741 = vpow2.f32 %v3524_v26 }
0x195c   :  { %v3742_v47 = vpop.eup %3741 }
0x195d   :  { %v2862_v7 = vadd.f32 1.0, %v3742_v47 }
0x195f   :  { %3743 = vrcp.f32 %v2862_v7  ;;  %v2875_v13 = vand.u32 2147483648, %v2862_v7  ;;  %v2873_v15 = vand.u32 2147483647, %v2862_v7  ;;  %vm2869_vm13 = vweird.f32 %v2862_v7 }
0x1960   :  { %3745 = vtanh.f32 %v2855_v55 }
0x1961   :  { %v2876_v28 = vor.u32 1.1754944e-38, %v2875_v13  ;;  %vm2874_vm4 = vcmp.eq.f32.partialorder %v2873_v15, 8.507059e+37  ;;  %3747 = vpow2.f32 %v3525_v61 }
0x1965   :  { %v3744_v9 = vpop.eup %3743 }
0x1966   :  { %v2865_v10 = vmul.f32 %v3744_v9, %v2862_v7  ;;  %vm2870_vm12 = vweird.f32 %v3744_v9  ;;  %v3746_v56 = vpop.eup %3745 }
0x1967   :  { %vm2871_vm8 = vmor %vm2869_vm13, %vm2870_vm12  ;;  %v3748_v54 = vpop.eup %3747 }
0x1968   :  { %v2866_v12 = vsub.f32 1.0, %v2865_v10  ;;  %v2863_v49 = vadd.f32 1.0, %v3748_v54 }
0x196a   :  { %v2867_v14 = vmul.f32 %v3744_v9, %v2866_v12  ;;  %3749 = vrcp.f32 %v2863_v49  ;;  %v2890_v6 = vand.u32 2147483648, %v2863_v49  ;;  %vm2884_vm10 = vweird.f32 %v2863_v49 }
0x196b   :  { %v2888_v35 = vand.u32 2147483647, %v2863_v49 }
0x196c   :  { %v2868_v19 = vadd.f32 %v3744_v9, %v2867_v14  ;;  %v2891_v34 = vor.u32 1.1754944e-38, %v2890_v6 }
0x196d   :  { %vm2889_vm12 = vcmp.eq.f32.partialorder %v2888_v35, 8.507059e+37 }
0x196e   :  { %v2872_v33 = vsel %vm2871_vm8, %v3744_v9, %v2868_v19 }
0x196f   :  { %v2877_v58 = vsel %vm2874_vm4, %v2876_v28, %v2872_v33 }
0x1970   :  { %v2899_v59 = vmul.f32 %v3746_v56, %v2877_v58  ;;  %v2898_v60 = vmul.f32 %v2896_v30, %v2877_v58  ;;  %v3750_v0 = vpop.eup %3749 }
0x1971   :  { %v2880_v42 = vmul.f32 %v3750_v0, %v2863_v49  ;;  %vm2885_vm9 = vweird.f32 %v3750_v0 }
0x1972   :  { %2901 = vrot.lane.b32.xlu1 %v2899_v59, %s3894_s19  ;;  %vm2886_vm11 = vmor %vm2884_vm10, %vm2885_vm9 }
0x1973   :  { %v2881_v1 = vsub.f32 1.0, %v2880_v42 }
0x1975   :  { %v2882_v3 = vmul.f32 %v3750_v0, %v2881_v1 }
0x1977   :  { %v2883_v5 = vadd.f32 %v3750_v0, %v2882_v3 }
0x1979   :  { %v2887_v31 = vsel %vm2886_vm11, %v3750_v0, %v2883_v5 }
0x197a   :  { %v2892_v36 = vsel %vm2889_vm12, %v2891_v34, %v2887_v31 }
0x19e4   :  { %v2902_v21 = vpop.permute.xlu1 %2901 }
0x19e5   :  { %v2904_v4 = vadd.f32 %v2902_v21, %v2898_v60 }
0x19e7   :  { %3751 = vtanh.f32 %v2904_v4  ;;  %v3003_v18 = vrot.slane %v2904_v4, 6 }
0x19ed   :  { %v3752_v37 = vpop.eup %3751 }
0x19ee   :  { %v2906_v38 = vmul.f32 %v3752_v37, %v2892_v36 }
0x19f0   :  { %2908 = vrot.lane.b32.xlu2 %v2906_v38, %s3894_s19 }
0x1a4a   :  { %v5183_v41 = vpop.permute.xlu2 %2908 }
0x1a4b   :  { %3526 = vmatmul.msk.f32.vlgmr.msra.gmra.mxu2 %vm409_vm2, %v5183_v41  ;;  %3527 = vmatmul.msk.f32.vlgmr.msra.gmra.mxu3 %vm409_vm2, %v5183_v41 }
0x1ace   :  { %v2932_v51 = vpop.f32.mrf.mxu2  ;;  %v2952_v57 = vpop.f32.mrf.mxu3 }
0x1acf   :  { %v2957_v43 = vrot.slane %v2932_v51, 6  ;;  %v2958_v39 = vrot.slane %v2952_v57, 6 }
0x1ad1   :  { %v2961_v44 = vadd.f32 %v2957_v43, %v5076_v63  ;;  %v2962_v62 = vadd.f32 %v2958_v39, %v5078_v50 }
0x1ad3   :  { %v3528_v48 = vmul.f32 -1.442695, %v2961_v44  ;;  %v3529_v8 = vmul.f32 -1.442695, %v2962_v62 }
0x1ad5   :  { %3753 = vpow2.f32 %v3528_v48 }
0x1adb   :  { %v3754_v53 = vpop.eup %3753 }
0x1adc   :  { %v2969_v52 = vadd.f32 1.0, %v3754_v53 }
0x1ade   :  { %3755 = vrcp.f32 %v2969_v52  ;;  %v2982_v11 = vand.u32 2147483648, %v2969_v52  ;;  %v2980_v22 = vand.u32 2147483647, %v2969_v52  ;;  %vm2976_vm8 = vweird.f32 %v2969_v52 }
0x1adf   :  { %3757 = vtanh.f32 %v2962_v62  ;;  %v3258_v62 = vld [vmem:[%s5300_s22] sm:$0xff] }
0x1ae0   :  { %v2983_v27 = vor.u32 1.1754944e-38, %v2982_v11  ;;  %vm2981_vm9 = vcmp.eq.f32.partialorder %v2980_v22, 8.507059e+37  ;;  %3759 = vpow2.f32 %v3529_v8 }
0x1ae4   :  { %v3756_v40 = vpop.eup %3755 }
0x1ae5   :  { %v2972_v2 = vmul.f32 %v3756_v40, %v2969_v52  ;;  %vm2977_vm13 = vweird.f32 %v3756_v40  ;;  %v3758_v32 = vpop.eup %3757 }
0x1ae6   :  { %vm2978_vm4 = vmor %vm2976_vm8, %vm2977_vm13  ;;  %v3760_v9 = vpop.eup %3759 }
0x1ae7   :  { %v2973_v16 = vsub.f32 1.0, %v2972_v2  ;;  %v2970_v55 = vadd.f32 1.0, %v3760_v9 }
0x1ae9   :  { %v2974_v20 = vmul.f32 %v3756_v40, %v2973_v16  ;;  %3761 = vrcp.f32 %v2970_v55  ;;  %v2997_v30 = vand.u32 2147483648, %v2970_v55  ;;  %vm2991_vm11 = vweird.f32 %v2970_v55 }
0x1aea   :  { %v2995_v33 = vand.u32 2147483647, %v2970_v55 }
0x1aeb   :  { %v2975_v17 = vadd.f32 %v3756_v40, %v2974_v20  ;;  %v2998_v58 = vor.u32 1.1754944e-38, %v2997_v30 }
0x1aec   :  { %vm2996_vm13 = vcmp.eq.f32.partialorder %v2995_v33, 8.507059e+37 }
0x1aed   :  { %v2979_v29 = vsel %vm2978_vm4, %v3756_v40, %v2975_v17 }
0x1aee   :  { %v2984_v26 = vsel %vm2981_vm9, %v2983_v27, %v2979_v29 }
0x1aef   :  { %v3006_v47 = vmul.f32 %v3758_v32, %v2984_v26  ;;  %v3005_v7 = vmul.f32 %v3003_v18, %v2984_v26  ;;  %v3762_v10 = vpop.eup %3761 }
0x1af0   :  { %v2987_v12 = vmul.f32 %v3762_v10, %v2970_v55  ;;  %vm2992_vm10 = vweird.f32 %v3762_v10 }
0x1af1   :  { %3008 = vrot.lane.b32.xlu0 %v3006_v47, %s3894_s19  ;;  %vm2993_vm12 = vmor %vm2991_vm11, %vm2992_vm10 }
0x1af2   :  { %v2988_v13 = vsub.f32 1.0, %v2987_v12 }
0x1af4   :  { %v2989_v14 = vmul.f32 %v3762_v10, %v2988_v13  ;;  %v3259_v13 = vld [vmem:[%s5300_s22 + $0x8] sm:$0xff] }
0x1af6   :  { %v2990_v28 = vadd.f32 %v3762_v10, %v2989_v14 }
0x1af8   :  { %v2994_v56 = vsel %vm2993_vm12, %v3762_v10, %v2990_v28 }
0x1af9   :  { %v2999_v60 = vsel %vm2996_vm13, %v2998_v58, %v2994_v56 }
0x1b63   :  { %v3009_v15 = vpop.permute.xlu0 %3008 }
0x1b64   :  { %v3011_v19 = vadd.f32 %v3009_v15, %v3005_v7 }
0x1b66   :  { %3763 = vtanh.f32 %v3011_v19  ;;  %v3113_v48 = vrot.slane %v3011_v19, 6 }
0x1b6c   :  { %v3764_v59 = vpop.eup %3763 }
0x1b6d   :  { %v3013_v61 = vmul.f32 %v3764_v59, %v2999_v60 }
0x1b6f   :  { %v3020_v54 = vrot.slane %v3013_v61, 2 }
0x1b71   :  { %3021 = vrot.lane.b32.xlu1 %v3020_v54, %s3894_s19 }
0x1be3   :  { %v3022_v49 = vpop.permute.xlu1 %3021 }
0x1be4   :  { %3530 = vmatmul.msk.f32.vlgmr.msrb.gmra.mxu0 %vm409_vm2, %v3022_v49  ;;  %3531 = vmatmul.msk.f32.vlgmr.msrb.gmra.mxu1 %vm409_vm2, %v3022_v49 }
0x1c61   :  { %v3042_v0 = vpop.f32.mrf.mxu0  ;;  %v3062_v5 = vpop.f32.mrf.mxu1 }
0x1c62   :  { %v3067_v42 = vrot.slane %v3042_v0, 4  ;;  %v3068_v6 = vrot.slane %v3062_v5, 4 }
0x1c64   :  { %v3071_v1 = vadd.f32 %v3067_v42, %v5076_v63  ;;  %v3072_v31 = vadd.f32 %v3068_v6, %v5078_v50 }
0x1c66   :  { %v3532_v3 = vmul.f32 -1.442695, %v3071_v1  ;;  %v3533_v2 = vmul.f32 -1.442695, %v3072_v31 }
0x1c68   :  { %3765 = vpow2.f32 %v3532_v3 }
0x1c6e   :  { %v3766_v21 = vpop.eup %3765 }
0x1c6f   :  { %v3079_v4 = vadd.f32 1.0, %v3766_v21 }
0x1c71   :  { %3767 = vrcp.f32 %v3079_v4  ;;  %v3092_v36 = vand.u32 2147483648, %v3079_v4  ;;  %v3090_v51 = vand.u32 2147483647, %v3079_v4  ;;  %vm3086_vm4 = vweird.f32 %v3079_v4 }
0x1c72   :  { %3769 = vtanh.f32 %v3072_v31 }
0x1c73   :  { %v3093_v44 = vor.u32 1.1754944e-38, %v3092_v36  ;;  %vm3091_vm10 = vcmp.eq.f32.partialorder %v3090_v51, 8.507059e+37  ;;  %3771 = vpow2.f32 %v3533_v2 }
0x1c77   :  { %v3768_v35 = vpop.eup %3767 }
0x1c78   :  { %v3082_v34 = vmul.f32 %v3768_v35, %v3079_v4  ;;  %vm3087_vm8 = vweird.f32 %v3768_v35  ;;  %v3770_v52 = vpop.eup %3769 }
0x1c79   :  { %vm3088_vm9 = vmor %vm3086_vm4, %vm3087_vm8  ;;  %v3772_v16 = vpop.eup %3771 }
0x1c7a   :  { %v3083_v37 = vsub.f32 1.0, %v3082_v34  ;;  %v3080_v11 = vadd.f32 1.0, %v3772_v16 }
0x1c7c   :  { %v3084_v38 = vmul.f32 %v3768_v35, %v3083_v37  ;;  %3773 = vrcp.f32 %v3080_v11  ;;  %v3107_v32 = vand.u32 2147483648, %v3080_v11  ;;  %vm3101_vm12 = vweird.f32 %v3080_v11 }
0x1c7d   :  { %v3105_v26 = vand.u32 2147483647, %v3080_v11 }
0x1c7e   :  { %v3085_v43 = vadd.f32 %v3768_v35, %v3084_v38  ;;  %v3108_v7 = vor.u32 1.1754944e-38, %v3107_v32 }
0x1c7f   :  { %vm3106_vm8 = vcmp.eq.f32.partialorder %v3105_v26, 8.507059e+37  ;;  %v3253_v26 = vstv %s3539_s13 }
0x1c80   :  { %v3089_v53 = vsel %vm3088_vm9, %v3768_v35, %v3085_v43 }
0x1c81   :  { %v3094_v57 = vsel %vm3091_vm10, %v3093_v44, %v3089_v53 }
0x1c82   :  { %v3116_v39 = vmul.f32 %v3770_v52, %v3094_v57  ;;  %v3115_v40 = vmul.f32 %v3113_v48, %v3094_v57  ;;  %v3774_v20 = vpop.eup %3773 }
0x1c83   :  { %v3097_v22 = vmul.f32 %v3774_v20, %v3080_v11  ;;  %vm3102_vm11 = vweird.f32 %v3774_v20 }
0x1c84   :  { %3118 = vrot.lane.b32.xlu2 %v3116_v39, %s3894_s19  ;;  %vm3103_vm13 = vmor %vm3101_vm12, %vm3102_vm11 }
0x1c85   :  { %v3098_v17 = vsub.f32 1.0, %v3097_v22 }
0x1c87   :  { %v3099_v27 = vmul.f32 %v3774_v20, %v3098_v17  ;;  %v3248_v17 = vstv %s3538_s4 }
0x1c8c   :  { %2584 = vrot.lane.b32.xlu2 %v5118_v23, %s3894_s19  ;;  %v3100_v23 = vadd.f32 %v3774_v20, %v3099_v27  ;;  %v3245_v27 = vstv %s3242_s28 }
0x1c8e   :  { %v3104_v47 = vsel %vm3103_vm13, %v3774_v20, %v3100_v23  ;;  %v3792_v23 = vld [vmem:[#allocation2] sm:$0xff] }
0x1c8f   :  { %v3109_v55 = vsel %vm3106_vm8, %v3108_v7, %v3104_v47  ;;  %v3249_v32 = vmul.f32 %v3792_v23, %v3248_v17  ;;  %v3247_v47 = vmul.f32 %v3245_v27, %v4465_v45 }
0x1c94   :  { %3015 = vrot.lane.b32.xlu2 %v3013_v61, %s3894_s19 }
0x1c9c   :  { %3262 = vperm.xlu2 %3576, %v3258_v62  }
0x1cde   :  { %v3119_v18 = vpop.permute.xlu2 %3118 }
0x1cdf   :  { %v5204_v29 = vadd.f32 %v3119_v18, %v3115_v40  ;;  %v3791_v18 = vld [vmem:[#allocation2 + $0x8] sm:$0xff] }
0x1ce1   :  { %3775 = vtanh.f32 %v5204_v29  ;;  %v3223_v5 = vrot.slane %v5204_v29, 6  ;;  %v3250_v29 = vmul.f32 %v3791_v18, %v3248_v17 }
0x1ce6   :  { %v2585_v8 = vpop.permute.xlu2 %2584 }
0x1ce7   :  { %v3776_v9 = vpop.eup %3775  ;;  %2587 = vst.msk [vmem:[#allocation3] sm:$0xc] %vm1540_vm14, %v2585_v8 }
0x1ce8   :  { %2588 = vst.msk [vmem:[#allocation3 + $0xa] sm:$0xc] %vm1542_vm1, %v2585_v8  ;;  %v3123_v10 = vmul.f32 %v3776_v9, %v3109_v55  ;;  %v3252_v8 = vadd.f32 %v3250_v29, %v3247_v47 }
0x1cea   :  { %v3130_v12 = vrot.slane %v3123_v10, 4 }
0x1cec   :  { %3131 = vrot.lane.b32.xlu0 %v3130_v12, %s3894_s19 }
0x1cee   :  { %v3016_v19 = vpop.permute.xlu2 %3015 }
0x1cf4   :  { %2694 = vrot.lane.b32.xlu0 %v5147_v25, %s3894_s19 }
0x1cfc   :  { %3125 = vrot.lane.b32.xlu0 %v3123_v10, %s3894_s19 }
0x1d04   :  { %3267 = vperm.xlu0 %3574, %v3259_v13  }
0x1d5e   :  { %v3132_v14 = vpop.permute.xlu0 %3131 }
0x1d5f   :  { %3534 = vmatmul.msk.f32.vlgmr.msrb.gmra.mxu2 %vm409_vm2, %v3132_v14  ;;  %3535 = vmatmul.msk.f32.vlgmr.msrb.gmra.mxu3 %vm409_vm2, %v3132_v14 }
0x1d66   :  { %v2695_v15 = vpop.permute.xlu0 %2694 }
0x1d67   :  { %2697 = vst.msk [vmem:[#allocation3] sm:$0x30] %vm1652_vm5, %v2695_v15 }
0x1d68   :  { %2698 = vst.msk [vmem:[#allocation3 + $0x6] sm:$0x30] %vm1654_vm6, %v2695_v15 }
0x1d69   :  { %3018 = vst.msk [vmem:[#allocation3 + $0x8] sm:$0xc] %vm1540_vm14, %v3016_v19 }
0x1d6a   :  { %3019 = vst.msk [vmem:[#allocation3 + $0x2] sm:$0xc] %vm1542_vm1, %v3016_v19  ;;  %v3263_v19 = vpop.permute.xlu2 %3262 }
0x1d6e   :  { %v3126_v25 = vpop.permute.xlu0 %3125 }
0x1d6f   :  { %3128 = vst.msk [vmem:[#allocation3 + $0x8] sm:$0x30] %vm1652_vm5, %v3126_v25 }
0x1d70   :  { %3129 = vst.msk [vmem:[#allocation3 - $0x2] sm:$0x30] %vm1654_vm6, %v3126_v25 }
0x1d76   :  { %v3268_v14 = vpop.permute.xlu0 %3267 }
0x1de2   :  { %v3152_v28 = vpop.f32.mrf.mxu2  ;;  %v3172_v60 = vpop.f32.mrf.mxu3 }
0x1de3   :  { %v3177_v30 = vrot.slane %v3152_v28, 2  ;;  %v3178_v61 = vrot.slane %v3172_v60, 2 }
0x1de5   :  { %v3181_v33 = vadd.f32 %v3177_v30, %v5076_v63  ;;  %v3182_v49 = vadd.f32 %v3178_v61, %v5078_v50 }
0x1de7   :  { %v3536_v56 = vmul.f32 -1.442695, %v3181_v33  ;;  %v3537_v50 = vmul.f32 -1.442695, %v3182_v49 }
0x1de9   :  { %3777 = vpow2.f32 %v3536_v56 }
0x1def   :  { %v3778_v58 = vpop.eup %3777 }
0x1df0   :  { %v3189_v59 = vadd.f32 1.0, %v3778_v58 }
0x1df2   :  { %3779 = vrcp.f32 %v3189_v59  ;;  %v3202_v1 = vand.u32 2147483648, %v3189_v59  ;;  %v3200_v21 = vand.u32 2147483647, %v3189_v59  ;;  %vm3196_vm1 = vweird.f32 %v3189_v59 }
0x1df3   :  { %3781 = vtanh.f32 %v3182_v49 }
0x1df4   :  { %v3203_v63 = vor.u32 1.1754944e-38, %v3202_v1  ;;  %vm3201_vm6 = vcmp.eq.f32.partialorder %v3200_v21, 8.507059e+37  ;;  %3783 = vpow2.f32 %v3537_v50 }
0x1df8   :  { %v3780_v54 = vpop.eup %3779 }
0x1df9   :  { %v3192_v0 = vmul.f32 %v3780_v54, %v3189_v59  ;;  %vm3197_vm14 = vweird.f32 %v3780_v54  ;;  %v3782_v35 = vpop.eup %3781 }
0x1dfa   :  { %vm3198_vm5 = vmor %vm3196_vm1, %vm3197_vm14  ;;  %v3784_v36 = vpop.eup %3783 }
0x1dfb   :  { %v3193_v42 = vsub.f32 1.0, %v3192_v0  ;;  %v3190_v38 = vadd.f32 1.0, %v3784_v36 }
0x1dfd   :  { %v3194_v3 = vmul.f32 %v3780_v54, %v3193_v42  ;;  %3785 = vrcp.f32 %v3190_v38  ;;  %v3217_v39 = vand.u32 2147483648, %v3190_v38  ;;  %vm3211_vm9 = vweird.f32 %v3190_v38 }
0x1dfe   :  { %v3215_v40 = vand.u32 2147483647, %v3190_v38 }
0x1dff   :  { %v3195_v4 = vadd.f32 %v3780_v54, %v3194_v3 }
0x1e00   :  { %vm3216_vm11 = vcmp.eq.f32.partialorder %v3215_v40, 8.507059e+37 }
0x1e01   :  { %v3199_v6 = vsel %vm3198_vm5, %v3780_v54, %v3195_v4 }
0x1e02   :  { %v3204_v31 = vsel %vm3201_vm6, %v3203_v63, %v3199_v6 }
0x1e03   :  { %v3226_v34 = vmul.f32 %v3782_v35, %v3204_v31  ;;  %v3225_v37 = vmul.f32 %v3223_v5, %v3204_v31  ;;  %v3786_v51 = vpop.eup %3785 }
0x1e04   :  { %v3207_v43 = vmul.f32 %v3786_v51, %v3190_v38  ;;  %vm3212_vm4 = vweird.f32 %v3786_v51 }
0x1e05   :  { %3228 = vrot.lane.b32.xlu1 %v3226_v34, %s3894_s19  ;;  %vm3213_vm10 = vmor %vm3211_vm9, %vm3212_vm4 }
0x1e06   :  { %v3208_v44 = vsub.f32 1.0, %v3207_v43 }
0x1e08   :  { %v3209_v48 = vmul.f32 %v3786_v51, %v3208_v44 }
0x1e0a   :  { %v3210_v57 = vadd.f32 %v3786_v51, %v3209_v48 }
0x1e0c   :  { %v3214_v62 = vsel %vm3213_vm10, %v3786_v51, %v3210_v57 }
0x1e0d   :  { %2804 = vrot.lane.b32.xlu1 %v5173_v24, %s3894_s19  ;;  %v3218_v24 = vor.u32 1.1754944e-38, %v3217_v39 }
0x1e0f   :  { %v3219_v11 = vsel %vm3216_vm11, %v3218_v24, %v3214_v62 }
0x1e77   :  { %v3229_v53 = vpop.permute.xlu1 %3228 }
0x1e78   :  { %v3231_v52 = vadd.f32 %v3229_v53, %v3225_v37 }
0x1e7a   :  { %3787 = vtanh.f32 %v3231_v52 }
0x1e7f   :  { %v2805_v2 = vpop.permute.xlu1 %2804 }
0x1e80   :  { %v3788_v16 = vpop.eup %3787  ;;  %2807 = vst.msk [vmem:[#allocation3] sm:$0xc0] %vm1764_vm3, %v2805_v2 }
0x1e81   :  { %2808 = vst.msk [vmem:[#allocation3 + $0x2] sm:$0xc0] %vm1766_vm7, %v2805_v2  ;;  %v3233_v20 = vmul.f32 %v3788_v16, %v3219_v11 }
0x1e82   :  { %2911 = vst.msk [vmem:[#allocation3 + $0x8] sm:$0x3] %vm1431_vm15, %v5183_v41 }
0x1e83   :  { %2912 = vst.msk [vmem:[#allocation3 + $0x6] sm:$0x3] %vm1433_vm0, %v5183_v41  ;;  %3235 = vrot.lane.b32.xlu1 %v3233_v20, %s3894_s19  ;;  %v3246_v41 = vmul.f32 %v3245_v27, %v4467_v46  ;;  %s3895_s19 = smov [#allocation11]  }
0x1e84   :  { %s3278_s2 = sshll.u32 %s3895_s19, 4  ;;  %s3279_s2 = int_to_ptr.vmem [resolvable:$true] %s3278_s2 }
0x1e85   :  { %v3251_v10 = vadd.f32 %v3249_v32, %v3246_v41 }
0x1ef5   :  { %v3236_v22 = vpop.permute.xlu1 %3235 }
0x1ef6   :  { %3238 = vst.msk [vmem:[#allocation3 + $0x8] sm:$0xc0] %vm1764_vm3, %v3236_v22 }
0x1ef7   :  { %3239 = vst.msk [vmem:[#allocation3 - $0x6] sm:$0xc0] %vm1766_vm7, %v3236_v22 }
0x1efd   :  { %v3241_v7 = vld [vmem:[#allocation3 + $0x8] sm:$0xff] }
0x1efe   :  { %v3240_v9 = vld [vmem:[#allocation3] sm:$0xff]  ;;  %v3255_v55 = vmul.f32 %v3253_v26, %v3241_v7 }
0x1eff   :  { %v3254_v12 = vmul.f32 %v3253_v26, %v3240_v9 }
0x1f00   :  { %v3257_v13 = vadd.f32 %v3255_v55, %v3252_v8 }
0x1f01   :  { %v3256_v15 = vadd.f32 %v3254_v12, %v3251_v10 }
0x1f02   :  { %v3271_v25 = vmul.f32 %v3268_v14, %v3257_v13 }
0x1f03   :  { %v3270_v45 = vmul.f32 %v3263_v19, %v3256_v15 }
0x1f04   :  { %3273 = vst.msk [vmem:[#allocation11 + $0x8] sm:$0xff] %vm409_vm2, %v3271_v25 }
0x1f05   :  { %3272 = vst.msk [vmem:[#allocation11] sm:$0xff] %vm409_vm2, %v3270_v45 }
0x1f06   :  { %3286 = dma.vmem_to_hbm [thread:$0]  %s3279_s2, 256, %s3281_s26, [#allocation6], %s3896_s14, %s3896_s14, %s3897_s18  }
0x1f07   :  { %3883 = dma.done.wait [#allocation6], 256  }
0x1f08   :  { %3884 = vsyncadd [#allocation6], 4294967040 }
0x1f09   :  { %3291 = vsyncpa [#allocation5], 1 }
0x1f0a   :  { %3292 = vsyncpa [#allocation10], 1 }
0x1f0b   :  { %3293 = vsyncpa [#allocation6], 1 }
0x1f0c   :  { %3294 = vsyncpa [#allocation7], 1 }

</bundles_post_ra>
